<compile_context>
chip_gen: v7x
topology: tpu7x:2x2x1
jax: 0.10.0
libtpu: 0.0.40
codegen_flags: <defaults>
</compile_context>

<pallas_src>
import functools
import math

import jax
import jax.numpy as jnp
from jax.experimental import pallas as pl
from jax.experimental.pallas import tpu as pltpu


def _block_kernel(x_ref, bias_ref,
                  g1_ref, b1_ref,
                  wqkv_ref, wo_ref, bo_ref,
                  g2_ref, b2_ref,
                  w1_ref, bf1_ref, w2_ref, bf2_ref,
                  g3_ref, b3_ref,
                  wg_ref, bg_ref,
                  we1_ref, be1_ref, we2_ref, be2_ref,
                  o_ref,
                  x2_s, h3_s, sel_s,
                  *, n_head, head_dim, compute_dtype):
    T, C = x_ref.shape
    H, D = n_head, head_dim
    cd = compute_dtype
    f32 = jnp.float32
    approx = cd != jnp.float32          # exact reciprocal on the f32 check path
    e = pl.program_id(1)
    n_e = pl.num_programs(1)

    def layernorm(v, g_ref, b_ref, eps=1e-5):
        g = g_ref[...].astype(f32)
        b = b_ref[...].astype(f32)
        mu = jnp.mean(v, axis=-1, keepdims=True)
        vc = v - mu
        var = jnp.mean(vc * vc, axis=-1, keepdims=True)
        return vc * jax.lax.rsqrt(var + eps) * g + b

    # ---- per-batch prologue (runs once, at expert step 0) -------------------
    @pl.when(e == 0)
    def _prologue():
        x = x_ref[...].astype(f32)

        # attention branch: x + out_proj(attn(ln1(x)))
        h1 = layernorm(x, g1_ref, b1_ref)
        qkv = jnp.dot(h1.astype(cd), wqkv_ref[...],
                      preferred_element_type=f32)               # (T, 3C)
        bias = bias_ref[...]                                     # (T, T) additive causal
        scale = 1.0 / math.sqrt(D)

        heads = []
        for h in range(H):                                       # static unroll, per-head lane slices
            lo = h * D
            qh = (qkv[:, lo:lo + D] * scale).astype(cd)          # (T, D)
            kh = qkv[:, C + lo:C + lo + D].astype(cd)            # (T, D)
            vh = qkv[:, 2 * C + lo:2 * C + lo + D].astype(cd)    # (T, D)
            # q @ k^T with the transpose folded into the contraction dims.
            s = jax.lax.dot_general(qh, kh, (((1,), (1,)), ((), ())),
                                    preferred_element_type=f32) + bias
            m = jnp.max(s, axis=-1, keepdims=True)
            p = jnp.exp(s - m)
            l = jnp.sum(p, axis=-1, keepdims=True)
            oh = jnp.dot(p.astype(cd), vh, preferred_element_type=f32)
            heads.append(oh * pl.reciprocal(l, approx=approx))
        attn = jnp.concatenate(heads, axis=-1)                   # (T, C)
        attn = jnp.dot(attn.astype(cd), wo_ref[...],
                       preferred_element_type=f32) + bo_ref[...].astype(f32)
        x1 = x + attn

        # feed-forward branch: x + ff(ln2(x))
        h2 = layernorm(x1, g2_ref, b2_ref)
        ff = jnp.maximum(
            jnp.dot(h2.astype(cd), w1_ref[...],
                    preferred_element_type=f32) + bf1_ref[...].astype(f32), 0.0)
        ff = jnp.dot(ff.astype(cd), w2_ref[...],
                     preferred_element_type=f32) + bf2_ref[...].astype(f32)
        x2 = x1 + ff

        # MoE gate in f32 (stable top-1 routing even on the bf16 path)
        h3 = layernorm(x2, g3_ref, b3_ref)
        gate = jnp.dot(h3, wg_ref[...].astype(f32),
                       preferred_element_type=f32) + bg_ref[...].astype(f32)
        n_experts = gate.shape[-1]
        gmax = jnp.max(gate, axis=-1, keepdims=True)
        eidx = jax.lax.broadcasted_iota(jnp.int32, gate.shape, 1)
        # first argmax (matches torch.topk tie-breaking); softmax of 1 score == 1.0
        sel = jnp.min(jnp.where(gate >= gmax, eidx, n_experts),
                      axis=-1, keepdims=True)                     # (T, 1)

        x2_s[...] = x2
        h3_s[...] = h3.astype(cd)
        sel_s[...] = sel

    # ---- one expert per grid step (only its weights are VMEM-resident) ------
    h3c = h3_s[...]
    eh = jnp.maximum(
        jnp.dot(h3c, we1_ref[...], preferred_element_type=f32)
        + be1_ref[...].astype(f32), 0.0)
    eo = jnp.dot(eh.astype(cd), we2_ref[...],
                 preferred_element_type=f32) + be2_ref[...].astype(f32)
    mask = (sel_s[...] == e).astype(f32)                          # top-1 weight is exactly 1.0
    x2_s[...] = x2_s[...] + mask * eo

    # ---- per-batch epilogue --------------------------------------------------
    @pl.when(e == n_e - 1)
    def _epilogue():
        o_ref[...] = x2_s[...].astype(o_ref.dtype)


def prepare_block_params(p, *, compute_dtype=jnp.float32):
    """One-time parameter prep: fuse QKV and pre-cast matmul weights to the
    compute dtype so the kernel never re-casts weight tiles per grid step."""
    cd = compute_dtype
    f32 = jnp.float32
    E, C, Hf = p['we1'].shape
    r = lambda v: v.reshape(1, -1).astype(f32)
    return dict(
        g1=r(p['g1']), b1=r(p['b1']),
        wqkv=jnp.concatenate([p['wq'], p['wk'], p['wv']], axis=1).astype(cd),
        wo=p['wo'].astype(cd), bo=r(p['bo']),
        g2=r(p['g2']), b2=r(p['b2']),
        w1=p['w1'].astype(cd), bf1=r(p['bf1']),
        w2=p['w2'].astype(cd), bf2=r(p['bf2']),
        g3=r(p['g3']), b3=r(p['b3']),
        wg=p['wg'].astype(f32), bg=r(p['bg']),            # gate kept f32 for routing
        we1=p['we1'].astype(cd), be1=p['be1'].reshape(E, 1, Hf).astype(f32),
        we2=p['we2'].astype(cd), be2=p['be2'].reshape(E, 1, C).astype(f32),
    )


def _pick_vmem_limit():
    cap = 128 * 1024 * 1024
    try:
        info = pltpu.get_tpu_info()
        cap = int(getattr(info, "vmem_capacity_bytes", cap))
    except Exception:
        pass
    # ~75% of physical, capped at 100 MiB: ~48 MiB on v7x, ~96 MiB on v5e/v6e.
    return max(32 * 1024 * 1024, min(cap - cap // 4, 100 * 1024 * 1024))


def block_forward(x, w, *, n_head, n_query_groups, compute_dtype=jnp.float32,
                  weight_buffers=1):
    """x: (B, T, C); w: output of prepare_block_params (weights stored (in, out))."""
    B, T, C = x.shape
    assert C % n_head == 0 and n_head % n_query_groups == 0
    D = C // n_head
    E, _, Hf = w['we1'].shape

    # Additive causal bias (finite, no -inf/NaN hazard), built once per call.
    row = jax.lax.broadcasted_iota(jnp.int32, (T, T), 0)
    col = jax.lax.broadcasted_iota(jnp.int32, (T, T), 1)
    causal_bias = jnp.where(row >= col, 0.0, -1e30).astype(jnp.float32)

    def const_spec(shape):
        zeros = (0,) * len(shape)
        idx = lambda b, e, _z=zeros: _z
        if weight_buffers is None:
            return pl.BlockSpec(shape, idx)
        # constant index map -> single buffer is enough (halves weight VMEM)
        return pl.BlockSpec(shape, idx, pipeline_mode=pl.Buffered(weight_buffers))

    def expert_spec(shape):
        # one expert's slab per e-step; default double buffering overlaps the
        # next expert's weight DMA with the current expert's matmuls.
        nrest = len(shape) - 1
        return pl.BlockSpec((None,) + shape[1:],
                            lambda b, e, _n=nrest: (e,) + (0,) * _n)

    in_specs = [
        pl.BlockSpec((None, T, C), lambda b, e: (b, 0, 0)),   # x (per-batch tile)
        const_spec((T, T)),                                   # causal bias
        const_spec((1, C)), const_spec((1, C)),               # ln1 gamma/beta
        const_spec((C, 3 * C)),                               # fused Wqkv
        const_spec((C, C)), const_spec((1, C)),               # Wo, bo
        const_spec((1, C)), const_spec((1, C)),               # ln2 gamma/beta
        const_spec((C, Hf)), const_spec((1, Hf)),             # FF W1, b1
        const_spec((Hf, C)), const_spec((1, C)),              # FF W2, b2
        const_spec((1, C)), const_spec((1, C)),               # ln3 gamma/beta
        const_spec((C, E)), const_spec((1, E)),               # gate W, b
        expert_spec((E, C, Hf)), expert_spec((E, 1, Hf)),     # expert layer-1 W, b
        expert_spec((E, Hf, C)), expert_spec((E, 1, C)),      # expert layer-2 W, b
    ]

    itemsize = 2 if compute_dtype == jnp.bfloat16 else 4
    flops = B * T * (2 * C * 3 * C          # fused QKV
                     + 4 * T * C            # QK^T + PV
                     + 2 * C * C            # out projection
                     + 4 * C * Hf           # feed-forward
                     + 2 * C * E            # gate
                     + E * 4 * C * Hf)      # dense experts
    transcendentals = B * T * (n_head * T + 8)
    bytes_accessed = (2 * B * T * C * 4
                      + itemsize * (4 * C * C + 2 * C * Hf + 2 * E * C * Hf)
                      + 4 * (C * E + 8 * C + Hf + E * (Hf + C) + T * T))

    kernel = functools.partial(_block_kernel, n_head=n_head, head_dim=D,
                               compute_dtype=compute_dtype)

    return pl.pallas_call(
        kernel,
        out_shape=jax.ShapeDtypeStruct((B, T, C), x.dtype),
        grid=(B, E),
        in_specs=in_specs,
        out_specs=pl.BlockSpec((None, T, C), lambda b, e: (b, 0, 0)),
        scratch_shapes=[
            pltpu.VMEM((T, C), jnp.float32),     # residual after FF + MoE accumulator
            pltpu.VMEM((T, C), compute_dtype),   # ln3 output (expert matmul input)
            pltpu.VMEM((T, 1), jnp.int32),       # top-1 expert id per token
        ],
        compiler_params=pltpu.CompilerParams(
            dimension_semantics=("parallel", "arbitrary"),
            vmem_limit_bytes=_pick_vmem_limit(),
        ),
        cost_estimate=pl.CostEstimate(
            flops=flops, transcendentals=transcendentals,
            bytes_accessed=bytes_accessed),
    )(x, causal_bias,
      w['g1'], w['b1'],
      w['wqkv'], w['wo'], w['bo'],
      w['g2'], w['b2'],
      w['w1'], w['bf1'], w['w2'], w['bf2'],
      w['g3'], w['b3'],
      w['wg'], w['bg'],
      w['we1'], w['be1'], w['we2'], w['be2'])


def run_block(x, p, *, n_head, n_query_groups, compute_dtype=jnp.float32):
    prepared = prepare_block_params(p, compute_dtype=compute_dtype)
    try:
        out = block_forward(x, prepared, n_head=n_head,
                            n_query_groups=n_query_groups,
                            compute_dtype=compute_dtype, weight_buffers=1)
        return jax.block_until_ready(out)
    except Exception:
        # Fallback if this JAX build rejects single-buffered weight specs.
        out = block_forward(x, prepared, n_head=n_head,
                            n_query_groups=n_query_groups,
                            compute_dtype=compute_dtype, weight_buffers=None)
        return jax.block_until_ready(out)


def _reference(x, p, *, n_head, n_query_groups):
    """Pure-JAX mirror of the PyTorch Block forward (eval mode)."""
    eps = 1e-5

    def ln(v, g, b):
        mu = v.mean(-1, keepdims=True)
        var = ((v - mu) ** 2).mean(-1, keepdims=True)
        return (v - mu) / jnp.sqrt(var + eps) * g + b

    B, T, C = x.shape
    H, G = n_head, n_query_groups
    D = C // H
    E = p['we1'].shape[0]

    # --- GroupedQueryAttention (mirrors the module's quirky reshape loop) ---
    h = ln(x, p['g1'], p['b1'])
    q = (h @ p['wq']).reshape(B, T, H, D)
    k = (h @ p['wk']).reshape(B, T, G, H // G, D)
    v = (h @ p['wv']).reshape(B, T, G, H // G, D)
    k = jnp.transpose(k, (0, 2, 1, 3, 4)).reshape(B, G, T, (H // G) * D)
    v = jnp.transpose(v, (0, 2, 1, 3, 4)).reshape(B, G, T, (H // G) * D)
    q = jnp.transpose(q, (0, 2, 1, 3)).reshape(B, G, H // G, T, D)
    tril = jnp.tril(jnp.ones((T, T), dtype=bool))
    outs = []
    for g in range(G):
        qg = q[:, g]
        kg = jnp.transpose(k[:, g].reshape(B, T, H // G, D), (0, 2, 1, 3))
        vg = jnp.transpose(v[:, g].reshape(B, T, H // G, D), (0, 2, 1, 3))
        s = jnp.einsum('bhtd,bhsd->bhts', qg, kg) / math.sqrt(D)
        s = jnp.where(tril[None, None], s, -jnp.inf)
        pr = jax.nn.softmax(s, axis=-1)
        outs.append(jnp.einsum('bhts,bhsd->bhtd', pr, vg))
    att = jnp.concatenate(outs, axis=1)
    att = jnp.transpose(att, (0, 2, 1, 3)).reshape(B, T, C)
    x1 = x + (att @ p['wo'] + p['bo'][None, None, :])

    # --- FeedForward ---
    h2 = ln(x1, p['g2'], p['b2'])
    ff = jax.nn.relu(h2 @ p['w1'] + p['bf1'][None, None, :]) @ p['w2'] \
        + p['bf2'][None, None, :]
    x2 = x1 + ff

    # --- MoE, k = 1 (top-1 softmax weight is exactly 1) ---
    h3 = ln(x2, p['g3'], p['b3'])
    gate = h3 @ p['wg'] + p['bg'][None, None, :]
    idx = jnp.argmax(gate, axis=-1)
    eouts = []
    for e in range(E):
        eh = jax.nn.relu(h3 @ p['we1'][e] + p['be1'][e][None, None, :])
        eouts.append(eh @ p['we2'][e] + p['be2'][e][None, None, :])
    eouts = jnp.stack(eouts, axis=-2)                       # (B, T, E, C)
    moe = jnp.take_along_axis(eouts, idx[..., None, None], axis=-2)[..., 0, :]
    return x2 + moe


if __name__ == "__main__":
    # Small shapes consistent with the module: B=2, T=8 (<= block_size),
    # C=32, H=4, G=2, FF hidden=4*C=128, 4 experts, k=1.
    B, T, C = 2, 8, 32
    n_head, n_query_groups = 4, 2
    Hf = 4 * C
    E = 4

    key = jax.random.PRNGKey(0)
    ks = jax.random.split(key, 20)

    def lin_w(k, fan_in, shape):
        bound = 1.0 / math.sqrt(fan_in)   # PyTorch Linear default init range
        return jax.random.uniform(k, shape, jnp.float32, -bound, bound)

    x = jax.random.normal(ks[0], (B, T, C), dtype=jnp.float32)
    p = dict(
        g1=1.0 + 0.1 * jax.random.normal(ks[1], (C,), jnp.float32),
        b1=0.1 * jax.random.normal(ks[2], (C,), jnp.float32),
        wq=lin_w(ks[3], C, (C, C)),
        wk=lin_w(ks[4], C, (C, C)),
        wv=lin_w(ks[5], C, (C, C)),
        wo=lin_w(ks[6], C, (C, C)),
        bo=lin_w(ks[7], C, (C,)),
        g2=1.0 + 0.1 * jax.random.normal(ks[8], (C,), jnp.float32),
        b2=0.1 * jax.random.normal(ks[9], (C,), jnp.float32),
        w1=lin_w(ks[10], C, (C, Hf)),
        bf1=lin_w(ks[11], C, (Hf,)),
        w2=lin_w(ks[12], Hf, (Hf, C)),
        bf2=lin_w(ks[13], Hf, (C,)),
        g3=1.0 + 0.1 * jax.random.normal(ks[14], (C,), jnp.float32),
        b3=0.1 * jax.random.normal(ks[15], (C,), jnp.float32),
        wg=lin_w(ks[16], C, (C, E)),
        bg=lin_w(ks[17], C, (E,)),
        we1=lin_w(ks[18], C, (E, C, Hf)),
        be1=lin_w(ks[19], C, (E, Hf)),
        we2=lin_w(ks[19], Hf, (E, Hf, C)),
        be2=lin_w(ks[18], Hf, (E, C)),
    )

    ref = _reference(x, p, n_head=n_head, n_query_groups=n_query_groups)

    # f32 compute path — tight correctness check vs the pure-JAX reference.
    out = run_block(x, p, n_head=n_head, n_query_groups=n_query_groups,
                    compute_dtype=jnp.float32)
    assert out.shape == (B, T, C)
    err = float(jnp.max(jnp.abs(out - ref)))
    assert err < 2e-3, f"f32 kernel mismatch vs reference: max abs err {err}"

    # bf16 MXU path (v6e/v7x throughput lever) — loose sanity check only,
    # since bf16 rounding of attention/FF may shift the MoE gate inputs.
    out_bf = run_block(x, p, n_head=n_head, n_query_groups=n_query_groups,
                       compute_dtype=jnp.bfloat16)
    assert out_bf.shape == (B, T, C)
    assert float(jnp.mean(jnp.abs(out_bf.astype(jnp.float32) - ref))) < 0.1

    print("KERNEL_OK")
</pallas_src>

<mosaic_0001>
module attributes {stable_mosaic.version = 11 : i64} {
  func.func @_block_kernel(%arg0: i32, %arg1: i32, %arg2: memref<1x8x32xf32, #tpu.memory_space<vmem>>, %arg3: memref<8x8xf32, #tpu.memory_space<vmem>>, %arg4: memref<1x32xf32, #tpu.memory_space<vmem>>, %arg5: memref<1x32xf32, #tpu.memory_space<vmem>>, %arg6: memref<32x96xf32, #tpu.memory_space<vmem>>, %arg7: memref<32x32xf32, #tpu.memory_space<vmem>>, %arg8: memref<1x32xf32, #tpu.memory_space<vmem>>, %arg9: memref<1x32xf32, #tpu.memory_space<vmem>>, %arg10: memref<1x32xf32, #tpu.memory_space<vmem>>, %arg11: memref<32x128xf32, #tpu.memory_space<vmem>>, %arg12: memref<1x128xf32, #tpu.memory_space<vmem>>, %arg13: memref<128x32xf32, #tpu.memory_space<vmem>>, %arg14: memref<1x32xf32, #tpu.memory_space<vmem>>, %arg15: memref<1x32xf32, #tpu.memory_space<vmem>>, %arg16: memref<1x32xf32, #tpu.memory_space<vmem>>, %arg17: memref<32x4xf32, #tpu.memory_space<vmem>>, %arg18: memref<1x4xf32, #tpu.memory_space<vmem>>, %arg19: memref<1x32x128xf32, #tpu.memory_space<vmem>>, %arg20: memref<1x1x128xf32, #tpu.memory_space<vmem>>, %arg21: memref<1x128x32xf32, #tpu.memory_space<vmem>>, %arg22: memref<1x1x32xf32, #tpu.memory_space<vmem>>, %arg23: memref<1x8x32xf32, #tpu.memory_space<vmem>>, %arg24: memref<8x32xf32, #tpu.memory_space<vmem>>, %arg25: memref<8x32xf32, #tpu.memory_space<vmem>>, %arg26: memref<8x1xi32, #tpu.memory_space<vmem>>) attributes {dimension_semantics = [#tpu.dimension_semantics<parallel>, #tpu.dimension_semantics<arbitrary>], iteration_bounds = array<i64: 2, 4>, scalar_prefetch = 0 : i64, scratch_operands = 3 : i64, tpu.core_type = #tpu.core_type<tc>, window_params = [{transform_indices = @transform_0, window_bounds = array<i64: 1, 8, 32>}, {pipeline_mode = #tpu.pipeline_mode<synchronous>, transform_indices = @transform_1, window_bounds = array<i64: 8, 8>}, {pipeline_mode = #tpu.pipeline_mode<synchronous>, transform_indices = @transform_2, window_bounds = array<i64: 1, 32>}, {pipeline_mode = #tpu.pipeline_mode<synchronous>, transform_indices = @transform_3, window_bounds = array<i64: 1, 32>}, {pipeline_mode = #tpu.pipeline_mode<synchronous>, transform_indices = @transform_4, window_bounds = array<i64: 32, 96>}, {pipeline_mode = #tpu.pipeline_mode<synchronous>, transform_indices = @transform_5, window_bounds = array<i64: 32, 32>}, {pipeline_mode = #tpu.pipeline_mode<synchronous>, transform_indices = @transform_6, window_bounds = array<i64: 1, 32>}, {pipeline_mode = #tpu.pipeline_mode<synchronous>, transform_indices = @transform_7, window_bounds = array<i64: 1, 32>}, {pipeline_mode = #tpu.pipeline_mode<synchronous>, transform_indices = @transform_8, window_bounds = array<i64: 1, 32>}, {pipeline_mode = #tpu.pipeline_mode<synchronous>, transform_indices = @transform_9, window_bounds = array<i64: 32, 128>}, {pipeline_mode = #tpu.pipeline_mode<synchronous>, transform_indices = @transform_10, window_bounds = array<i64: 1, 128>}, {pipeline_mode = #tpu.pipeline_mode<synchronous>, transform_indices = @transform_11, window_bounds = array<i64: 128, 32>}, {pipeline_mode = #tpu.pipeline_mode<synchronous>, transform_indices = @transform_12, window_bounds = array<i64: 1, 32>}, {pipeline_mode = #tpu.pipeline_mode<synchronous>, transform_indices = @transform_13, window_bounds = array<i64: 1, 32>}, {pipeline_mode = #tpu.pipeline_mode<synchronous>, transform_indices = @transform_14, window_bounds = array<i64: 1, 32>}, {pipeline_mode = #tpu.pipeline_mode<synchronous>, transform_indices = @transform_15, window_bounds = array<i64: 32, 4>}, {pipeline_mode = #tpu.pipeline_mode<synchronous>, transform_indices = @transform_16, window_bounds = array<i64: 1, 4>}, {transform_indices = @transform_17, window_bounds = array<i64: 1, 32, 128>}, {transform_indices = @transform_18, window_bounds = array<i64: 1, 1, 128>}, {transform_indices = @transform_19, window_bounds = array<i64: 1, 128, 32>}, {transform_indices = @transform_20, window_bounds = array<i64: 1, 1, 32>}, {transform_indices = @transform_21, window_bounds = array<i64: 1, 8, 32>}]} {
    %c0_i32 = arith.constant 0 : i32
    %0 = arith.cmpi eq, %arg1, %c0_i32 : i32
    %1 = arith.extui %0 : i1 to i32
    %c0_i32_0 = arith.constant 0 : i32
    %2 = arith.cmpi ne, %1, %c0_i32_0 : i32
    scf.if %2 {
      %c0_23 = arith.constant 0 : index
      %c0_24 = arith.constant 0 : index
      %c0_25 = arith.constant 0 : index
      %33 = vector.load %arg2[%c0_23, %c0_24, %c0_25] : memref<1x8x32xf32, #tpu.memory_space<vmem>>, vector<1x8x32xf32>
      %34 = vector.shape_cast %33 : vector<1x8x32xf32> to vector<8x32xf32>
      %c0_26 = arith.constant 0 : index
      %c0_27 = arith.constant 0 : index
      %35 = vector.load %arg4[%c0_26, %c0_27] : memref<1x32xf32, #tpu.memory_space<vmem>>, vector<1x32xf32>
      %c0_28 = arith.constant 0 : index
      %c0_29 = arith.constant 0 : index
      %36 = vector.load %arg5[%c0_28, %c0_29] : memref<1x32xf32, #tpu.memory_space<vmem>>, vector<1x32xf32>
      %cst_30 = arith.constant dense<0.000000e+00> : vector<8xf32>
      %37 = vector.multi_reduction <add>, %34, %cst_30 [1] : vector<8x32xf32> to vector<8xf32>
      %38 = vector.shape_cast %37 : vector<8xf32> to vector<8x1xf32>
      %cst_31 = arith.constant 3.200000e+01 : f32
      %39 = vector.broadcast %cst_31 : f32 to vector<8x1xf32>
      %40 = arith.divf %38, %39 : vector<8x1xf32>
      %41 = vector.broadcast %40 : vector<8x1xf32> to vector<8x32xf32>
      %42 = arith.subf %34, %41 : vector<8x32xf32>
      %43 = arith.mulf %42, %42 : vector<8x32xf32>
      %cst_32 = arith.constant dense<0.000000e+00> : vector<8xf32>
      %44 = vector.multi_reduction <add>, %43, %cst_32 [1] : vector<8x32xf32> to vector<8xf32>
      %45 = vector.shape_cast %44 : vector<8xf32> to vector<8x1xf32>
      %cst_33 = arith.constant 3.200000e+01 : f32
      %46 = vector.broadcast %cst_33 : f32 to vector<8x1xf32>
      %47 = arith.divf %45, %46 : vector<8x1xf32>
      %cst_34 = arith.constant 9.99999974E-6 : f32
      %48 = vector.broadcast %cst_34 : f32 to vector<8x1xf32>
      %49 = arith.addf %47, %48 : vector<8x1xf32>
      %50 = math.rsqrt %49 : vector<8x1xf32>
      %51 = vector.broadcast %50 : vector<8x1xf32> to vector<8x32xf32>
      %52 = arith.mulf %42, %51 : vector<8x32xf32>
      %53 = vector.broadcast %35 : vector<1x32xf32> to vector<8x32xf32>
      %54 = arith.mulf %52, %53 : vector<8x32xf32>
      %55 = vector.broadcast %36 : vector<1x32xf32> to vector<8x32xf32>
      %56 = arith.addf %54, %55 : vector<8x32xf32>
      %c0_35 = arith.constant 0 : index
      %c0_36 = arith.constant 0 : index
      %57 = vector.load %arg6[%c0_35, %c0_36] : memref<32x96xf32, #tpu.memory_space<vmem>>, vector<32x96xf32>
      %cst_37 = arith.constant dense<0.000000e+00> : vector<8x96xf32>
      %58 = tpu.matmul %56, %57, %cst_37 {dimension_numbers = #tpu.dot_dimension_numbers<[1], [0], [0], [1], [0, 0, 1, 1], [], []>} : vector<8x32xf32>, vector<32x96xf32>, vector<8x96xf32> -> vector<8x96xf32>
      %c0_38 = arith.constant 0 : index
      %c0_39 = arith.constant 0 : index
      %59 = vector.load %arg3[%c0_38, %c0_39] : memref<8x8xf32, #tpu.memory_space<vmem>>, vector<8x8xf32>
      %60 = vector.extract_strided_slice %58 {offsets = [0, 0], sizes = [8, 8], strides = [1, 1]} : vector<8x96xf32> to vector<8x8xf32>
      %cst_40 = arith.constant 0.353553385 : f32
      %61 = vector.broadcast %cst_40 : f32 to vector<8x8xf32>
      %62 = arith.mulf %60, %61 : vector<8x8xf32>
      %63 = vector.extract_strided_slice %58 {offsets = [0, 32], sizes = [8, 8], strides = [1, 1]} : vector<8x96xf32> to vector<8x8xf32>
      %64 = vector.extract_strided_slice %58 {offsets = [0, 64], sizes = [8, 8], strides = [1, 1]} : vector<8x96xf32> to vector<8x8xf32>
      %cst_41 = arith.constant dense<0.000000e+00> : vector<8x8xf32>
      %65 = tpu.matmul %62, %63, %cst_41 {dimension_numbers = #tpu.dot_dimension_numbers<[1], [1], [0], [0], [0, 0, 1, 0], [], []>} : vector<8x8xf32>, vector<8x8xf32>, vector<8x8xf32> -> vector<8x8xf32>
      %66 = arith.addf %65, %59 : vector<8x8xf32>
      %cst_42 = arith.constant dense<0xFF800000> : vector<8xf32>
      %67 = vector.multi_reduction <maximumf>, %66, %cst_42 [1] : vector<8x8xf32> to vector<8xf32>
      %68 = vector.shape_cast %67 : vector<8xf32> to vector<8x1xf32>
      %69 = vector.broadcast %68 : vector<8x1xf32> to vector<8x8xf32>
      %70 = arith.subf %66, %69 : vector<8x8xf32>
      %71 = math.exp %70 : vector<8x8xf32>
      %cst_43 = arith.constant dense<0.000000e+00> : vector<8xf32>
      %72 = vector.multi_reduction <add>, %71, %cst_43 [1] : vector<8x8xf32> to vector<8xf32>
      %73 = vector.shape_cast %72 : vector<8xf32> to vector<8x1xf32>
      %cst_44 = arith.constant dense<0.000000e+00> : vector<8x8xf32>
      %74 = tpu.matmul %71, %64, %cst_44 {dimension_numbers = #tpu.dot_dimension_numbers<[1], [0], [0], [1], [0, 0, 1, 1], [], []>} : vector<8x8xf32>, vector<8x8xf32>, vector<8x8xf32> -> vector<8x8xf32>
      %75 = tpu.reciprocal %73 : vector<8x1xf32> -> vector<8x1xf32>
      %76 = vector.broadcast %75 : vector<8x1xf32> to vector<8x8xf32>
      %77 = arith.mulf %74, %76 : vector<8x8xf32>
      %78 = vector.extract_strided_slice %58 {offsets = [0, 8], sizes = [8, 8], strides = [1, 1]} : vector<8x96xf32> to vector<8x8xf32>
      %cst_45 = arith.constant 0.353553385 : f32
      %79 = vector.broadcast %cst_45 : f32 to vector<8x8xf32>
      %80 = arith.mulf %78, %79 : vector<8x8xf32>
      %81 = vector.extract_strided_slice %58 {offsets = [0, 40], sizes = [8, 8], strides = [1, 1]} : vector<8x96xf32> to vector<8x8xf32>
      %82 = vector.extract_strided_slice %58 {offsets = [0, 72], sizes = [8, 8], strides = [1, 1]} : vector<8x96xf32> to vector<8x8xf32>
      %cst_46 = arith.constant dense<0.000000e+00> : vector<8x8xf32>
      %83 = tpu.matmul %80, %81, %cst_46 {dimension_numbers = #tpu.dot_dimension_numbers<[1], [1], [0], [0], [0, 0, 1, 0], [], []>} : vector<8x8xf32>, vector<8x8xf32>, vector<8x8xf32> -> vector<8x8xf32>
      %84 = arith.addf %83, %59 : vector<8x8xf32>
      %cst_47 = arith.constant dense<0xFF800000> : vector<8xf32>
      %85 = vector.multi_reduction <maximumf>, %84, %cst_47 [1] : vector<8x8xf32> to vector<8xf32>
      %86 = vector.shape_cast %85 : vector<8xf32> to vector<8x1xf32>
      %87 = vector.broadcast %86 : vector<8x1xf32> to vector<8x8xf32>
      %88 = arith.subf %84, %87 : vector<8x8xf32>
      %89 = math.exp %88 : vector<8x8xf32>
      %cst_48 = arith.constant dense<0.000000e+00> : vector<8xf32>
      %90 = vector.multi_reduction <add>, %89, %cst_48 [1] : vector<8x8xf32> to vector<8xf32>
      %91 = vector.shape_cast %90 : vector<8xf32> to vector<8x1xf32>
      %cst_49 = arith.constant dense<0.000000e+00> : vector<8x8xf32>
      %92 = tpu.matmul %89, %82, %cst_49 {dimension_numbers = #tpu.dot_dimension_numbers<[1], [0], [0], [1], [0, 0, 1, 1], [], []>} : vector<8x8xf32>, vector<8x8xf32>, vector<8x8xf32> -> vector<8x8xf32>
      %93 = tpu.reciprocal %91 : vector<8x1xf32> -> vector<8x1xf32>
      %94 = vector.broadcast %93 : vector<8x1xf32> to vector<8x8xf32>
      %95 = arith.mulf %92, %94 : vector<8x8xf32>
      %96 = vector.extract_strided_slice %58 {offsets = [0, 16], sizes = [8, 8], strides = [1, 1]} : vector<8x96xf32> to vector<8x8xf32>
      %cst_50 = arith.constant 0.353553385 : f32
      %97 = vector.broadcast %cst_50 : f32 to vector<8x8xf32>
      %98 = arith.mulf %96, %97 : vector<8x8xf32>
      %99 = vector.extract_strided_slice %58 {offsets = [0, 48], sizes = [8, 8], strides = [1, 1]} : vector<8x96xf32> to vector<8x8xf32>
      %100 = vector.extract_strided_slice %58 {offsets = [0, 80], sizes = [8, 8], strides = [1, 1]} : vector<8x96xf32> to vector<8x8xf32>
      %cst_51 = arith.constant dense<0.000000e+00> : vector<8x8xf32>
      %101 = tpu.matmul %98, %99, %cst_51 {dimension_numbers = #tpu.dot_dimension_numbers<[1], [1], [0], [0], [0, 0, 1, 0], [], []>} : vector<8x8xf32>, vector<8x8xf32>, vector<8x8xf32> -> vector<8x8xf32>
      %102 = arith.addf %101, %59 : vector<8x8xf32>
      %cst_52 = arith.constant dense<0xFF800000> : vector<8xf32>
      %103 = vector.multi_reduction <maximumf>, %102, %cst_52 [1] : vector<8x8xf32> to vector<8xf32>
      %104 = vector.shape_cast %103 : vector<8xf32> to vector<8x1xf32>
      %105 = vector.broadcast %104 : vector<8x1xf32> to vector<8x8xf32>
      %106 = arith.subf %102, %105 : vector<8x8xf32>
      %107 = math.exp %106 : vector<8x8xf32>
      %cst_53 = arith.constant dense<0.000000e+00> : vector<8xf32>
      %108 = vector.multi_reduction <add>, %107, %cst_53 [1] : vector<8x8xf32> to vector<8xf32>
      %109 = vector.shape_cast %108 : vector<8xf32> to vector<8x1xf32>
      %cst_54 = arith.constant dense<0.000000e+00> : vector<8x8xf32>
      %110 = tpu.matmul %107, %100, %cst_54 {dimension_numbers = #tpu.dot_dimension_numbers<[1], [0], [0], [1], [0, 0, 1, 1], [], []>} : vector<8x8xf32>, vector<8x8xf32>, vector<8x8xf32> -> vector<8x8xf32>
      %111 = tpu.reciprocal %109 : vector<8x1xf32> -> vector<8x1xf32>
      %112 = vector.broadcast %111 : vector<8x1xf32> to vector<8x8xf32>
      %113 = arith.mulf %110, %112 : vector<8x8xf32>
      %114 = vector.extract_strided_slice %58 {offsets = [0, 24], sizes = [8, 8], strides = [1, 1]} : vector<8x96xf32> to vector<8x8xf32>
      %cst_55 = arith.constant 0.353553385 : f32
      %115 = vector.broadcast %cst_55 : f32 to vector<8x8xf32>
      %116 = arith.mulf %114, %115 : vector<8x8xf32>
      %117 = vector.extract_strided_slice %58 {offsets = [0, 56], sizes = [8, 8], strides = [1, 1]} : vector<8x96xf32> to vector<8x8xf32>
      %118 = vector.extract_strided_slice %58 {offsets = [0, 88], sizes = [8, 8], strides = [1, 1]} : vector<8x96xf32> to vector<8x8xf32>
      %cst_56 = arith.constant dense<0.000000e+00> : vector<8x8xf32>
      %119 = tpu.matmul %116, %117, %cst_56 {dimension_numbers = #tpu.dot_dimension_numbers<[1], [1], [0], [0], [0, 0, 1, 0], [], []>} : vector<8x8xf32>, vector<8x8xf32>, vector<8x8xf32> -> vector<8x8xf32>
      %120 = arith.addf %119, %59 : vector<8x8xf32>
      %cst_57 = arith.constant dense<0xFF800000> : vector<8xf32>
      %121 = vector.multi_reduction <maximumf>, %120, %cst_57 [1] : vector<8x8xf32> to vector<8xf32>
      %122 = vector.shape_cast %121 : vector<8xf32> to vector<8x1xf32>
      %123 = vector.broadcast %122 : vector<8x1xf32> to vector<8x8xf32>
      %124 = arith.subf %120, %123 : vector<8x8xf32>
      %125 = math.exp %124 : vector<8x8xf32>
      %cst_58 = arith.constant dense<0.000000e+00> : vector<8xf32>
      %126 = vector.multi_reduction <add>, %125, %cst_58 [1] : vector<8x8xf32> to vector<8xf32>
      %127 = vector.shape_cast %126 : vector<8xf32> to vector<8x1xf32>
      %cst_59 = arith.constant dense<0.000000e+00> : vector<8x8xf32>
      %128 = tpu.matmul %125, %118, %cst_59 {dimension_numbers = #tpu.dot_dimension_numbers<[1], [0], [0], [1], [0, 0, 1, 1], [], []>} : vector<8x8xf32>, vector<8x8xf32>, vector<8x8xf32> -> vector<8x8xf32>
      %129 = tpu.reciprocal %127 : vector<8x1xf32> -> vector<8x1xf32>
      %130 = vector.broadcast %129 : vector<8x1xf32> to vector<8x8xf32>
      %131 = arith.mulf %128, %130 : vector<8x8xf32>
      %132 = tpu.concatenate %77, %95, %113, %131 in 1 : vector<8x8xf32>, vector<8x8xf32>, vector<8x8xf32>, vector<8x8xf32> -> vector<8x32xf32>
      %c0_60 = arith.constant 0 : index
      %c0_61 = arith.constant 0 : index
      %133 = vector.load %arg7[%c0_60, %c0_61] : memref<32x32xf32, #tpu.memory_space<vmem>>, vector<32x32xf32>
      %cst_62 = arith.constant dense<0.000000e+00> : vector<8x32xf32>
      %134 = tpu.matmul %132, %133, %cst_62 {dimension_numbers = #tpu.dot_dimension_numbers<[1], [0], [0], [1], [0, 0, 1, 1], [], []>} : vector<8x32xf32>, vector<32x32xf32>, vector<8x32xf32> -> vector<8x32xf32>
      %c0_63 = arith.constant 0 : index
      %c0_64 = arith.constant 0 : index
      %135 = vector.load %arg8[%c0_63, %c0_64] : memref<1x32xf32, #tpu.memory_space<vmem>>, vector<1x32xf32>
      %136 = vector.broadcast %135 : vector<1x32xf32> to vector<8x32xf32>
      %137 = arith.addf %134, %136 : vector<8x32xf32>
      %138 = arith.addf %34, %137 : vector<8x32xf32>
      %c0_65 = arith.constant 0 : index
      %c0_66 = arith.constant 0 : index
      %139 = vector.load %arg9[%c0_65, %c0_66] : memref<1x32xf32, #tpu.memory_space<vmem>>, vector<1x32xf32>
      %c0_67 = arith.constant 0 : index
      %c0_68 = arith.constant 0 : index
      %140 = vector.load %arg10[%c0_67, %c0_68] : memref<1x32xf32, #tpu.memory_space<vmem>>, vector<1x32xf32>
      %cst_69 = arith.constant dense<0.000000e+00> : vector<8xf32>
      %141 = vector.multi_reduction <add>, %138, %cst_69 [1] : vector<8x32xf32> to vector<8xf32>
      %142 = vector.shape_cast %141 : vector<8xf32> to vector<8x1xf32>
      %cst_70 = arith.constant 3.200000e+01 : f32
      %143 = vector.broadcast %cst_70 : f32 to vector<8x1xf32>
      %144 = arith.divf %142, %143 : vector<8x1xf32>
      %145 = vector.broadcast %144 : vector<8x1xf32> to vector<8x32xf32>
      %146 = arith.subf %138, %145 : vector<8x32xf32>
      %147 = arith.mulf %146, %146 : vector<8x32xf32>
      %cst_71 = arith.constant dense<0.000000e+00> : vector<8xf32>
      %148 = vector.multi_reduction <add>, %147, %cst_71 [1] : vector<8x32xf32> to vector<8xf32>
      %149 = vector.shape_cast %148 : vector<8xf32> to vector<8x1xf32>
      %cst_72 = arith.constant 3.200000e+01 : f32
      %150 = vector.broadcast %cst_72 : f32 to vector<8x1xf32>
      %151 = arith.divf %149, %150 : vector<8x1xf32>
      %cst_73 = arith.constant 9.99999974E-6 : f32
      %152 = vector.broadcast %cst_73 : f32 to vector<8x1xf32>
      %153 = arith.addf %151, %152 : vector<8x1xf32>
      %154 = math.rsqrt %153 : vector<8x1xf32>
      %155 = vector.broadcast %154 : vector<8x1xf32> to vector<8x32xf32>
      %156 = arith.mulf %146, %155 : vector<8x32xf32>
      %157 = vector.broadcast %139 : vector<1x32xf32> to vector<8x32xf32>
      %158 = arith.mulf %156, %157 : vector<8x32xf32>
      %159 = vector.broadcast %140 : vector<1x32xf32> to vector<8x32xf32>
      %160 = arith.addf %158, %159 : vector<8x32xf32>
      %c0_74 = arith.constant 0 : index
      %c0_75 = arith.constant 0 : index
      %161 = vector.load %arg11[%c0_74, %c0_75] : memref<32x128xf32, #tpu.memory_space<vmem>>, vector<32x128xf32>
      %cst_76 = arith.constant dense<0.000000e+00> : vector<8x128xf32>
      %162 = tpu.matmul %160, %161, %cst_76 {dimension_numbers = #tpu.dot_dimension_numbers<[1], [0], [0], [1], [0, 0, 1, 1], [], []>} : vector<8x32xf32>, vector<32x128xf32>, vector<8x128xf32> -> vector<8x128xf32>
      %c0_77 = arith.constant 0 : index
      %c0_78 = arith.constant 0 : index
      %163 = vector.load %arg12[%c0_77, %c0_78] : memref<1x128xf32, #tpu.memory_space<vmem>>, vector<1x128xf32>
      %164 = vector.broadcast %163 : vector<1x128xf32> to vector<8x128xf32>
      %165 = arith.addf %162, %164 : vector<8x128xf32>
      %cst_79 = arith.constant 0.000000e+00 : f32
      %166 = vector.broadcast %cst_79 : f32 to vector<8x128xf32>
      %167 = arith.maximumf %165, %166 : vector<8x128xf32>
      %c0_80 = arith.constant 0 : index
      %c0_81 = arith.constant 0 : index
      %168 = vector.load %arg13[%c0_80, %c0_81] : memref<128x32xf32, #tpu.memory_space<vmem>>, vector<128x32xf32>
      %cst_82 = arith.constant dense<0.000000e+00> : vector<8x32xf32>
      %169 = tpu.matmul %167, %168, %cst_82 {dimension_numbers = #tpu.dot_dimension_numbers<[1], [0], [0], [1], [0, 0, 1, 1], [], []>} : vector<8x128xf32>, vector<128x32xf32>, vector<8x32xf32> -> vector<8x32xf32>
      %c0_83 = arith.constant 0 : index
      %c0_84 = arith.constant 0 : index
      %170 = vector.load %arg14[%c0_83, %c0_84] : memref<1x32xf32, #tpu.memory_space<vmem>>, vector<1x32xf32>
      %171 = vector.broadcast %170 : vector<1x32xf32> to vector<8x32xf32>
      %172 = arith.addf %169, %171 : vector<8x32xf32>
      %173 = arith.addf %138, %172 : vector<8x32xf32>
      %c0_85 = arith.constant 0 : index
      %c0_86 = arith.constant 0 : index
      %174 = vector.load %arg15[%c0_85, %c0_86] : memref<1x32xf32, #tpu.memory_space<vmem>>, vector<1x32xf32>
      %c0_87 = arith.constant 0 : index
      %c0_88 = arith.constant 0 : index
      %175 = vector.load %arg16[%c0_87, %c0_88] : memref<1x32xf32, #tpu.memory_space<vmem>>, vector<1x32xf32>
      %cst_89 = arith.constant dense<0.000000e+00> : vector<8xf32>
      %176 = vector.multi_reduction <add>, %173, %cst_89 [1] : vector<8x32xf32> to vector<8xf32>
      %177 = vector.shape_cast %176 : vector<8xf32> to vector<8x1xf32>
      %cst_90 = arith.constant 3.200000e+01 : f32
      %178 = vector.broadcast %cst_90 : f32 to vector<8x1xf32>
      %179 = arith.divf %177, %178 : vector<8x1xf32>
      %180 = vector.broadcast %179 : vector<8x1xf32> to vector<8x32xf32>
      %181 = arith.subf %173, %180 : vector<8x32xf32>
      %182 = arith.mulf %181, %181 : vector<8x32xf32>
      %cst_91 = arith.constant dense<0.000000e+00> : vector<8xf32>
      %183 = vector.multi_reduction <add>, %182, %cst_91 [1] : vector<8x32xf32> to vector<8xf32>
      %184 = vector.shape_cast %183 : vector<8xf32> to vector<8x1xf32>
      %cst_92 = arith.constant 3.200000e+01 : f32
      %185 = vector.broadcast %cst_92 : f32 to vector<8x1xf32>
      %186 = arith.divf %184, %185 : vector<8x1xf32>
      %cst_93 = arith.constant 9.99999974E-6 : f32
      %187 = vector.broadcast %cst_93 : f32 to vector<8x1xf32>
      %188 = arith.addf %186, %187 : vector<8x1xf32>
      %189 = math.rsqrt %188 : vector<8x1xf32>
      %190 = vector.broadcast %189 : vector<8x1xf32> to vector<8x32xf32>
      %191 = arith.mulf %181, %190 : vector<8x32xf32>
      %192 = vector.broadcast %174 : vector<1x32xf32> to vector<8x32xf32>
      %193 = arith.mulf %191, %192 : vector<8x32xf32>
      %194 = vector.broadcast %175 : vector<1x32xf32> to vector<8x32xf32>
      %195 = arith.addf %193, %194 : vector<8x32xf32>
      %c0_94 = arith.constant 0 : index
      %c0_95 = arith.constant 0 : index
      %196 = vector.load %arg17[%c0_94, %c0_95] : memref<32x4xf32, #tpu.memory_space<vmem>>, vector<32x4xf32>
      %cst_96 = arith.constant dense<0.000000e+00> : vector<8x4xf32>
      %197 = tpu.matmul %195, %196, %cst_96 {dimension_numbers = #tpu.dot_dimension_numbers<[1], [0], [0], [1], [0, 0, 1, 1], [], []>} : vector<8x32xf32>, vector<32x4xf32>, vector<8x4xf32> -> vector<8x4xf32>
      %c0_97 = arith.constant 0 : index
      %c0_98 = arith.constant 0 : index
      %198 = vector.load %arg18[%c0_97, %c0_98] : memref<1x4xf32, #tpu.memory_space<vmem>>, vector<1x4xf32>
      %199 = vector.broadcast %198 : vector<1x4xf32> to vector<8x4xf32>
      %200 = arith.addf %197, %199 : vector<8x4xf32>
      %cst_99 = arith.constant dense<0xFF800000> : vector<8xf32>
      %201 = vector.multi_reduction <maximumf>, %200, %cst_99 [1] : vector<8x4xf32> to vector<8xf32>
      %202 = vector.shape_cast %201 : vector<8xf32> to vector<8x1xf32>
      %203 = tpu.iota {dimensions = array<i32: 1>} : vector<8x4xi32>
      %204 = vector.broadcast %202 : vector<8x1xf32> to vector<8x4xf32>
      %205 = arith.cmpf oge, %200, %204 : vector<8x4xf32>
      %c4_i32 = arith.constant 4 : i32
      %206 = vector.broadcast %c4_i32 : i32 to vector<8x4xi32>
      %207 = arith.select %205, %203, %206 : vector<8x4xi1>, vector<8x4xi32>
      %cst_100 = arith.constant dense<2147483647> : vector<8xi32>
      %208 = vector.multi_reduction <minsi>, %207, %cst_100 [1] : vector<8x4xi32> to vector<8xi32>
      %209 = vector.shape_cast %208 : vector<8xi32> to vector<8x1xi32>
      %c0_101 = arith.constant 0 : index
      %c0_102 = arith.constant 0 : index
      %210 = vector.load %arg24[%c0_101, %c0_102] : memref<8x32xf32, #tpu.memory_space<vmem>>, vector<8x32xf32>
      tpu.vector_store %arg24[%c0_101, %c0_102], %173 {strides = array<i32>} : memref<8x32xf32, #tpu.memory_space<vmem>>, vector<8x32xf32>,
      %c0_103 = arith.constant 0 : index
      %c0_104 = arith.constant 0 : index
      %211 = vector.load %arg25[%c0_103, %c0_104] : memref<8x32xf32, #tpu.memory_space<vmem>>, vector<8x32xf32>
      tpu.vector_store %arg25[%c0_103, %c0_104], %195 {strides = array<i32>} : memref<8x32xf32, #tpu.memory_space<vmem>>, vector<8x32xf32>,
      %c0_105 = arith.constant 0 : index
      %c0_106 = arith.constant 0 : index
      %212 = vector.load %arg26[%c0_105, %c0_106] : memref<8x1xi32, #tpu.memory_space<vmem>>, vector<8x1xi32>
      tpu.vector_store %arg26[%c0_105, %c0_106], %209 {strides = array<i32>} : memref<8x1xi32, #tpu.memory_space<vmem>>, vector<8x1xi32>,
    } else {
    }
    %c0 = arith.constant 0 : index
    %c0_1 = arith.constant 0 : index
    %3 = vector.load %arg25[%c0, %c0_1] : memref<8x32xf32, #tpu.memory_space<vmem>>, vector<8x32xf32>
    %c0_2 = arith.constant 0 : index
    %c0_3 = arith.constant 0 : index
    %c0_4 = arith.constant 0 : index
    %4 = vector.load %arg19[%c0_2, %c0_3, %c0_4] : memref<1x32x128xf32, #tpu.memory_space<vmem>>, vector<1x32x128xf32>
    %5 = vector.shape_cast %4 : vector<1x32x128xf32> to vector<32x128xf32>
    %cst = arith.constant dense<0.000000e+00> : vector<8x128xf32>
    %6 = tpu.matmul %3, %5, %cst {dimension_numbers = #tpu.dot_dimension_numbers<[1], [0], [0], [1], [0, 0, 1, 1], [], []>} : vector<8x32xf32>, vector<32x128xf32>, vector<8x128xf32> -> vector<8x128xf32>
    %c0_5 = arith.constant 0 : index
    %c0_6 = arith.constant 0 : index
    %c0_7 = arith.constant 0 : index
    %7 = vector.load %arg20[%c0_5, %c0_6, %c0_7] : memref<1x1x128xf32, #tpu.memory_space<vmem>>, vector<1x1x128xf32>
    %8 = vector.shape_cast %7 : vector<1x1x128xf32> to vector<1x128xf32>
    %9 = vector.broadcast %8 : vector<1x128xf32> to vector<8x128xf32>
    %10 = arith.addf %6, %9 : vector<8x128xf32>
    %cst_8 = arith.constant 0.000000e+00 : f32
    %11 = vector.broadcast %cst_8 : f32 to vector<8x128xf32>
    %12 = arith.maximumf %10, %11 : vector<8x128xf32>
    %c0_9 = arith.constant 0 : index
    %c0_10 = arith.constant 0 : index
    %c0_11 = arith.constant 0 : index
    %13 = vector.load %arg21[%c0_9, %c0_10, %c0_11] : memref<1x128x32xf32, #tpu.memory_space<vmem>>, vector<1x128x32xf32>
    %14 = vector.shape_cast %13 : vector<1x128x32xf32> to vector<128x32xf32>
    %cst_12 = arith.constant dense<0.000000e+00> : vector<8x32xf32>
    %15 = tpu.matmul %12, %14, %cst_12 {dimension_numbers = #tpu.dot_dimension_numbers<[1], [0], [0], [1], [0, 0, 1, 1], [], []>} : vector<8x128xf32>, vector<128x32xf32>, vector<8x32xf32> -> vector<8x32xf32>
    %c0_13 = arith.constant 0 : index
    %c0_14 = arith.constant 0 : index
    %c0_15 = arith.constant 0 : index
    %16 = vector.load %arg22[%c0_13, %c0_14, %c0_15] : memref<1x1x32xf32, #tpu.memory_space<vmem>>, vector<1x1x32xf32>
    %17 = vector.shape_cast %16 : vector<1x1x32xf32> to vector<1x32xf32>
    %18 = vector.broadcast %17 : vector<1x32xf32> to vector<8x32xf32>
    %19 = arith.addf %15, %18 : vector<8x32xf32>
    %c0_16 = arith.constant 0 : index
    %c0_17 = arith.constant 0 : index
    %20 = vector.load %arg26[%c0_16, %c0_17] : memref<8x1xi32, #tpu.memory_space<vmem>>, vector<8x1xi32>
    %21 = vector.broadcast %arg1 : i32 to vector<8x1xi32>
    %22 = arith.cmpi eq, %20, %21 : vector<8x1xi32>
    %23 = arith.extui %22 : vector<8x1xi1> to vector<8x1xi32>
    %24 = arith.sitofp %23 : vector<8x1xi32> to vector<8x1xf32>
    %c0_18 = arith.constant 0 : index
    %c0_19 = arith.constant 0 : index
    %25 = vector.load %arg24[%c0_18, %c0_19] : memref<8x32xf32, #tpu.memory_space<vmem>>, vector<8x32xf32>
    %26 = vector.broadcast %24 : vector<8x1xf32> to vector<8x32xf32>
    %27 = arith.mulf %26, %19 : vector<8x32xf32>
    %28 = arith.addf %25, %27 : vector<8x32xf32>
    %c0_20 = arith.constant 0 : index
    %c0_21 = arith.constant 0 : index
    %29 = vector.load %arg24[%c0_20, %c0_21] : memref<8x32xf32, #tpu.memory_space<vmem>>, vector<8x32xf32>
    tpu.vector_store %arg24[%c0_20, %c0_21], %28 {strides = array<i32>} : memref<8x32xf32, #tpu.memory_space<vmem>>, vector<8x32xf32>,
    %c3_i32 = arith.constant 3 : i32
    %30 = arith.cmpi eq, %arg1, %c3_i32 : i32
    %31 = arith.extui %30 : i1 to i32
    %c0_i32_22 = arith.constant 0 : i32
    %32 = arith.cmpi ne, %31, %c0_i32_22 : i32
    scf.if %32 {
      %c0_23 = arith.constant 0 : index
      %c0_24 = arith.constant 0 : index
      %33 = vector.load %arg24[%c0_23, %c0_24] : memref<8x32xf32, #tpu.memory_space<vmem>>, vector<8x32xf32>
      %c0_25 = arith.constant 0 : index
      %c0_26 = arith.constant 0 : index
      %c0_27 = arith.constant 0 : index
      %34 = vector.load %arg23[%c0_25, %c0_26, %c0_27] : memref<1x8x32xf32, #tpu.memory_space<vmem>>, vector<1x8x32xf32>
      %35 = vector.shape_cast %34 : vector<1x8x32xf32> to vector<8x32xf32>
      %36 = vector.shape_cast %33 : vector<8x32xf32> to vector<1x8x32xf32>
      tpu.vector_store %arg23[%c0_25, %c0_26, %c0_27], %36 {strides = array<i32>} : memref<1x8x32xf32, #tpu.memory_space<vmem>>, vector<1x8x32xf32>,
    } else {
    }
    return
  }
  func.func @transform_0(%arg0: i32, %arg1: i32) -> (i32, i32, i32) {
    %c0_i32 = arith.constant 0 : i32
    %c0_i32_0 = arith.constant 0 : i32
    %c0_i32_1 = arith.constant 0 : i32
    return %arg0, %c0_i32, %c0_i32_0 : i32, i32, i32
  }
  func.func @transform_1(%arg0: i32, %arg1: i32) -> (i32, i32) {
    %c0_i32 = arith.constant 0 : i32
    %c0_i32_0 = arith.constant 0 : i32
    %c0_i32_1 = arith.constant 0 : i32
    return %c0_i32, %c0_i32_0 : i32, i32
  }
  func.func @transform_2(%arg0: i32, %arg1: i32) -> (i32, i32) {
    %c0_i32 = arith.constant 0 : i32
    %c0_i32_0 = arith.constant 0 : i32
    %c0_i32_1 = arith.constant 0 : i32
    return %c0_i32, %c0_i32_0 : i32, i32
  }
  func.func @transform_3(%arg0: i32, %arg1: i32) -> (i32, i32) {
    %c0_i32 = arith.constant 0 : i32
    %c0_i32_0 = arith.constant 0 : i32
    %c0_i32_1 = arith.constant 0 : i32
    return %c0_i32, %c0_i32_0 : i32, i32
  }
  func.func @transform_4(%arg0: i32, %arg1: i32) -> (i32, i32) {
    %c0_i32 = arith.constant 0 : i32
    %c0_i32_0 = arith.constant 0 : i32
    %c0_i32_1 = arith.constant 0 : i32
    return %c0_i32, %c0_i32_0 : i32, i32
  }
  func.func @transform_5(%arg0: i32, %arg1: i32) -> (i32, i32) {
    %c0_i32 = arith.constant 0 : i32
    %c0_i32_0 = arith.constant 0 : i32
    %c0_i32_1 = arith.constant 0 : i32
    return %c0_i32, %c0_i32_0 : i32, i32
  }
  func.func @transform_6(%arg0: i32, %arg1: i32) -> (i32, i32) {
    %c0_i32 = arith.constant 0 : i32
    %c0_i32_0 = arith.constant 0 : i32
    %c0_i32_1 = arith.constant 0 : i32
    return %c0_i32, %c0_i32_0 : i32, i32
  }
  func.func @transform_7(%arg0: i32, %arg1: i32) -> (i32, i32) {
    %c0_i32 = arith.constant 0 : i32
    %c0_i32_0 = arith.constant 0 : i32
    %c0_i32_1 = arith.constant 0 : i32
    return %c0_i32, %c0_i32_0 : i32, i32
  }
  func.func @transform_8(%arg0: i32, %arg1: i32) -> (i32, i32) {
    %c0_i32 = arith.constant 0 : i32
    %c0_i32_0 = arith.constant 0 : i32
    %c0_i32_1 = arith.constant 0 : i32
    return %c0_i32, %c0_i32_0 : i32, i32
  }
  func.func @transform_9(%arg0: i32, %arg1: i32) -> (i32, i32) {
    %c0_i32 = arith.constant 0 : i32
    %c0_i32_0 = arith.constant 0 : i32
    %c0_i32_1 = arith.constant 0 : i32
    return %c0_i32, %c0_i32_0 : i32, i32
  }
  func.func @transform_10(%arg0: i32, %arg1: i32) -> (i32, i32) {
    %c0_i32 = arith.constant 0 : i32
    %c0_i32_0 = arith.constant 0 : i32
    %c0_i32_1 = arith.constant 0 : i32
    return %c0_i32, %c0_i32_0 : i32, i32
  }
  func.func @transform_11(%arg0: i32, %arg1: i32) -> (i32, i32) {
    %c0_i32 = arith.constant 0 : i32
    %c0_i32_0 = arith.constant 0 : i32
    %c0_i32_1 = arith.constant 0 : i32
    return %c0_i32, %c0_i32_0 : i32, i32
  }
  func.func @transform_12(%arg0: i32, %arg1: i32) -> (i32, i32) {
    %c0_i32 = arith.constant 0 : i32
    %c0_i32_0 = arith.constant 0 : i32
    %c0_i32_1 = arith.constant 0 : i32
    return %c0_i32, %c0_i32_0 : i32, i32
  }
  func.func @transform_13(%arg0: i32, %arg1: i32) -> (i32, i32) {
    %c0_i32 = arith.constant 0 : i32
    %c0_i32_0 = arith.constant 0 : i32
    %c0_i32_1 = arith.constant 0 : i32
    return %c0_i32, %c0_i32_0 : i32, i32
  }
  func.func @transform_14(%arg0: i32, %arg1: i32) -> (i32, i32) {
    %c0_i32 = arith.constant 0 : i32
    %c0_i32_0 = arith.constant 0 : i32
    %c0_i32_1 = arith.constant 0 : i32
    return %c0_i32, %c0_i32_0 : i32, i32
  }
  func.func @transform_15(%arg0: i32, %arg1: i32) -> (i32, i32) {
    %c0_i32 = arith.constant 0 : i32
    %c0_i32_0 = arith.constant 0 : i32
    %c0_i32_1 = arith.constant 0 : i32
    return %c0_i32, %c0_i32_0 : i32, i32
  }
  func.func @transform_16(%arg0: i32, %arg1: i32) -> (i32, i32) {
    %c0_i32 = arith.constant 0 : i32
    %c0_i32_0 = arith.constant 0 : i32
    %c0_i32_1 = arith.constant 0 : i32
    return %c0_i32, %c0_i32_0 : i32, i32
  }
  func.func @transform_17(%arg0: i32, %arg1: i32) -> (i32, i32, i32) {
    %c0_i32 = arith.constant 0 : i32
    %c0_i32_0 = arith.constant 0 : i32
    %c0_i32_1 = arith.constant 0 : i32
    return %arg1, %c0_i32, %c0_i32_0 : i32, i32, i32
  }
  func.func @transform_18(%arg0: i32, %arg1: i32) -> (i32, i32, i32) {
    %c0_i32 = arith.constant 0 : i32
    %c0_i32_0 = arith.constant 0 : i32
    %c0_i32_1 = arith.constant 0 : i32
    return %arg1, %c0_i32, %c0_i32_0 : i32, i32, i32
  }
  func.func @transform_19(%arg0: i32, %arg1: i32) -> (i32, i32, i32) {
    %c0_i32 = arith.constant 0 : i32
    %c0_i32_0 = arith.constant 0 : i32
    %c0_i32_1 = arith.constant 0 : i32
    return %arg1, %c0_i32, %c0_i32_0 : i32, i32, i32
  }
  func.func @transform_20(%arg0: i32, %arg1: i32) -> (i32, i32, i32) {
    %c0_i32 = arith.constant 0 : i32
    %c0_i32_0 = arith.constant 0 : i32
    %c0_i32_1 = arith.constant 0 : i32
    return %arg1, %c0_i32, %c0_i32_0 : i32, i32, i32
  }
  func.func @transform_21(%arg0: i32, %arg1: i32) -> (i32, i32, i32) {
    %c0_i32 = arith.constant 0 : i32
    %c0_i32_0 = arith.constant 0 : i32
    %c0_i32_1 = arith.constant 0 : i32
    return %arg0, %c0_i32, %c0_i32_0 : i32, i32, i32
  }
}

module attributes {stable_mosaic.version = 11 : i64} {
  func.func @_block_kernel(%arg0: i32, %arg1: i32, %arg2: memref<1x8x32xf32, #tpu.memory_space<vmem>>, %arg3: memref<8x8xf32, #tpu.memory_space<vmem>>, %arg4: memref<1x32xf32, #tpu.memory_space<vmem>>, %arg5: memref<1x32xf32, #tpu.memory_space<vmem>>, %arg6: memref<32x96xf32, #tpu.memory_space<vmem>>, %arg7: memref<32x32xf32, #tpu.memory_space<vmem>>, %arg8: memref<1x32xf32, #tpu.memory_space<vmem>>, %arg9: memref<1x32xf32, #tpu.memory_space<vmem>>, %arg10: memref<1x32xf32, #tpu.memory_space<vmem>>, %arg11: memref<32x128xf32, #tpu.memory_space<vmem>>, %arg12: memref<1x128xf32, #tpu.memory_space<vmem>>, %arg13: memref<128x32xf32, #tpu.memory_space<vmem>>, %arg14: memref<1x32xf32, #tpu.memory_space<vmem>>, %arg15: memref<1x32xf32, #tpu.memory_space<vmem>>, %arg16: memref<1x32xf32, #tpu.memory_space<vmem>>, %arg17: memref<32x4xf32, #tpu.memory_space<vmem>>, %arg18: memref<1x4xf32, #tpu.memory_space<vmem>>, %arg19: memref<1x32x128xf32, #tpu.memory_space<vmem>>, %arg20: memref<1x1x128xf32, #tpu.memory_space<vmem>>, %arg21: memref<1x128x32xf32, #tpu.memory_space<vmem>>, %arg22: memref<1x1x32xf32, #tpu.memory_space<vmem>>, %arg23: memref<1x8x32xf32, #tpu.memory_space<vmem>>, %arg24: memref<8x32xf32, #tpu.memory_space<vmem>>, %arg25: memref<8x32xf32, #tpu.memory_space<vmem>>, %arg26: memref<8x1xi32, #tpu.memory_space<vmem>>) attributes {dimension_semantics = [#tpu.dimension_semantics<parallel>, #tpu.dimension_semantics<arbitrary>], iteration_bounds = array<i64: 2, 4>, scalar_prefetch = 0 : i64, scratch_operands = 3 : i64, tpu.core_type = #tpu.core_type<tc>, window_params = [{transform_indices = @transform_0, window_bounds = array<i64: 1, 8, 32>}, {pipeline_mode = #tpu.pipeline_mode<synchronous>, transform_indices = @transform_1, window_bounds = array<i64: 8, 8>}, {pipeline_mode = #tpu.pipeline_mode<synchronous>, transform_indices = @transform_2, window_bounds = array<i64: 1, 32>}, {pipeline_mode = #tpu.pipeline_mode<synchronous>, transform_indices = @transform_3, window_bounds = array<i64: 1, 32>}, {pipeline_mode = #tpu.pipeline_mode<synchronous>, transform_indices = @transform_4, window_bounds = array<i64: 32, 96>}, {pipeline_mode = #tpu.pipeline_mode<synchronous>, transform_indices = @transform_5, window_bounds = array<i64: 32, 32>}, {pipeline_mode = #tpu.pipeline_mode<synchronous>, transform_indices = @transform_6, window_bounds = array<i64: 1, 32>}, {pipeline_mode = #tpu.pipeline_mode<synchronous>, transform_indices = @transform_7, window_bounds = array<i64: 1, 32>}, {pipeline_mode = #tpu.pipeline_mode<synchronous>, transform_indices = @transform_8, window_bounds = array<i64: 1, 32>}, {pipeline_mode = #tpu.pipeline_mode<synchronous>, transform_indices = @transform_9, window_bounds = array<i64: 32, 128>}, {pipeline_mode = #tpu.pipeline_mode<synchronous>, transform_indices = @transform_10, window_bounds = array<i64: 1, 128>}, {pipeline_mode = #tpu.pipeline_mode<synchronous>, transform_indices = @transform_11, window_bounds = array<i64: 128, 32>}, {pipeline_mode = #tpu.pipeline_mode<synchronous>, transform_indices = @transform_12, window_bounds = array<i64: 1, 32>}, {pipeline_mode = #tpu.pipeline_mode<synchronous>, transform_indices = @transform_13, window_bounds = array<i64: 1, 32>}, {pipeline_mode = #tpu.pipeline_mode<synchronous>, transform_indices = @transform_14, window_bounds = array<i64: 1, 32>}, {pipeline_mode = #tpu.pipeline_mode<synchronous>, transform_indices = @transform_15, window_bounds = array<i64: 32, 4>}, {pipeline_mode = #tpu.pipeline_mode<synchronous>, transform_indices = @transform_16, window_bounds = array<i64: 1, 4>}, {transform_indices = @transform_17, window_bounds = array<i64: 1, 32, 128>}, {transform_indices = @transform_18, window_bounds = array<i64: 1, 1, 128>}, {transform_indices = @transform_19, window_bounds = array<i64: 1, 128, 32>}, {transform_indices = @transform_20, window_bounds = array<i64: 1, 1, 32>}, {transform_indices = @transform_21, window_bounds = array<i64: 1, 8, 32>}]} {
    %c0_i32 = arith.constant 0 : i32
    %0 = arith.cmpi eq, %arg1, %c0_i32 : i32
    %1 = arith.extui %0 : i1 to i32
    %c0_i32_0 = arith.constant 0 : i32
    %2 = arith.cmpi ne, %1, %c0_i32_0 : i32
    scf.if %2 {
      %c0_23 = arith.constant 0 : index
      %c0_24 = arith.constant 0 : index
      %c0_25 = arith.constant 0 : index
      %33 = vector.load %arg2[%c0_23, %c0_24, %c0_25] : memref<1x8x32xf32, #tpu.memory_space<vmem>>, vector<1x8x32xf32>
      %34 = vector.shape_cast %33 : vector<1x8x32xf32> to vector<8x32xf32>
      %c0_26 = arith.constant 0 : index
      %c0_27 = arith.constant 0 : index
      %35 = vector.load %arg4[%c0_26, %c0_27] : memref<1x32xf32, #tpu.memory_space<vmem>>, vector<1x32xf32>
      %c0_28 = arith.constant 0 : index
      %c0_29 = arith.constant 0 : index
      %36 = vector.load %arg5[%c0_28, %c0_29] : memref<1x32xf32, #tpu.memory_space<vmem>>, vector<1x32xf32>
      %cst_30 = arith.constant dense<0.000000e+00> : vector<8xf32>
      %37 = vector.multi_reduction <add>, %34, %cst_30 [1] : vector<8x32xf32> to vector<8xf32>
      %38 = vector.shape_cast %37 : vector<8xf32> to vector<8x1xf32>
      %cst_31 = arith.constant 3.200000e+01 : f32
      %39 = vector.broadcast %cst_31 : f32 to vector<8x1xf32>
      %40 = arith.divf %38, %39 : vector<8x1xf32>
      %41 = vector.broadcast %40 : vector<8x1xf32> to vector<8x32xf32>
      %42 = arith.subf %34, %41 : vector<8x32xf32>
      %43 = arith.mulf %42, %42 : vector<8x32xf32>
      %cst_32 = arith.constant dense<0.000000e+00> : vector<8xf32>
      %44 = vector.multi_reduction <add>, %43, %cst_32 [1] : vector<8x32xf32> to vector<8xf32>
      %45 = vector.shape_cast %44 : vector<8xf32> to vector<8x1xf32>
      %cst_33 = arith.constant 3.200000e+01 : f32
      %46 = vector.broadcast %cst_33 : f32 to vector<8x1xf32>
      %47 = arith.divf %45, %46 : vector<8x1xf32>
      %cst_34 = arith.constant 9.99999974E-6 : f32
      %48 = vector.broadcast %cst_34 : f32 to vector<8x1xf32>
      %49 = arith.addf %47, %48 : vector<8x1xf32>
      %50 = math.rsqrt %49 : vector<8x1xf32>
      %51 = vector.broadcast %50 : vector<8x1xf32> to vector<8x32xf32>
      %52 = arith.mulf %42, %51 : vector<8x32xf32>
      %53 = vector.broadcast %35 : vector<1x32xf32> to vector<8x32xf32>
      %54 = arith.mulf %52, %53 : vector<8x32xf32>
      %55 = vector.broadcast %36 : vector<1x32xf32> to vector<8x32xf32>
      %56 = arith.addf %54, %55 : vector<8x32xf32>
      %c0_35 = arith.constant 0 : index
      %c0_36 = arith.constant 0 : index
      %57 = vector.load %arg6[%c0_35, %c0_36] : memref<32x96xf32, #tpu.memory_space<vmem>>, vector<32x96xf32>
      %cst_37 = arith.constant dense<0.000000e+00> : vector<8x96xf32>
      %58 = tpu.matmul %56, %57, %cst_37 {dimension_numbers = #tpu.dot_dimension_numbers<[1], [0], [0], [1], [0, 0, 1, 1], [], []>} : vector<8x32xf32>, vector<32x96xf32>, vector<8x96xf32> -> vector<8x96xf32>
      %c0_38 = arith.constant 0 : index
      %c0_39 = arith.constant 0 : index
      %59 = vector.load %arg3[%c0_38, %c0_39] : memref<8x8xf32, #tpu.memory_space<vmem>>, vector<8x8xf32>
      %60 = vector.extract_strided_slice %58 {offsets = [0, 0], sizes = [8, 8], strides = [1, 1]} : vector<8x96xf32> to vector<8x8xf32>
      %cst_40 = arith.constant 0.353553385 : f32
      %61 = vector.broadcast %cst_40 : f32 to vector<8x8xf32>
      %62 = arith.mulf %60, %61 : vector<8x8xf32>
      %63 = vector.extract_strided_slice %58 {offsets = [0, 32], sizes = [8, 8], strides = [1, 1]} : vector<8x96xf32> to vector<8x8xf32>
      %64 = vector.extract_strided_slice %58 {offsets = [0, 64], sizes = [8, 8], strides = [1, 1]} : vector<8x96xf32> to vector<8x8xf32>
      %cst_41 = arith.constant dense<0.000000e+00> : vector<8x8xf32>
      %65 = tpu.matmul %62, %63, %cst_41 {dimension_numbers = #tpu.dot_dimension_numbers<[1], [1], [0], [0], [0, 0, 1, 0], [], []>} : vector<8x8xf32>, vector<8x8xf32>, vector<8x8xf32> -> vector<8x8xf32>
      %66 = arith.addf %65, %59 : vector<8x8xf32>
      %cst_42 = arith.constant dense<0xFF800000> : vector<8xf32>
      %67 = vector.multi_reduction <maximumf>, %66, %cst_42 [1] : vector<8x8xf32> to vector<8xf32>
      %68 = vector.shape_cast %67 : vector<8xf32> to vector<8x1xf32>
      %69 = vector.broadcast %68 : vector<8x1xf32> to vector<8x8xf32>
      %70 = arith.subf %66, %69 : vector<8x8xf32>
      %71 = math.exp %70 : vector<8x8xf32>
      %cst_43 = arith.constant dense<0.000000e+00> : vector<8xf32>
      %72 = vector.multi_reduction <add>, %71, %cst_43 [1] : vector<8x8xf32> to vector<8xf32>
      %73 = vector.shape_cast %72 : vector<8xf32> to vector<8x1xf32>
      %cst_44 = arith.constant dense<0.000000e+00> : vector<8x8xf32>
      %74 = tpu.matmul %71, %64, %cst_44 {dimension_numbers = #tpu.dot_dimension_numbers<[1], [0], [0], [1], [0, 0, 1, 1], [], []>} : vector<8x8xf32>, vector<8x8xf32>, vector<8x8xf32> -> vector<8x8xf32>
      %75 = tpu.reciprocal %73 : vector<8x1xf32> -> vector<8x1xf32>
      %76 = vector.broadcast %75 : vector<8x1xf32> to vector<8x8xf32>
      %77 = arith.mulf %74, %76 : vector<8x8xf32>
      %78 = vector.extract_strided_slice %58 {offsets = [0, 8], sizes = [8, 8], strides = [1, 1]} : vector<8x96xf32> to vector<8x8xf32>
      %cst_45 = arith.constant 0.353553385 : f32
      %79 = vector.broadcast %cst_45 : f32 to vector<8x8xf32>
      %80 = arith.mulf %78, %79 : vector<8x8xf32>
      %81 = vector.extract_strided_slice %58 {offsets = [0, 40], sizes = [8, 8], strides = [1, 1]} : vector<8x96xf32> to vector<8x8xf32>
      %82 = vector.extract_strided_slice %58 {offsets = [0, 72], sizes = [8, 8], strides = [1, 1]} : vector<8x96xf32> to vector<8x8xf32>
      %cst_46 = arith.constant dense<0.000000e+00> : vector<8x8xf32>
      %83 = tpu.matmul %80, %81, %cst_46 {dimension_numbers = #tpu.dot_dimension_numbers<[1], [1], [0], [0], [0, 0, 1, 0], [], []>} : vector<8x8xf32>, vector<8x8xf32>, vector<8x8xf32> -> vector<8x8xf32>
      %84 = arith.addf %83, %59 : vector<8x8xf32>
      %cst_47 = arith.constant dense<0xFF800000> : vector<8xf32>
      %85 = vector.multi_reduction <maximumf>, %84, %cst_47 [1] : vector<8x8xf32> to vector<8xf32>
      %86 = vector.shape_cast %85 : vector<8xf32> to vector<8x1xf32>
      %87 = vector.broadcast %86 : vector<8x1xf32> to vector<8x8xf32>
      %88 = arith.subf %84, %87 : vector<8x8xf32>
      %89 = math.exp %88 : vector<8x8xf32>
      %cst_48 = arith.constant dense<0.000000e+00> : vector<8xf32>
      %90 = vector.multi_reduction <add>, %89, %cst_48 [1] : vector<8x8xf32> to vector<8xf32>
      %91 = vector.shape_cast %90 : vector<8xf32> to vector<8x1xf32>
      %cst_49 = arith.constant dense<0.000000e+00> : vector<8x8xf32>
      %92 = tpu.matmul %89, %82, %cst_49 {dimension_numbers = #tpu.dot_dimension_numbers<[1], [0], [0], [1], [0, 0, 1, 1], [], []>} : vector<8x8xf32>, vector<8x8xf32>, vector<8x8xf32> -> vector<8x8xf32>
      %93 = tpu.reciprocal %91 : vector<8x1xf32> -> vector<8x1xf32>
      %94 = vector.broadcast %93 : vector<8x1xf32> to vector<8x8xf32>
      %95 = arith.mulf %92, %94 : vector<8x8xf32>
      %96 = vector.extract_strided_slice %58 {offsets = [0, 16], sizes = [8, 8], strides = [1, 1]} : vector<8x96xf32> to vector<8x8xf32>
      %cst_50 = arith.constant 0.353553385 : f32
      %97 = vector.broadcast %cst_50 : f32 to vector<8x8xf32>
      %98 = arith.mulf %96, %97 : vector<8x8xf32>
      %99 = vector.extract_strided_slice %58 {offsets = [0, 48], sizes = [8, 8], strides = [1, 1]} : vector<8x96xf32> to vector<8x8xf32>
      %100 = vector.extract_strided_slice %58 {offsets = [0, 80], sizes = [8, 8], strides = [1, 1]} : vector<8x96xf32> to vector<8x8xf32>
      %cst_51 = arith.constant dense<0.000000e+00> : vector<8x8xf32>
      %101 = tpu.matmul %98, %99, %cst_51 {dimension_numbers = #tpu.dot_dimension_numbers<[1], [1], [0], [0], [0, 0, 1, 0], [], []>} : vector<8x8xf32>, vector<8x8xf32>, vector<8x8xf32> -> vector<8x8xf32>
      %102 = arith.addf %101, %59 : vector<8x8xf32>
      %cst_52 = arith.constant dense<0xFF800000> : vector<8xf32>
      %103 = vector.multi_reduction <maximumf>, %102, %cst_52 [1] : vector<8x8xf32> to vector<8xf32>
      %104 = vector.shape_cast %103 : vector<8xf32> to vector<8x1xf32>
      %105 = vector.broadcast %104 : vector<8x1xf32> to vector<8x8xf32>
      %106 = arith.subf %102, %105 : vector<8x8xf32>
      %107 = math.exp %106 : vector<8x8xf32>
      %cst_53 = arith.constant dense<0.000000e+00> : vector<8xf32>
      %108 = vector.multi_reduction <add>, %107, %cst_53 [1] : vector<8x8xf32> to vector<8xf32>
      %109 = vector.shape_cast %108 : vector<8xf32> to vector<8x1xf32>
      %cst_54 = arith.constant dense<0.000000e+00> : vector<8x8xf32>
      %110 = tpu.matmul %107, %100, %cst_54 {dimension_numbers = #tpu.dot_dimension_numbers<[1], [0], [0], [1], [0, 0, 1, 1], [], []>} : vector<8x8xf32>, vector<8x8xf32>, vector<8x8xf32> -> vector<8x8xf32>
      %111 = tpu.reciprocal %109 : vector<8x1xf32> -> vector<8x1xf32>
      %112 = vector.broadcast %111 : vector<8x1xf32> to vector<8x8xf32>
      %113 = arith.mulf %110, %112 : vector<8x8xf32>
      %114 = vector.extract_strided_slice %58 {offsets = [0, 24], sizes = [8, 8], strides = [1, 1]} : vector<8x96xf32> to vector<8x8xf32>
      %cst_55 = arith.constant 0.353553385 : f32
      %115 = vector.broadcast %cst_55 : f32 to vector<8x8xf32>
      %116 = arith.mulf %114, %115 : vector<8x8xf32>
      %117 = vector.extract_strided_slice %58 {offsets = [0, 56], sizes = [8, 8], strides = [1, 1]} : vector<8x96xf32> to vector<8x8xf32>
      %118 = vector.extract_strided_slice %58 {offsets = [0, 88], sizes = [8, 8], strides = [1, 1]} : vector<8x96xf32> to vector<8x8xf32>
      %cst_56 = arith.constant dense<0.000000e+00> : vector<8x8xf32>
      %119 = tpu.matmul %116, %117, %cst_56 {dimension_numbers = #tpu.dot_dimension_numbers<[1], [1], [0], [0], [0, 0, 1, 0], [], []>} : vector<8x8xf32>, vector<8x8xf32>, vector<8x8xf32> -> vector<8x8xf32>
      %120 = arith.addf %119, %59 : vector<8x8xf32>
      %cst_57 = arith.constant dense<0xFF800000> : vector<8xf32>
      %121 = vector.multi_reduction <maximumf>, %120, %cst_57 [1] : vector<8x8xf32> to vector<8xf32>
      %122 = vector.shape_cast %121 : vector<8xf32> to vector<8x1xf32>
      %123 = vector.broadcast %122 : vector<8x1xf32> to vector<8x8xf32>
      %124 = arith.subf %120, %123 : vector<8x8xf32>
      %125 = math.exp %124 : vector<8x8xf32>
      %cst_58 = arith.constant dense<0.000000e+00> : vector<8xf32>
      %126 = vector.multi_reduction <add>, %125, %cst_58 [1] : vector<8x8xf32> to vector<8xf32>
      %127 = vector.shape_cast %126 : vector<8xf32> to vector<8x1xf32>
      %cst_59 = arith.constant dense<0.000000e+00> : vector<8x8xf32>
      %128 = tpu.matmul %125, %118, %cst_59 {dimension_numbers = #tpu.dot_dimension_numbers<[1], [0], [0], [1], [0, 0, 1, 1], [], []>} : vector<8x8xf32>, vector<8x8xf32>, vector<8x8xf32> -> vector<8x8xf32>
      %129 = tpu.reciprocal %127 : vector<8x1xf32> -> vector<8x1xf32>
      %130 = vector.broadcast %129 : vector<8x1xf32> to vector<8x8xf32>
      %131 = arith.mulf %128, %130 : vector<8x8xf32>
      %132 = tpu.concatenate %77, %95, %113, %131 in 1 : vector<8x8xf32>, vector<8x8xf32>, vector<8x8xf32>, vector<8x8xf32> -> vector<8x32xf32>
      %c0_60 = arith.constant 0 : index
      %c0_61 = arith.constant 0 : index
      %133 = vector.load %arg7[%c0_60, %c0_61] : memref<32x32xf32, #tpu.memory_space<vmem>>, vector<32x32xf32>
      %cst_62 = arith.constant dense<0.000000e+00> : vector<8x32xf32>
      %134 = tpu.matmul %132, %133, %cst_62 {dimension_numbers = #tpu.dot_dimension_numbers<[1], [0], [0], [1], [0, 0, 1, 1], [], []>} : vector<8x32xf32>, vector<32x32xf32>, vector<8x32xf32> -> vector<8x32xf32>
      %c0_63 = arith.constant 0 : index
      %c0_64 = arith.constant 0 : index
      %135 = vector.load %arg8[%c0_63, %c0_64] : memref<1x32xf32, #tpu.memory_space<vmem>>, vector<1x32xf32>
      %136 = vector.broadcast %135 : vector<1x32xf32> to vector<8x32xf32>
      %137 = arith.addf %134, %136 : vector<8x32xf32>
      %138 = arith.addf %34, %137 : vector<8x32xf32>
      %c0_65 = arith.constant 0 : index
      %c0_66 = arith.constant 0 : index
      %139 = vector.load %arg9[%c0_65, %c0_66] : memref<1x32xf32, #tpu.memory_space<vmem>>, vector<1x32xf32>
      %c0_67 = arith.constant 0 : index
      %c0_68 = arith.constant 0 : index
      %140 = vector.load %arg10[%c0_67, %c0_68] : memref<1x32xf32, #tpu.memory_space<vmem>>, vector<1x32xf32>
      %cst_69 = arith.constant dense<0.000000e+00> : vector<8xf32>
      %141 = vector.multi_reduction <add>, %138, %cst_69 [1] : vector<8x32xf32> to vector<8xf32>
      %142 = vector.shape_cast %141 : vector<8xf32> to vector<8x1xf32>
      %cst_70 = arith.constant 3.200000e+01 : f32
      %143 = vector.broadcast %cst_70 : f32 to vector<8x1xf32>
      %144 = arith.divf %142, %143 : vector<8x1xf32>
      %145 = vector.broadcast %144 : vector<8x1xf32> to vector<8x32xf32>
      %146 = arith.subf %138, %145 : vector<8x32xf32>
      %147 = arith.mulf %146, %146 : vector<8x32xf32>
      %cst_71 = arith.constant dense<0.000000e+00> : vector<8xf32>
      %148 = vector.multi_reduction <add>, %147, %cst_71 [1] : vector<8x32xf32> to vector<8xf32>
      %149 = vector.shape_cast %148 : vector<8xf32> to vector<8x1xf32>
      %cst_72 = arith.constant 3.200000e+01 : f32
      %150 = vector.broadcast %cst_72 : f32 to vector<8x1xf32>
      %151 = arith.divf %149, %150 : vector<8x1xf32>
      %cst_73 = arith.constant 9.99999974E-6 : f32
      %152 = vector.broadcast %cst_73 : f32 to vector<8x1xf32>
      %153 = arith.addf %151, %152 : vector<8x1xf32>
      %154 = math.rsqrt %153 : vector<8x1xf32>
      %155 = vector.broadcast %154 : vector<8x1xf32> to vector<8x32xf32>
      %156 = arith.mulf %146, %155 : vector<8x32xf32>
      %157 = vector.broadcast %139 : vector<1x32xf32> to vector<8x32xf32>
      %158 = arith.mulf %156, %157 : vector<8x32xf32>
      %159 = vector.broadcast %140 : vector<1x32xf32> to vector<8x32xf32>
      %160 = arith.addf %158, %159 : vector<8x32xf32>
      %c0_74 = arith.constant 0 : index
      %c0_75 = arith.constant 0 : index
      %161 = vector.load %arg11[%c0_74, %c0_75] : memref<32x128xf32, #tpu.memory_space<vmem>>, vector<32x128xf32>
      %cst_76 = arith.constant dense<0.000000e+00> : vector<8x128xf32>
      %162 = tpu.matmul %160, %161, %cst_76 {dimension_numbers = #tpu.dot_dimension_numbers<[1], [0], [0], [1], [0, 0, 1, 1], [], []>} : vector<8x32xf32>, vector<32x128xf32>, vector<8x128xf32> -> vector<8x128xf32>
      %c0_77 = arith.constant 0 : index
      %c0_78 = arith.constant 0 : index
      %163 = vector.load %arg12[%c0_77, %c0_78] : memref<1x128xf32, #tpu.memory_space<vmem>>, vector<1x128xf32>
      %164 = vector.broadcast %163 : vector<1x128xf32> to vector<8x128xf32>
      %165 = arith.addf %162, %164 : vector<8x128xf32>
      %cst_79 = arith.constant 0.000000e+00 : f32
      %166 = vector.broadcast %cst_79 : f32 to vector<8x128xf32>
      %167 = arith.maximumf %165, %166 : vector<8x128xf32>
      %c0_80 = arith.constant 0 : index
      %c0_81 = arith.constant 0 : index
      %168 = vector.load %arg13[%c0_80, %c0_81] : memref<128x32xf32, #tpu.memory_space<vmem>>, vector<128x32xf32>
      %cst_82 = arith.constant dense<0.000000e+00> : vector<8x32xf32>
      %169 = tpu.matmul %167, %168, %cst_82 {dimension_numbers = #tpu.dot_dimension_numbers<[1], [0], [0], [1], [0, 0, 1, 1], [], []>} : vector<8x128xf32>, vector<128x32xf32>, vector<8x32xf32> -> vector<8x32xf32>
      %c0_83 = arith.constant 0 : index
      %c0_84 = arith.constant 0 : index
      %170 = vector.load %arg14[%c0_83, %c0_84] : memref<1x32xf32, #tpu.memory_space<vmem>>, vector<1x32xf32>
      %171 = vector.broadcast %170 : vector<1x32xf32> to vector<8x32xf32>
      %172 = arith.addf %169, %171 : vector<8x32xf32>
      %173 = arith.addf %138, %172 : vector<8x32xf32>
      %c0_85 = arith.constant 0 : index
      %c0_86 = arith.constant 0 : index
      %174 = vector.load %arg15[%c0_85, %c0_86] : memref<1x32xf32, #tpu.memory_space<vmem>>, vector<1x32xf32>
      %c0_87 = arith.constant 0 : index
      %c0_88 = arith.constant 0 : index
      %175 = vector.load %arg16[%c0_87, %c0_88] : memref<1x32xf32, #tpu.memory_space<vmem>>, vector<1x32xf32>
      %cst_89 = arith.constant dense<0.000000e+00> : vector<8xf32>
      %176 = vector.multi_reduction <add>, %173, %cst_89 [1] : vector<8x32xf32> to vector<8xf32>
      %177 = vector.shape_cast %176 : vector<8xf32> to vector<8x1xf32>
      %cst_90 = arith.constant 3.200000e+01 : f32
      %178 = vector.broadcast %cst_90 : f32 to vector<8x1xf32>
      %179 = arith.divf %177, %178 : vector<8x1xf32>
      %180 = vector.broadcast %179 : vector<8x1xf32> to vector<8x32xf32>
      %181 = arith.subf %173, %180 : vector<8x32xf32>
      %182 = arith.mulf %181, %181 : vector<8x32xf32>
      %cst_91 = arith.constant dense<0.000000e+00> : vector<8xf32>
      %183 = vector.multi_reduction <add>, %182, %cst_91 [1] : vector<8x32xf32> to vector<8xf32>
      %184 = vector.shape_cast %183 : vector<8xf32> to vector<8x1xf32>
      %cst_92 = arith.constant 3.200000e+01 : f32
      %185 = vector.broadcast %cst_92 : f32 to vector<8x1xf32>
      %186 = arith.divf %184, %185 : vector<8x1xf32>
      %cst_93 = arith.constant 9.99999974E-6 : f32
      %187 = vector.broadcast %cst_93 : f32 to vector<8x1xf32>
      %188 = arith.addf %186, %187 : vector<8x1xf32>
      %189 = math.rsqrt %188 : vector<8x1xf32>
      %190 = vector.broadcast %189 : vector<8x1xf32> to vector<8x32xf32>
      %191 = arith.mulf %181, %190 : vector<8x32xf32>
      %192 = vector.broadcast %174 : vector<1x32xf32> to vector<8x32xf32>
      %193 = arith.mulf %191, %192 : vector<8x32xf32>
      %194 = vector.broadcast %175 : vector<1x32xf32> to vector<8x32xf32>
      %195 = arith.addf %193, %194 : vector<8x32xf32>
      %c0_94 = arith.constant 0 : index
      %c0_95 = arith.constant 0 : index
      %196 = vector.load %arg17[%c0_94, %c0_95] : memref<32x4xf32, #tpu.memory_space<vmem>>, vector<32x4xf32>
      %cst_96 = arith.constant dense<0.000000e+00> : vector<8x4xf32>
      %197 = tpu.matmul %195, %196, %cst_96 {dimension_numbers = #tpu.dot_dimension_numbers<[1], [0], [0], [1], [0, 0, 1, 1], [], []>} : vector<8x32xf32>, vector<32x4xf32>, vector<8x4xf32> -> vector<8x4xf32>
      %c0_97 = arith.constant 0 : index
      %c0_98 = arith.constant 0 : index
      %198 = vector.load %arg18[%c0_97, %c0_98] : memref<1x4xf32, #tpu.memory_space<vmem>>, vector<1x4xf32>
      %199 = vector.broadcast %198 : vector<1x4xf32> to vector<8x4xf32>
      %200 = arith.addf %197, %199 : vector<8x4xf32>
      %cst_99 = arith.constant dense<0xFF800000> : vector<8xf32>
      %201 = vector.multi_reduction <maximumf>, %200, %cst_99 [1] : vector<8x4xf32> to vector<8xf32>
      %202 = vector.shape_cast %201 : vector<8xf32> to vector<8x1xf32>
      %203 = tpu.iota {dimensions = array<i32: 1>} : vector<8x4xi32>
      %204 = vector.broadcast %202 : vector<8x1xf32> to vector<8x4xf32>
      %205 = arith.cmpf oge, %200, %204 : vector<8x4xf32>
      %c4_i32 = arith.constant 4 : i32
      %206 = vector.broadcast %c4_i32 : i32 to vector<8x4xi32>
      %207 = arith.select %205, %203, %206 : vector<8x4xi1>, vector<8x4xi32>
      %cst_100 = arith.constant dense<2147483647> : vector<8xi32>
      %208 = vector.multi_reduction <minsi>, %207, %cst_100 [1] : vector<8x4xi32> to vector<8xi32>
      %209 = vector.shape_cast %208 : vector<8xi32> to vector<8x1xi32>
      %c0_101 = arith.constant 0 : index
      %c0_102 = arith.constant 0 : index
      %210 = vector.load %arg24[%c0_101, %c0_102] : memref<8x32xf32, #tpu.memory_space<vmem>>, vector<8x32xf32>
      tpu.vector_store %arg24[%c0_101, %c0_102], %173 {strides = array<i32>} : memref<8x32xf32, #tpu.memory_space<vmem>>, vector<8x32xf32>,
      %c0_103 = arith.constant 0 : index
      %c0_104 = arith.constant 0 : index
      %211 = vector.load %arg25[%c0_103, %c0_104] : memref<8x32xf32, #tpu.memory_space<vmem>>, vector<8x32xf32>
      tpu.vector_store %arg25[%c0_103, %c0_104], %195 {strides = array<i32>} : memref<8x32xf32, #tpu.memory_space<vmem>>, vector<8x32xf32>,
      %c0_105 = arith.constant 0 : index
      %c0_106 = arith.constant 0 : index
      %212 = vector.load %arg26[%c0_105, %c0_106] : memref<8x1xi32, #tpu.memory_space<vmem>>, vector<8x1xi32>
      tpu.vector_store %arg26[%c0_105, %c0_106], %209 {strides = array<i32>} : memref<8x1xi32, #tpu.memory_space<vmem>>, vector<8x1xi32>,
    } else {
    }
    %c0 = arith.constant 0 : index
    %c0_1 = arith.constant 0 : index
    %3 = vector.load %arg25[%c0, %c0_1] : memref<8x32xf32, #tpu.memory_space<vmem>>, vector<8x32xf32>
    %c0_2 = arith.constant 0 : index
    %c0_3 = arith.constant 0 : index
    %c0_4 = arith.constant 0 : index
    %4 = vector.load %arg19[%c0_2, %c0_3, %c0_4] : memref<1x32x128xf32, #tpu.memory_space<vmem>>, vector<1x32x128xf32>
    %5 = vector.shape_cast %4 : vector<1x32x128xf32> to vector<32x128xf32>
    %cst = arith.constant dense<0.000000e+00> : vector<8x128xf32>
    %6 = tpu.matmul %3, %5, %cst {dimension_numbers = #tpu.dot_dimension_numbers<[1], [0], [0], [1], [0, 0, 1, 1], [], []>} : vector<8x32xf32>, vector<32x128xf32>, vector<8x128xf32> -> vector<8x128xf32>
    %c0_5 = arith.constant 0 : index
    %c0_6 = arith.constant 0 : index
    %c0_7 = arith.constant 0 : index
    %7 = vector.load %arg20[%c0_5, %c0_6, %c0_7] : memref<1x1x128xf32, #tpu.memory_space<vmem>>, vector<1x1x128xf32>
    %8 = vector.shape_cast %7 : vector<1x1x128xf32> to vector<1x128xf32>
    %9 = vector.broadcast %8 : vector<1x128xf32> to vector<8x128xf32>
    %10 = arith.addf %6, %9 : vector<8x128xf32>
    %cst_8 = arith.constant 0.000000e+00 : f32
    %11 = vector.broadcast %cst_8 : f32 to vector<8x128xf32>
    %12 = arith.maximumf %10, %11 : vector<8x128xf32>
    %c0_9 = arith.constant 0 : index
    %c0_10 = arith.constant 0 : index
    %c0_11 = arith.constant 0 : index
    %13 = vector.load %arg21[%c0_9, %c0_10, %c0_11] : memref<1x128x32xf32, #tpu.memory_space<vmem>>, vector<1x128x32xf32>
    %14 = vector.shape_cast %13 : vector<1x128x32xf32> to vector<128x32xf32>
    %cst_12 = arith.constant dense<0.000000e+00> : vector<8x32xf32>
    %15 = tpu.matmul %12, %14, %cst_12 {dimension_numbers = #tpu.dot_dimension_numbers<[1], [0], [0], [1], [0, 0, 1, 1], [], []>} : vector<8x128xf32>, vector<128x32xf32>, vector<8x32xf32> -> vector<8x32xf32>
    %c0_13 = arith.constant 0 : index
    %c0_14 = arith.constant 0 : index
    %c0_15 = arith.constant 0 : index
    %16 = vector.load %arg22[%c0_13, %c0_14, %c0_15] : memref<1x1x32xf32, #tpu.memory_space<vmem>>, vector<1x1x32xf32>
    %17 = vector.shape_cast %16 : vector<1x1x32xf32> to vector<1x32xf32>
    %18 = vector.broadcast %17 : vector<1x32xf32> to vector<8x32xf32>
    %19 = arith.addf %15, %18 : vector<8x32xf32>
    %c0_16 = arith.constant 0 : index
    %c0_17 = arith.constant 0 : index
    %20 = vector.load %arg26[%c0_16, %c0_17] : memref<8x1xi32, #tpu.memory_space<vmem>>, vector<8x1xi32>
    %21 = vector.broadcast %arg1 : i32 to vector<8x1xi32>
    %22 = arith.cmpi eq, %20, %21 : vector<8x1xi32>
    %23 = arith.extui %22 : vector<8x1xi1> to vector<8x1xi32>
    %24 = arith.sitofp %23 : vector<8x1xi32> to vector<8x1xf32>
    %c0_18 = arith.constant 0 : index
    %c0_19 = arith.constant 0 : index
    %25 = vector.load %arg24[%c0_18, %c0_19] : memref<8x32xf32, #tpu.memory_space<vmem>>, vector<8x32xf32>
    %26 = vector.broadcast %24 : vector<8x1xf32> to vector<8x32xf32>
    %27 = arith.mulf %26, %19 : vector<8x32xf32>
    %28 = arith.addf %25, %27 : vector<8x32xf32>
    %c0_20 = arith.constant 0 : index
    %c0_21 = arith.constant 0 : index
    %29 = vector.load %arg24[%c0_20, %c0_21] : memref<8x32xf32, #tpu.memory_space<vmem>>, vector<8x32xf32>
    tpu.vector_store %arg24[%c0_20, %c0_21], %28 {strides = array<i32>} : memref<8x32xf32, #tpu.memory_space<vmem>>, vector<8x32xf32>,
    %c3_i32 = arith.constant 3 : i32
    %30 = arith.cmpi eq, %arg1, %c3_i32 : i32
    %31 = arith.extui %30 : i1 to i32
    %c0_i32_22 = arith.constant 0 : i32
    %32 = arith.cmpi ne, %31, %c0_i32_22 : i32
    scf.if %32 {
      %c0_23 = arith.constant 0 : index
      %c0_24 = arith.constant 0 : index
      %33 = vector.load %arg24[%c0_23, %c0_24] : memref<8x32xf32, #tpu.memory_space<vmem>>, vector<8x32xf32>
      %c0_25 = arith.constant 0 : index
      %c0_26 = arith.constant 0 : index
      %c0_27 = arith.constant 0 : index
      %34 = vector.load %arg23[%c0_25, %c0_26, %c0_27] : memref<1x8x32xf32, #tpu.memory_space<vmem>>, vector<1x8x32xf32>
      %35 = vector.shape_cast %34 : vector<1x8x32xf32> to vector<8x32xf32>
      %36 = vector.shape_cast %33 : vector<8x32xf32> to vector<1x8x32xf32>
      tpu.vector_store %arg23[%c0_25, %c0_26, %c0_27], %36 {strides = array<i32>} : memref<1x8x32xf32, #tpu.memory_space<vmem>>, vector<1x8x32xf32>,
    } else {
    }
    return
  }
  func.func @transform_0(%arg0: i32, %arg1: i32) -> (i32, i32, i32) {
    %c0_i32 = arith.constant 0 : i32
    %c0_i32_0 = arith.constant 0 : i32
    %c0_i32_1 = arith.constant 0 : i32
    return %arg0, %c0_i32, %c0_i32_0 : i32, i32, i32
  }
  func.func @transform_1(%arg0: i32, %arg1: i32) -> (i32, i32) {
    %c0_i32 = arith.constant 0 : i32
    %c0_i32_0 = arith.constant 0 : i32
    %c0_i32_1 = arith.constant 0 : i32
    return %c0_i32, %c0_i32_0 : i32, i32
  }
  func.func @transform_2(%arg0: i32, %arg1: i32) -> (i32, i32) {
    %c0_i32 = arith.constant 0 : i32
    %c0_i32_0 = arith.constant 0 : i32
    %c0_i32_1 = arith.constant 0 : i32
    return %c0_i32, %c0_i32_0 : i32, i32
  }
  func.func @transform_3(%arg0: i32, %arg1: i32) -> (i32, i32) {
    %c0_i32 = arith.constant 0 : i32
    %c0_i32_0 = arith.constant 0 : i32
    %c0_i32_1 = arith.constant 0 : i32
    return %c0_i32, %c0_i32_0 : i32, i32
  }
  func.func @transform_4(%arg0: i32, %arg1: i32) -> (i32, i32) {
    %c0_i32 = arith.constant 0 : i32
    %c0_i32_0 = arith.constant 0 : i32
    %c0_i32_1 = arith.constant 0 : i32
    return %c0_i32, %c0_i32_0 : i32, i32
  }
  func.func @transform_5(%arg0: i32, %arg1: i32) -> (i32, i32) {
    %c0_i32 = arith.constant 0 : i32
    %c0_i32_0 = arith.constant 0 : i32
    %c0_i32_1 = arith.constant 0 : i32
    return %c0_i32, %c0_i32_0 : i32, i32
  }
  func.func @transform_6(%arg0: i32, %arg1: i32) -> (i32, i32) {
    %c0_i32 = arith.constant 0 : i32
    %c0_i32_0 = arith.constant 0 : i32
    %c0_i32_1 = arith.constant 0 : i32
    return %c0_i32, %c0_i32_0 : i32, i32
  }
  func.func @transform_7(%arg0: i32, %arg1: i32) -> (i32, i32) {
    %c0_i32 = arith.constant 0 : i32
    %c0_i32_0 = arith.constant 0 : i32
    %c0_i32_1 = arith.constant 0 : i32
    return %c0_i32, %c0_i32_0 : i32, i32
  }
  func.func @transform_8(%arg0: i32, %arg1: i32) -> (i32, i32) {
    %c0_i32 = arith.constant 0 : i32
    %c0_i32_0 = arith.constant 0 : i32
    %c0_i32_1 = arith.constant 0 : i32
    return %c0_i32, %c0_i32_0 : i32, i32
  }
  func.func @transform_9(%arg0: i32, %arg1: i32) -> (i32, i32) {
    %c0_i32 = arith.constant 0 : i32
    %c0_i32_0 = arith.constant 0 : i32
    %c0_i32_1 = arith.constant 0 : i32
    return %c0_i32, %c0_i32_0 : i32, i32
  }
  func.func @transform_10(%arg0: i32, %arg1: i32) -> (i32, i32) {
    %c0_i32 = arith.constant 0 : i32
    %c0_i32_0 = arith.constant 0 : i32
    %c0_i32_1 = arith.constant 0 : i32
    return %c0_i32, %c0_i32_0 : i32, i32
  }
  func.func @transform_11(%arg0: i32, %arg1: i32) -> (i32, i32) {
    %c0_i32 = arith.constant 0 : i32
    %c0_i32_0 = arith.constant 0 : i32
    %c0_i32_1 = arith.constant 0 : i32
    return %c0_i32, %c0_i32_0 : i32, i32
  }
  func.func @transform_12(%arg0: i32, %arg1: i32) -> (i32, i32) {
    %c0_i32 = arith.constant 0 : i32
    %c0_i32_0 = arith.constant 0 : i32
    %c0_i32_1 = arith.constant 0 : i32
    return %c0_i32, %c0_i32_0 : i32, i32
  }
  func.func @transform_13(%arg0: i32, %arg1: i32) -> (i32, i32) {
    %c0_i32 = arith.constant 0 : i32
    %c0_i32_0 = arith.constant 0 : i32
    %c0_i32_1 = arith.constant 0 : i32
    return %c0_i32, %c0_i32_0 : i32, i32
  }
  func.func @transform_14(%arg0: i32, %arg1: i32) -> (i32, i32) {
    %c0_i32 = arith.constant 0 : i32
    %c0_i32_0 = arith.constant 0 : i32
    %c0_i32_1 = arith.constant 0 : i32
    return %c0_i32, %c0_i32_0 : i32, i32
  }
  func.func @transform_15(%arg0: i32, %arg1: i32) -> (i32, i32) {
    %c0_i32 = arith.constant 0 : i32
    %c0_i32_0 = arith.constant 0 : i32
    %c0_i32_1 = arith.constant 0 : i32
    return %c0_i32, %c0_i32_0 : i32, i32
  }
  func.func @transform_16(%arg0: i32, %arg1: i32) -> (i32, i32) {
    %c0_i32 = arith.constant 0 : i32
    %c0_i32_0 = arith.constant 0 : i32
    %c0_i32_1 = arith.constant 0 : i32
    return %c0_i32, %c0_i32_0 : i32, i32
  }
  func.func @transform_17(%arg0: i32, %arg1: i32) -> (i32, i32, i32) {
    %c0_i32 = arith.constant 0 : i32
    %c0_i32_0 = arith.constant 0 : i32
    %c0_i32_1 = arith.constant 0 : i32
    return %arg1, %c0_i32, %c0_i32_0 : i32, i32, i32
  }
  func.func @transform_18(%arg0: i32, %arg1: i32) -> (i32, i32, i32) {
    %c0_i32 = arith.constant 0 : i32
    %c0_i32_0 = arith.constant 0 : i32
    %c0_i32_1 = arith.constant 0 : i32
    return %arg1, %c0_i32, %c0_i32_0 : i32, i32, i32
  }
  func.func @transform_19(%arg0: i32, %arg1: i32) -> (i32, i32, i32) {
    %c0_i32 = arith.constant 0 : i32
    %c0_i32_0 = arith.constant 0 : i32
    %c0_i32_1 = arith.constant 0 : i32
    return %arg1, %c0_i32, %c0_i32_0 : i32, i32, i32
  }
  func.func @transform_20(%arg0: i32, %arg1: i32) -> (i32, i32, i32) {
    %c0_i32 = arith.constant 0 : i32
    %c0_i32_0 = arith.constant 0 : i32
    %c0_i32_1 = arith.constant 0 : i32
    return %arg1, %c0_i32, %c0_i32_0 : i32, i32, i32
  }
  func.func @transform_21(%arg0: i32, %arg1: i32) -> (i32, i32, i32) {
    %c0_i32 = arith.constant 0 : i32
    %c0_i32_0 = arith.constant 0 : i32
    %c0_i32_1 = arith.constant 0 : i32
    return %arg0, %c0_i32, %c0_i32_0 : i32, i32, i32
  }
}

</mosaic_0001>

<bundles_post_ra>
// kernel: tpu_custom_call.1
= control target key start
LH: loop header
LB: loop body
LE: loop exit
PB: predicated region body
PF: predicated region fallthrough
CT: control target
= control target key end

     0   :  { %s5362_s0 = inlined_call_operand.hbm [shape: f32[2,8,32], index: 0, kind: input, shape index: {}]   ;;  %s5363_s1 = inlined_call_operand.hbm [shape: f32[8,8], index: 1, kind: input, shape index: {}]   ;;  %s5364_s2 = inlined_call_operand.hbm [shape: f32[1,32], index: 2, kind: input, shape index: {}]   ;;  %s5365_s3 = inlined_call_operand.hbm [shape: f32[1,32], index: 3, kind: input, shape index: {}]   ;;  %s5366_s4 = inlined_call_operand.hbm [shape: f32[32,96], index: 4, kind: input, shape index: {}]   ;;  %s5367_s5 = inlined_call_operand.hbm [shape: f32[32,32], index: 5, kind: input, shape index: {}]   ;;  %s5368_s6 = inlined_call_operand.hbm [shape: f32[1,32], index: 6, kind: input, shape index: {}]   ;;  %s5369_s7 = inlined_call_operand.hbm [shape: f32[1,32], index: 7, kind: input, shape index: {}]   ;;  %s5370_s8 = inlined_call_operand.hbm [shape: f32[1,32], index: 8, kind: input, shape index: {}]   ;;  %s5371_s9 = inlined_call_operand.hbm [shape: f32[32,128], index: 9, kind: input, shape index: {}]   ;;  %s5372_s10 = inlined_call_operand.hbm [shape: f32[1,128], index: 10, kind: input, shape index: {}]   ;;  %s5373_s11 = inlined_call_operand.hbm [shape: f32[128,32], index: 11, kind: input, shape index: {}]   ;;  %s5374_s12 = inlined_call_operand.hbm [shape: f32[1,32], index: 12, kind: input, shape index: {}]   ;;  %s5375_s13 = inlined_call_operand.hbm [shape: f32[1,32], index: 13, kind: input, shape index: {}]   ;;  %s5376_s14 = inlined_call_operand.hbm [shape: f32[1,32], index: 14, kind: input, shape index: {}]   ;;  %s5377_s15 = inlined_call_operand.hbm [shape: f32[32,4], index: 15, kind: input, shape index: {}]   ;;  %s5378_s16 = inlined_call_operand.hbm [shape: f32[1,4], index: 16, kind: input, shape index: {}]   ;;  %s5379_s17 = inlined_call_operand.hbm [shape: f32[4,32,128], index: 17, kind: input, shape index: {}]   ;;  %s5380_s18 = inlined_call_operand.hbm [shape: f32[4,1,128], index: 18, kind: input, shape index: {}]   ;;  %s5381_s19 = inlined_call_operand.hbm [shape: f32[4,128,32], index: 19, kind: input, shape index: {}]   ;;  %s5382_s20 = inlined_call_operand.hbm [shape: f32[4,1,32], index: 20, kind: input, shape index: {}]   ;;  %s5383_s21 = inlined_call_operand.hbm [shape: f32[2,8,32], index: 21, kind: output, shape index: {}]  }
   0x1   :  { %5437 = sst [smem:[#allocation60_spill]] %s5362_s0 }
   0x2   :  { %5438 = sst [smem:[#allocation61_spill]] %s5363_s1 }
   0x3   :  { %5439 = sst [smem:[#allocation62_spill]] %s5364_s2 }
   0x4   :  { %5440 = sst [smem:[#allocation63_spill]] %s5365_s3 }
   0x5   :  { %5441 = sst [smem:[#allocation64_spill]] %s5366_s4 }
   0x6   :  { %5442 = sst [smem:[#allocation65_spill]] %s5367_s5 }
   0x7   :  { %5443 = sst [smem:[#allocation66_spill]] %s5368_s6 }
   0x8   :  { %5444 = sst [smem:[#allocation67_spill]] %s5369_s7 }
   0x9   :  { %5445 = sst [smem:[#allocation68_spill]] %s5370_s8 }
   0xa   :  { %5446 = sst [smem:[#allocation69_spill]] %s5371_s9 }
   0xb   :  { %5447 = sst [smem:[#allocation70_spill]] %s5372_s10 }
   0xc   :  { %5448 = sst [smem:[#allocation71_spill]] %s5373_s11 }
   0xd   :  { %5449 = sst [smem:[#allocation72_spill]] %s5374_s12 }
   0xe   :  { %5450 = sst [smem:[#allocation73_spill]] %s5375_s13 }
   0xf   :  { %5451 = sst [smem:[#allocation74_spill]] %s5376_s14 }
  0x10   :  { %5452 = sst [smem:[#allocation75_spill]] %s5377_s15 }
  0x11   :  { %5453 = sst [smem:[#allocation76_spill]] %s5378_s16 }
  0x12   :  { %5454 = sst [smem:[#allocation77_spill]] %s5379_s17 }
  0x13   :  { %5455 = sst [smem:[#allocation78_spill]] %s5380_s18 }
  0x14   :  { %5456 = sst [smem:[#allocation79_spill]] %s5381_s19 }
  0x15   :  { %5457 = sst [smem:[#allocation80_spill]] %s5382_s20 }
  0x16   :  { %5458 = sst [smem:[#allocation81_spill]] %s5383_s21 }
  0x17   :  { %26 = vsyncpa [#allocation6], 0 }
  0x18   :  { %28 = vsyncpa [#allocation6 + $0x1], 0 }
  0x19   :  { %29 = vsyncpa [#allocation9], 0 }
  0x1a   :  { %30 = vsyncpa [#allocation12], 0 }
  0x1b   :  { %31 = vsyncpa [#allocation15], 0 }
  0x1c   :  { %32 = vsyncpa [#allocation18], 0 }
  0x1d   :  { %33 = vsyncpa [#allocation21], 0 }
  0x1e   :  { %34 = vsyncpa [#allocation24], 0 }
  0x1f   :  { %35 = vsyncpa [#allocation27], 0 }
  0x20   :  { %36 = vsyncpa [#allocation30], 0 }
  0x21   :  { %37 = vsyncpa [#allocation33], 0 }
  0x22   :  { %39 = vsyncpa [#allocation33 + $0x1], 0 }
  0x23   :  { %40 = vsyncpa [#allocation36], 0 }
  0x24   :  { %42 = vsyncpa [#allocation36 + $0x1], 0 }
  0x25   :  { %43 = vsyncpa [#allocation7], 0 }
  0x26   :  { %45 = vsyncpa [#allocation7 + $0x1], 0  ;;  %s4442_s2 = smov 0   ;;  %s4444_s25 = smov 0  }
  0x27   :  { %s4446_s26 = smov 0   ;;  %s4448_s27 = smov 0  }
  0x28   :  { %s4450_s3 = smov 0   ;;  %s4452_s28 = smov 0  }
  0x29   :  { %s4454_s29 = smov 0   ;;  %s4456_s0 = smov 0  }
  0x2a   :  { %s4458_s4 = smov 0   ;;  %s4460_s30 = smov 0  }
  0x2b   :  { %s4462_s5 = smov 0  }
  0x2c LB: > { %5459 = sst [smem:[#allocation51_spill]] %s4257_s27  ;;  %s4498_s22 = sadd.s32 4294967295, %s4285_s5   ;;  %s4285_s5 = sphi %s4462_s5, %s51_s5   ;;  %s4281_s30 = sphi %s4460_s30, %s5553_s30   ;;  %s4277_s4 = sphi %s4458_s4, %s5560_s4   ;;  %s4273_s0 = sphi %s4456_s0, %s5551_s0   ;;  %s4269_s29 = sphi %s4454_s29, %s5559_s29   ;;  %s4265_s28 = sphi %s4452_s28, %s5558_s28   ;;  %s4261_s3 = sphi %s4450_s3, %s5550_s3   ;;  %s4257_s27 = sphi %s4448_s27, %s5557_s27   ;;  %s4253_s26 = sphi %s4446_s26, %s5556_s26   ;;  %s4249_s25 = sphi %s4444_s25, %s5555_s25   ;;  %s4245_s2 = sphi %s4442_s2, %s5554_s2  }
  0x2d   : > { %5460 = sst [smem:[#allocation52_spill]] %s4261_s3  ;;  %p2791_p0 = scmp.ge.s32.totalorder %s4285_s5, 1 }
  0x2e   : > { %5461 = sst [smem:[#allocation53_spill]] %s4265_s28  ;;  %p5401_p1 = scmp.eq.s32.totalorder %s4498_s22, 0 }
  0x2f   : > { %5462 = sst [smem:[#allocation54_spill]] %s4269_s29  ;;  %p560_p2 = scmp.lt.s32.totalorder %s4285_s5, 9 }
  0x30   : > { %5463 = sst [smem:[#allocation55_spill]] %s4273_s0  ;;  %s4287_s1 = smov [#allocation8]  }
  0x31   : > { %5464 = sst [smem:[#allocation56_spill]] %s4281_s30  ;;  %p4503_p3 = pnand %p2791_p0, %p560_p2 }
  0x32   : > { %s573_s24 = sshll.u32 %s4287_s1, 4  ;;  %s4288_s21 = smov [#allocation11]   ;;  %s574_s24 = int_to_ptr.vmem [resolvable:$true] %s573_s24 }
  0x33   : > { %s5465_s23 = scalar_select %p4503_p3, 1, 0 }
  0x34   : > { %p3272_p4 = pneg %p4503_p3  ;;  %s595_s0 = sshll.u32 %s4288_s21, 4  ;;  %s4515_s0 = int_to_ptr.vmem [resolvable:$true] %s595_s0 }
  0x35   : > { %5466 = sst [smem:[#allocation57_spill]] %s5465_s23  ;;  %s4289_s20 = smov [#allocation14]  }
  0x36   : > { %p4511_p5 = pnand %p3272_p4, %p5401_p1  ;;  %s4517_s18 = sshll.u32 %s4289_s20, 4  ;;  %s619_s18 = int_to_ptr.vmem [resolvable:$true] %s4517_s18 }
  0x37   : > { %s5468_s28 = sld [smem:[#allocation61_spill]] }
  0x38   : > { %s5467_s29 = scalar_select %p4511_p5, 1, 0 }
  0x39   : > { %p4527_p7 = pneg %p4511_p5 }
  0x3b   : > { %s5470_s21 = scalar_select %p4527_p7, 1, 0 }
  0x3d   : > { %s5469_s16 = smov %s5468_s28  ;;  %s3525_s1 = scalar_lea.hbm %s5468_s28, 128 }
  0x3e   : > { %p3526_p6 = scmp.ne.s32.totalorder %s5469_s16, %s3525_s1  ;;  %p3532_p10 = scmp.lt.u32.totalorder %s3525_s1, %s5469_s16 }
  0x40   : > { %p3528_p8 = pnand %p4527_p7, %p3526_p6 }
  0x42   : > { %p3529_p9 = pneg %p3528_p8 }
  0x44   : > { %p3534_p11 = pnand %p3532_p10, %p3529_p9 }
  0x46   : > { %3537 = shalt.err (!%p3534_p11)
}
  0x47   : > { %s3538_s27 = scalar_lea.vmem %s574_s24, 128  ;;  %p3546_p2 = scmp.lt.s32.totalorder %s574_s24, %s574_s24 }
  0x48   : > { %p3539_p12 = scmp.ne.s32.totalorder %s574_s24, %s3538_s27  ;;  %p3547_p4 = scmp.lt.s32.totalorder %s3538_s27, %s3538_s27 }
  0x4a   : > { %p3541_p13 = pnand %p3539_p12, %p4527_p7  ;;  %p3548_p1 = por %p3547_p4, %p3546_p2 }
  0x4c   : > { %p3542_p0 = pneg %p3541_p13 }
  0x4e   : > { %p3549_p3 = pnand %p3548_p1, %p3542_p0 }
  0x50   : > { %3552 = shalt.err (!%p3549_p3)
}
  0x51   : > { %3275 = dma.hbm_to_vmem [thread:$0]  (!%p4511_p5), %s5469_s16, 128, %s574_s24, [#allocation9]  }
  0x52   : > { %s5471_s23 = sld [smem:[#allocation63_spill]] }
  0x58   : > { %s3553_s1 = scalar_lea.hbm %s5471_s23, 16 }
  0x59   : > { %p3554_p6 = scmp.ne.s32.totalorder %s5471_s23, %s3553_s1  ;;  %p3560_p1 = scmp.lt.u32.totalorder %s3553_s1, %s5471_s23 }
  0x5b   : > { %p3556_p8 = pnand %p3554_p6, %p4527_p7 }
  0x5d   : > { %p3557_p9 = pneg %p3556_p8 }
  0x5f   : > { %p3562_p3 = pnand %p3560_p1, %p3557_p9 }
  0x61   : > { %3565 = shalt.err (!%p3562_p3)
}
  0x62   : > { %s3566_s24 = scalar_lea.vmem %s4515_s0, 16  ;;  %s3573_s12 = scalar_lea.vmem %s4515_s0, 32 }
  0x63   : > { %p3567_p10 = scmp.ne.s32.totalorder %s4515_s0, %s3566_s24  ;;  %p3574_p13 = scmp.lt.s32.totalorder %s4515_s0, %s4515_s0 }
  0x64   : > { %p3575_p0 = scmp.lt.s32.totalorder %s3573_s12, %s3566_s24 }
  0x65   : > { %p3569_p11 = pnand %p3567_p10, %p4527_p7 }
  0x66   : > { %p3576_p2 = por %p3575_p0, %p3574_p13 }
  0x67   : > { %p3570_p12 = pneg %p3569_p11 }
  0x69   : > { %p3577_p4 = pnand %p3576_p2, %p3570_p12 }
  0x6b   : > { %3580 = shalt.err (!%p3577_p4)
}
  0x6c   : > { %3281 = dma.hbm_to_vmem [thread:$0]  (!%p4511_p5), %s5471_s23, 16, %s4515_s0, [#allocation12]  }
  0x6d   : > { %s5472_s30 = sld [smem:[#allocation65_spill]] }
  0x73   : > { %s5473_s1 = smov %s5472_s30  ;;  %s3581_s20 = scalar_lea.hbm %s5472_s30, 512 }
  0x74   : > { %p3582_p6 = scmp.ne.s32.totalorder %s5473_s1, %s3581_s20  ;;  %p3588_p1 = scmp.lt.u32.totalorder %s3581_s20, %s5473_s1 }
  0x76   : > { %p3584_p8 = pnand %p3582_p6, %p4527_p7 }
  0x78   : > { %p3585_p9 = pneg %p3584_p8 }
  0x7a   : > { %p3590_p3 = pnand %p3588_p1, %p3585_p9 }
  0x7c   : > { %3593 = shalt.err (!%p3590_p3)
}
  0x7d   : > { %s3594_s10 = scalar_lea.vmem %s619_s18, 512  ;;  %p3602_p13 = scmp.lt.s32.totalorder %s619_s18, %s619_s18 }
  0x7e   : > { %p3595_p10 = scmp.ne.s32.totalorder %s619_s18, %s3594_s10  ;;  %p3603_p0 = scmp.lt.s32.totalorder %s3594_s10, %s3594_s10 }
  0x80   : > { %p3597_p11 = pnand %p3595_p10, %p4527_p7  ;;  %p3604_p2 = por %p3603_p0, %p3602_p13 }
  0x82   : > { %p3598_p12 = pneg %p3597_p11 }
  0x84   : > { %p3605_p4 = pnand %p3604_p2, %p3598_p12 }
  0x86   : > { %3608 = shalt.err (!%p3605_p4)
}
  0x87   : > { %s4290_s16 = smov 128   ;;  %s4291_s0 = smov 8  }
  0x88   : > { %3287 = dma.hbm_to_vmem [thread:$0]  (!%p4511_p5), %s5473_s1, 512, %s619_s18, [#allocation15], %s4290_s16, %s4290_s16, %s4291_s0  }
  0x89   : > { %s4292_s14 = smov [#allocation17]   ;;  %s4293_s20 = smov [#allocation20]  }
  0x8a   : > { %s643_s30 = sshll.u32 %s4292_s14, 4  ;;  %s664_s27 = sshll.u32 %s4293_s20, 4  ;;  %s644_s30 = int_to_ptr.vmem [resolvable:$true] %s643_s30  ;;  %s665_s27 = int_to_ptr.vmem [resolvable:$true] %s664_s27 }
  0x8b   : > { %s5474_s7 = sld [smem:[#allocation67_spill]] }
  0x91   : > { %s3609_s10 = scalar_lea.hbm %s5474_s7, 16 }
  0x92   : > { %p3610_p6 = scmp.ne.s32.totalorder %s5474_s7, %s3609_s10  ;;  %p3616_p1 = scmp.lt.u32.totalorder %s3609_s10, %s5474_s7 }
  0x94   : > { %p3612_p8 = pnand %p3610_p6, %p4527_p7 }
  0x96   : > { %p3613_p9 = pneg %p3612_p8 }
  0x98   : > { %p3618_p3 = pnand %p3616_p1, %p3613_p9 }
  0x9a   : > { %3621 = shalt.err (!%p3618_p3)
}
  0x9b   : > { %s3622_s18 = scalar_lea.vmem %s644_s30, 16  ;;  %s3629_s3 = scalar_lea.vmem %s644_s30, 32 }
  0x9c   : > { %p3623_p10 = scmp.ne.s32.totalorder %s644_s30, %s3622_s18  ;;  %p3630_p13 = scmp.lt.s32.totalorder %s644_s30, %s644_s30 }
  0x9d   : > { %p3631_p0 = scmp.lt.s32.totalorder %s3629_s3, %s3622_s18 }
  0x9e   : > { %p3625_p11 = pnand %p3623_p10, %p4527_p7 }
  0x9f   : > { %p3632_p2 = por %p3631_p0, %p3630_p13 }
  0xa0   : > { %p3626_p12 = pneg %p3625_p11 }
  0xa2   : > { %p3633_p4 = pnand %p3632_p2, %p3626_p12 }
  0xa4   : > { %3636 = shalt.err (!%p3633_p4)
}
  0xa5   : > { %3293 = dma.hbm_to_vmem [thread:$0]  (!%p4511_p5), %s5474_s7, 16, %s644_s30, [#allocation18]  }
  0xa6   : > { %s5475_s9 = sld [smem:[#allocation69_spill]] }
  0xac   : > { %s3637_s28 = scalar_lea.hbm %s5475_s9, 512 }
  0xad   : > { %p3638_p6 = scmp.ne.s32.totalorder %s5475_s9, %s3637_s28  ;;  %p3644_p1 = scmp.lt.u32.totalorder %s3637_s28, %s5475_s9 }
  0xaf   : > { %p3640_p8 = pnand %p3638_p6, %p4527_p7 }
  0xb1   : > { %p3641_p9 = pneg %p3640_p8 }
  0xb3   : > { %p3646_p3 = pnand %p3644_p1, %p3641_p9 }
  0xb5   : > { %3649 = shalt.err (!%p3646_p3)
}
  0xb6   : > { %s3650_s10 = scalar_lea.vmem %s665_s27, 512  ;;  %p3658_p13 = scmp.lt.s32.totalorder %s665_s27, %s665_s27 }
  0xb7   : > { %p3651_p10 = scmp.ne.s32.totalorder %s665_s27, %s3650_s10  ;;  %p3659_p0 = scmp.lt.s32.totalorder %s3650_s10, %s3650_s10 }
  0xb9   : > { %p3653_p11 = pnand %p3651_p10, %p4527_p7  ;;  %p3660_p2 = por %p3659_p0, %p3658_p13 }
  0xbb   : > { %p3654_p12 = pneg %p3653_p11 }
  0xbd   : > { %p3661_p4 = pnand %p3660_p2, %p3654_p12 }
  0xbf   : > { %3664 = shalt.err (!%p3661_p4)
}
  0xc0   : > { %3299 = dma.hbm_to_vmem [thread:$0]  (!%p4511_p5), %s5475_s9, 512, %s665_s27, [#allocation21], %s4290_s16, %s4290_s16, %s4291_s0  }
  0xc1   : > { %s4294_s3 = smov [#allocation23]   ;;  %s4295_s23 = smov [#allocation26]  }
  0xc2   : > { %s688_s8 = sshll.u32 %s4294_s3, 4  ;;  %s713_s6 = sshll.u32 %s4295_s23, 4  ;;  %s689_s8 = int_to_ptr.vmem [resolvable:$true] %s688_s8  ;;  %s714_s6 = int_to_ptr.vmem [resolvable:$true] %s713_s6 }
  0xc3   : > { %s5476_s11 = sld [smem:[#allocation71_spill]] }
  0xc9   : > { %s3665_s14 = scalar_lea.hbm %s5476_s11, 2048 }
  0xca   : > { %p3666_p6 = scmp.ne.s32.totalorder %s5476_s11, %s3665_s14  ;;  %p3672_p1 = scmp.lt.u32.totalorder %s3665_s14, %s5476_s11 }
  0xcc   : > { %p3668_p8 = pnand %p3666_p6, %p4527_p7 }
  0xce   : > { %p3669_p9 = pneg %p3668_p8 }
  0xd0   : > { %p3674_p3 = pnand %p3672_p1, %p3669_p9 }
  0xd2   : > { %3677 = shalt.err (!%p3674_p3)
}
  0xd3   : > { %s3678_s27 = scalar_lea.vmem %s689_s8, 2048  ;;  %p3686_p13 = scmp.lt.s32.totalorder %s689_s8, %s689_s8 }
  0xd4   : > { %p3679_p10 = scmp.ne.s32.totalorder %s689_s8, %s3678_s27  ;;  %p3687_p0 = scmp.lt.s32.totalorder %s3678_s27, %s3678_s27 }
  0xd6   : > { %p3681_p11 = pnand %p3679_p10, %p4527_p7  ;;  %p3688_p2 = por %p3687_p0, %p3686_p13 }
  0xd8   : > { %p3682_p12 = pneg %p3681_p11 }
  0xda   : > { %p3689_p4 = pnand %p3688_p2, %p3682_p12 }
  0xdc   : > { %3692 = shalt.err (!%p3689_p4)
}
  0xdd   : > { %3305 = dma.hbm_to_vmem [thread:$0]  (!%p4511_p5), %s5476_s11, 2048, %s689_s8, [#allocation24], %s4290_s16, %s4290_s16, %s4291_s0  }
  0xde   : > { %s5477_s13 = sld [smem:[#allocation73_spill]] }
  0xe4   : > { %s3693_s19 = scalar_lea.hbm %s5477_s13, 16 }
  0xe5   : > { %p3694_p6 = scmp.ne.s32.totalorder %s5477_s13, %s3693_s19  ;;  %p3700_p1 = scmp.lt.u32.totalorder %s3693_s19, %s5477_s13 }
  0xe7   : > { %p3696_p8 = pnand %p3694_p6, %p4527_p7 }
  0xe9   : > { %p3697_p9 = pneg %p3696_p8 }
  0xeb   : > { %p3702_p3 = pnand %p3700_p1, %p3697_p9 }
  0xed   : > { %3705 = shalt.err (!%p3702_p3)
}
  0xee   : > { %s3706_s12 = scalar_lea.vmem %s714_s6, 16  ;;  %s3713_s8 = scalar_lea.vmem %s714_s6, 32 }
  0xef   : > { %p3707_p10 = scmp.ne.s32.totalorder %s714_s6, %s3706_s12  ;;  %p3714_p13 = scmp.lt.s32.totalorder %s714_s6, %s714_s6 }
  0xf0   : > { %p3715_p0 = scmp.lt.s32.totalorder %s3713_s8, %s3706_s12 }
  0xf1   : > { %p3709_p11 = pnand %p3707_p10, %p4527_p7 }
  0xf2   : > { %p3716_p2 = por %p3715_p0, %p3714_p13 }
  0xf3   : > { %p3710_p12 = pneg %p3709_p11 }
  0xf5   : > { %p3717_p4 = pnand %p3716_p2, %p3710_p12 }
  0xf7   : > { %3720 = shalt.err (!%p3717_p4)
}
  0xf8   : > { %3311 = dma.hbm_to_vmem [thread:$0]  (!%p4511_p5), %s5477_s13, 16, %s714_s6, [#allocation27]  }
  0xf9   : > { %s4296_s30 = smov [#allocation29]   ;;  %s5478_s15 = sld [smem:[#allocation75_spill]] }
  0xfa   : > { %s734_s18 = sshll.u32 %s4296_s30, 4  ;;  %s735_s18 = int_to_ptr.vmem [resolvable:$true] %s734_s18 }
  0xff   : > { %s3721_s19 = scalar_lea.hbm %s5478_s15, 512 }
 0x100   : > { %p3722_p6 = scmp.ne.s32.totalorder %s5478_s15, %s3721_s19  ;;  %p3728_p1 = scmp.lt.u32.totalorder %s3721_s19, %s5478_s15 }
 0x102   : > { %p3724_p8 = pnand %p3722_p6, %p4527_p7 }
 0x104   : > { %p3725_p9 = pneg %p3724_p8 }
 0x106   : > { %p3730_p3 = pnand %p3728_p1, %p3725_p9 }
 0x108   : > { %3733 = shalt.err (!%p3730_p3)
}
 0x109   : > { %s3734_s6 = scalar_lea.vmem %s735_s18, 512  ;;  %p3742_p13 = scmp.lt.s32.totalorder %s735_s18, %s735_s18 }
 0x10a   : > { %p3735_p10 = scmp.ne.s32.totalorder %s735_s18, %s3734_s6  ;;  %p3743_p0 = scmp.lt.s32.totalorder %s3734_s6, %s3734_s6 }
 0x10c   : > { %p3737_p11 = pnand %p3735_p10, %p4527_p7  ;;  %p3744_p2 = por %p3743_p0, %p3742_p13 }
 0x10e   : > { %p3738_p12 = pneg %p3737_p11 }
 0x110   : > { %p3745_p4 = pnand %p3744_p2, %p3738_p12 }
 0x112   : > { %3748 = shalt.err (!%p3745_p4)
}
 0x113   : > { %3317 = dma.hbm_to_vmem [thread:$0]  (!%p4511_p5), %s5478_s15, 512, %s735_s18, [#allocation30], %s4290_s16, %s4290_s16, %s4291_s0  }
 0x114   : > { %p5411_p6 = scmp.eq.s32.totalorder %s4285_s5, 0  ;;  %p439_p8 = scmp.ne.s32.totalorder %s4253_s26, %s4249_s25 }
 0x115   : > { %p445_p9 = scmp.ne.s32.totalorder %s4249_s25, %s4245_s2  ;;  %p5410_p1 = scmp.lt.s32.totalorder %s4285_s5, 8 }
 0x116   : > { %s5412_s27 = sand.u32 1, %s4285_s5   ;;  %p441_p3 = por %p439_p8, %p5411_p6 }
 0x117   : > { %p5479_p10 = scmp.eq.s32.totalorder %s4498_s22, 0  ;;  %s4705_s3 = sand.u32 1, %s4253_s26  }
 0x118   : > { %s2811_s23 = sshll.u32 %s4705_s3, 5  ;;  %s2876_s18 = sshll.u32 %s4277_s4, 9 }
 0x119   : > { %p4700_p11 = por %p445_p9, %p5479_p10  ;;  %s5481_s17 = sld [smem:[#allocation77_spill]] }
 0x11a   : > { %s781_s2 = scalar_lea.vmem [#allocation32], %s2811_s23  ;;  %p4716_p12 = pnand %p5410_p1, %p441_p3 }
 0x11b   : > { %s5480_s30 = scalar_select %p4700_p11, 1, 0 }
 0x11c   : > { %s788_s20 = sshll.u32 %s781_s2, 4  ;;  %s2815_s6 = sshll.u32 %s4705_s3, 7  ;;  %s4720_s20 = int_to_ptr.vmem [resolvable:$true] %s788_s20 }
 0x11d   : > { %s5482_s24 = scalar_select %p4716_p12, 1, 0 }
 0x11e   : > { %s4725_s12 = scalar_lea.sflag [#allocation33], %s5412_s27  ;;  %p4731_p0 = pneg %p4716_p12 }
 0x11f   : > { %s4712_s14 = scalar_lea.hbm %s5481_s17, %s2876_s18  ;;  %s3754_s28 = scalar_lea.hbm %s5481_s17, 2048 }
 0x120   : > { %s3749_s8 = scalar_lea.hbm %s4712_s14, 512  ;;  %p3755_p8 = scmp.lt.u32.totalorder %s4712_s14, %s5481_s17 }
 0x121   : > { %p3750_p13 = scmp.ne.s32.totalorder %s4712_s14, %s3749_s8  ;;  %p3756_p9 = scmp.lt.u32.totalorder %s3754_s28, %s3749_s8 }
 0x122   : > { %s5483_s18 = scalar_select %p4731_p0, 1, 0 }
 0x123   : > { %p3752_p2 = pnand %p4731_p0, %p3750_p13  ;;  %p3757_p3 = por %p3756_p9, %p3755_p8 }
 0x124   : > { %p3758_p10 = scmp.lt.u32.totalorder %s3749_s8, %s4712_s14 }
 0x125   : > { %p3753_p4 = pneg %p3752_p2 }
 0x126   : > { %p3759_p1 = por %p3758_p10, %p3757_p3 }
 0x128   : > { %p3760_p6 = pnand %p3759_p1, %p3753_p4 }
 0x12a   : > { %3763 = shalt.err (!%p3760_p6)
}
 0x12b   : > { %s3764_s27 = scalar_lea.vmem %s4720_s20, 512  ;;  %s4297_s23 = smov [#allocation32]  }
 0x12c   : > { %p3765_p13 = scmp.ne.s32.totalorder %s4720_s20, %s3764_s27  ;;  %s3769_s19 = sshll.u32 %s4297_s23, 4  ;;  %s3770_s19 = int_to_ptr.vmem [resolvable:$false] %s3769_s19 }
 0x12d   : > { %s3771_s10 = scalar_lea.vmem %s3770_s19, 1024  ;;  %p3772_p5 = scmp.lt.s32.totalorder %s4720_s20, %s3770_s19 }
 0x12e   : > { %p3767_p2 = pnand %p3765_p13, %p4731_p0  ;;  %p3773_p7 = scmp.lt.s32.totalorder %s3771_s10, %s3764_s27 }
 0x130   : > { %p3768_p11 = pneg %p3767_p2  ;;  %p3774_p8 = por %p3773_p7, %p3772_p5 }
 0x132   : > { %p3775_p9 = pnand %p3774_p8, %p3768_p11 }
 0x134   : > { %3778 = shalt.err (!%p3775_p9)
}
 0x135   : > { %3327 = dma.hbm_to_vmem [thread:$0]  (!%p4716_p12), %s4712_s14, 512, %s4720_s20, %s4725_s12, %s4290_s16, %s4290_s16, %s4291_s0  }
 0x136   : > { %s2877_s8 = sshll.u32 %s4277_s4, 11  ;;  %s5484_s27 = sld [smem:[#allocation79_spill]] }
 0x137   : > { %s819_s10 = scalar_lea.vmem [#allocation35], %s2815_s6  ;;  %s5486_s7 = sand.u32 1, %s4285_s5  }
 0x138   : > { %s826_s1 = sshll.u32 %s819_s10, 4  ;;  %s4770_s9 = scalar_lea.sflag [#allocation36], %s5486_s7  ;;  %s4766_s1 = int_to_ptr.vmem [resolvable:$true] %s826_s1 }
 0x13c   : > { %s5485_s23 = smov %s5484_s27  ;;  %s4762_s19 = scalar_lea.hbm %s5484_s27, %s2877_s8 }
 0x13d   : > { %s3779_s11 = scalar_lea.hbm %s4762_s19, 2048  ;;  %s3784_s8 = scalar_lea.hbm %s5485_s23, 8192 }
 0x13e   : > { %p3780_p5 = scmp.ne.s32.totalorder %s4762_s19, %s3779_s11  ;;  %p3785_p1 = scmp.lt.u32.totalorder %s4762_s19, %s5485_s23 }
 0x13f   : > { %p3786_p11 = scmp.lt.u32.totalorder %s3784_s8, %s3779_s11  ;;  %p3788_p3 = scmp.lt.u32.totalorder %s3779_s11, %s4762_s19 }
 0x140   : > { %p3782_p7 = pnand %p3780_p5, %p4731_p0 }
 0x141   : > { %p3787_p4 = por %p3786_p11, %p3785_p1 }
 0x142   : > { %p3783_p6 = pneg %p3782_p7 }
 0x143   : > { %p3789_p10 = por %p3788_p3, %p3787_p4 }
 0x145   : > { %p3790_p13 = pnand %p3789_p10, %p3783_p6 }
 0x147   : > { %3793 = shalt.err (!%p3790_p13)
}
 0x148   : > { %s3794_s7 = scalar_lea.vmem %s4766_s1, 2048  ;;  %s4298_s6 = smov [#allocation35]  }
 0x149   : > { %p3795_p2 = scmp.ne.s32.totalorder %s4766_s1, %s3794_s7  ;;  %s3799_s27 = sshll.u32 %s4298_s6, 4  ;;  %s3800_s27 = int_to_ptr.vmem [resolvable:$false] %s3799_s27 }
 0x14a   : > { %s3801_s10 = scalar_lea.vmem %s3800_s27, 4096  ;;  %p3802_p5 = scmp.lt.s32.totalorder %s4766_s1, %s3800_s27 }
 0x14b   : > { %p3797_p8 = pnand %p3795_p2, %p4731_p0  ;;  %p3803_p7 = scmp.lt.s32.totalorder %s3801_s10, %s3794_s7 }
 0x14d   : > { %p3798_p9 = pneg %p3797_p8  ;;  %p3804_p1 = por %p3803_p7, %p3802_p5 }
 0x14f   : > { %p3805_p11 = pnand %p3804_p1, %p3798_p9 }
 0x151   : > { %3808 = shalt.err (!%p3805_p11)
}
 0x152   : > { %3333 = dma.hbm_to_vmem [thread:$0]  (!%p4716_p12), %s4762_s19, 2048, %s4766_s1, %s4770_s9, %s4290_s16, %s4290_s16, %s4291_s0  }
 0x153   : > { %s4299_s11 = smov [#allocation10]   ;;  %s4300_s20 = smov [#allocation13]  }
 0x154   : > { %s584_s14 = sshll.u32 %s4299_s11, 4  ;;  %s605_s8 = sshll.u32 %s4300_s20, 4  ;;  %s585_s14 = int_to_ptr.vmem [resolvable:$true] %s584_s14  ;;  %s606_s8 = int_to_ptr.vmem [resolvable:$true] %s605_s8 }
 0x155   : > { %s5487_s7 = sld [smem:[#allocation62_spill]]  ;;  %p5488_p4 = scmp.ne.s32.totalorder %s5470_s21, 0 }
 0x15b   : > { %s3809_s6 = scalar_lea.hbm %s5487_s7, 16 }
 0x15c   : > { %p3810_p6 = scmp.ne.s32.totalorder %s5487_s7, %s3809_s6  ;;  %p3816_p13 = scmp.lt.u32.totalorder %s3809_s6, %s5487_s7 }
 0x15e   : > { %p3812_p3 = pnand %p3810_p6, %p5488_p4 }
 0x160   : > { %p3813_p10 = pneg %p3812_p3 }
 0x162   : > { %p3818_p2 = pnand %p3816_p13, %p3813_p10 }
 0x164   : > { %3821 = shalt.err (!%p3818_p2)
}
 0x165   : > { %s3822_s1 = scalar_lea.vmem %s585_s14, 16  ;;  %s3829_s19 = scalar_lea.vmem %s585_s14, 32 }
 0x166   : > { %p3823_p8 = scmp.ne.s32.totalorder %s585_s14, %s3822_s1  ;;  %p3830_p7 = scmp.lt.s32.totalorder %s585_s14, %s585_s14 }
 0x167   : > { %p3831_p1 = scmp.lt.s32.totalorder %s3829_s19, %s3822_s1 }
 0x168   : > { %p3825_p9 = pnand %p3823_p8, %p5488_p4 }
 0x169   : > { %p3832_p11 = por %p3831_p1, %p3830_p7 }
 0x16a   : > { %p3826_p5 = pneg %p3825_p9 }
 0x16c   : > { %p3833_p12 = pnand %p3832_p11, %p3826_p5 }
 0x16e   : > { %3836 = shalt.err (!%p3833_p12)
}
 0x16f   : > { %p5489_p6 = scmp.ne.s32.totalorder %s5467_s29, 0  ;;  %s5490_s28 = sld [smem:[#allocation64_spill]] }
 0x171   : > { %3278 = dma.hbm_to_vmem [thread:$0]  (!%p5489_p6), %s5487_s7, 16, %s585_s14, [#allocation9]  }
 0x175   : > { %s5491_s6 = smov %s5490_s28  ;;  %s3837_s2 = scalar_lea.hbm %s5490_s28, 512 }
 0x176   : > { %p3838_p3 = scmp.ne.s32.totalorder %s5491_s6, %s3837_s2  ;;  %p3844_p12 = scmp.lt.u32.totalorder %s3837_s2, %s5491_s6 }
 0x178   : > { %p3840_p10 = pnand %p3838_p3, %p5488_p4 }
 0x17a   : > { %p3841_p13 = pneg %p3840_p10 }
 0x17c   : > { %p3846_p2 = pnand %p3844_p12, %p3841_p13 }
 0x17e   : > { %3849 = shalt.err (!%p3846_p2)
}
 0x17f   : > { %s3850_s11 = scalar_lea.vmem %s606_s8, 512  ;;  %p3858_p7 = scmp.lt.s32.totalorder %s606_s8, %s606_s8 }
 0x180   : > { %p3851_p8 = scmp.ne.s32.totalorder %s606_s8, %s3850_s11  ;;  %p3859_p1 = scmp.lt.s32.totalorder %s3850_s11, %s3850_s11 }
 0x182   : > { %p3853_p9 = pnand %p3851_p8, %p5488_p4  ;;  %p3860_p11 = por %p3859_p1, %p3858_p7 }
 0x184   : > { %p3854_p5 = pneg %p3853_p9 }
 0x186   : > { %p3861_p0 = pnand %p3860_p11, %p3854_p5 }
 0x188   : > { %3864 = shalt.err (!%p3861_p0)
}
 0x189   : > { %3284 = dma.hbm_to_vmem [thread:$0]  (!%p5489_p6), %s5491_s6, 512, %s606_s8, [#allocation12], %s4290_s16, %s4290_s16, %s4291_s0  }
 0x18a   : > { %s4301_s13 = smov [#allocation16]   ;;  %s4302_s28 = smov [#allocation19]  }
 0x18b   : > { %s632_s15 = sshll.u32 %s4301_s13, 4  ;;  %s654_s2 = sshll.u32 %s4302_s28, 4  ;;  %s633_s15 = int_to_ptr.vmem [resolvable:$true] %s632_s15  ;;  %s655_s2 = int_to_ptr.vmem [resolvable:$true] %s654_s2 }
 0x18c   : > { %s5492_s1 = sld [smem:[#allocation66_spill]] }
 0x192   : > { %s3865_s19 = scalar_lea.hbm %s5492_s1, 16 }
 0x193   : > { %p3866_p0 = scmp.ne.s32.totalorder %s5492_s1, %s3865_s19  ;;  %p3872_p13 = scmp.lt.u32.totalorder %s3865_s19, %s5492_s1 }
 0x195   : > { %p3868_p3 = pnand %p3866_p0, %p5488_p4 }
 0x197   : > { %p3869_p10 = pneg %p3868_p3 }
 0x199   : > { %p3874_p12 = pnand %p3872_p13, %p3869_p10 }
 0x19b   : > { %3877 = shalt.err (!%p3874_p12)
}
 0x19c   : > { %s3878_s16 = scalar_lea.vmem %s633_s15, 16  ;;  %s3885_s0 = scalar_lea.vmem %s633_s15, 32 }
 0x19d   : > { %p3879_p2 = scmp.ne.s32.totalorder %s633_s15, %s3878_s16  ;;  %p3886_p5 = scmp.lt.s32.totalorder %s633_s15, %s633_s15 }
 0x19e   : > { %p3887_p7 = scmp.lt.s32.totalorder %s3885_s0, %s3878_s16 }
 0x19f   : > { %p3881_p8 = pnand %p3879_p2, %p5488_p4 }
 0x1a0   : > { %p3888_p1 = por %p3887_p7, %p3886_p5 }
 0x1a1   : > { %p3882_p9 = pneg %p3881_p8 }
 0x1a3   : > { %p3889_p11 = pnand %p3888_p1, %p3882_p9 }
 0x1a5   : > { %3892 = shalt.err (!%p3889_p11)
}
 0x1a6   : > { %3290 = dma.hbm_to_vmem [thread:$0]  (!%p5489_p6), %s5492_s1, 16, %s633_s15, [#allocation15]  }
 0x1a7   : > { %s5493_s13 = sld [smem:[#allocation68_spill]] }
 0x1ad   : > { %s3893_s28 = scalar_lea.hbm %s5493_s13, 16 }
 0x1ae   : > { %p3894_p0 = scmp.ne.s32.totalorder %s5493_s13, %s3893_s28  ;;  %p3900_p13 = scmp.lt.u32.totalorder %s3893_s28, %s5493_s13 }
 0x1b0   : > { %p3896_p3 = pnand %p3894_p0, %p5488_p4 }
 0x1b2   : > { %p3897_p10 = pneg %p3896_p3 }
 0x1b4   : > { %p3902_p12 = pnand %p3900_p13, %p3897_p10 }
 0x1b6   : > { %3905 = shalt.err (!%p3902_p12)
}
 0x1b7   : > { %s3906_s14 = scalar_lea.vmem %s655_s2, 16  ;;  %s3913_s15 = scalar_lea.vmem %s655_s2, 32 }
 0x1b8   : > { %p3907_p2 = scmp.ne.s32.totalorder %s655_s2, %s3906_s14  ;;  %p3914_p5 = scmp.lt.s32.totalorder %s655_s2, %s655_s2 }
 0x1b9   : > { %p3915_p7 = scmp.lt.s32.totalorder %s3913_s15, %s3906_s14 }
 0x1ba   : > { %p3909_p8 = pnand %p3907_p2, %p5488_p4 }
 0x1bb   : > { %p3916_p1 = por %p3915_p7, %p3914_p5 }
 0x1bc   : > { %p3910_p9 = pneg %p3909_p8 }
 0x1be   : > { %p3917_p11 = pnand %p3916_p1, %p3910_p9 }
 0x1c0   : > { %3920 = shalt.err (!%p3917_p11)
}
 0x1c1   : > { %3296 = dma.hbm_to_vmem [thread:$0]  (!%p5489_p6), %s5493_s13, 16, %s655_s2, [#allocation18]  }
 0x1c2   : > { %s4303_s8 = smov [#allocation22]   ;;  %s4304_s17 = smov [#allocation25]  }
 0x1c3   : > { %s678_s7 = sshll.u32 %s4303_s8, 4  ;;  %s702_s20 = sshll.u32 %s4304_s17, 4  ;;  %s679_s7 = int_to_ptr.vmem [resolvable:$true] %s678_s7  ;;  %s703_s20 = int_to_ptr.vmem [resolvable:$true] %s702_s20 }
 0x1c4   : > { %s5494_s10 = sld [smem:[#allocation70_spill]] }
 0x1ca   : > { %s3921_s19 = scalar_lea.hbm %s5494_s10, 16 }
 0x1cb   : > { %p3922_p0 = scmp.ne.s32.totalorder %s5494_s10, %s3921_s19  ;;  %p3928_p13 = scmp.lt.u32.totalorder %s3921_s19, %s5494_s10 }
 0x1cd   : > { %p3924_p3 = pnand %p3922_p0, %p5488_p4 }
 0x1cf   : > { %p3925_p10 = pneg %p3924_p3 }
 0x1d1   : > { %p3930_p12 = pnand %p3928_p13, %p3925_p10 }
 0x1d3   : > { %3933 = shalt.err (!%p3930_p12)
}
 0x1d4   : > { %s3934_s2 = scalar_lea.vmem %s679_s7, 16  ;;  %s3941_s0 = scalar_lea.vmem %s679_s7, 32 }
 0x1d5   : > { %p3935_p2 = scmp.ne.s32.totalorder %s679_s7, %s3934_s2  ;;  %p3942_p5 = scmp.lt.s32.totalorder %s679_s7, %s679_s7 }
 0x1d6   : > { %p3943_p7 = scmp.lt.s32.totalorder %s3941_s0, %s3934_s2 }
 0x1d7   : > { %p3937_p8 = pnand %p3935_p2, %p5488_p4 }
 0x1d8   : > { %p3944_p1 = por %p3943_p7, %p3942_p5 }
 0x1d9   : > { %p3938_p9 = pneg %p3937_p8 }
 0x1db   : > { %p3945_p11 = pnand %p3944_p1, %p3938_p9 }
 0x1dd   : > { %3948 = shalt.err (!%p3945_p11)
}
 0x1de   : > { %3302 = dma.hbm_to_vmem [thread:$0]  (!%p5489_p6), %s5494_s10, 16, %s679_s7, [#allocation21]  }
 0x1df   : > { %s5495_s19 = sld [smem:[#allocation72_spill]] }
 0x1e5   : > { %s3949_s11 = scalar_lea.hbm %s5495_s19, 16 }
 0x1e6   : > { %p3950_p0 = scmp.ne.s32.totalorder %s5495_s19, %s3949_s11  ;;  %p3956_p13 = scmp.lt.u32.totalorder %s3949_s11, %s5495_s19 }
 0x1e8   : > { %p3952_p3 = pnand %p3950_p0, %p5488_p4 }
 0x1ea   : > { %p3953_p10 = pneg %p3952_p3 }
 0x1ec   : > { %p3958_p12 = pnand %p3956_p13, %p3953_p10 }
 0x1ee   : > { %3961 = shalt.err (!%p3958_p12)
}
 0x1ef   : > { %s3962_s0 = scalar_lea.vmem %s703_s20, 16  ;;  %s3969_s7 = scalar_lea.vmem %s703_s20, 32 }
 0x1f0   : > { %p3963_p2 = scmp.ne.s32.totalorder %s703_s20, %s3962_s0  ;;  %p3970_p5 = scmp.lt.s32.totalorder %s703_s20, %s703_s20 }
 0x1f1   : > { %p3971_p7 = scmp.lt.s32.totalorder %s3969_s7, %s3962_s0 }
 0x1f2   : > { %p3965_p8 = pnand %p3963_p2, %p5488_p4 }
 0x1f3   : > { %p3972_p1 = por %p3971_p7, %p3970_p5 }
 0x1f4   : > { %p3966_p9 = pneg %p3965_p8 }
 0x1f6   : > { %p3973_p11 = pnand %p3972_p1, %p3966_p9 }
 0x1f8   : > { %3976 = shalt.err (!%p3973_p11)
}
 0x1f9   : > { %3308 = dma.hbm_to_vmem [thread:$0]  (!%p5489_p6), %s5495_s19, 16, %s703_s20, [#allocation24]  }
 0x1fa   : > { %s4305_s28 = smov [#allocation28]   ;;  %s4306_s11 = smov [#allocation31]  }
 0x1fb   : > { %s724_s27 = sshll.u32 %s4305_s28, 4  ;;  %s748_s14 = sshll.u32 %s4306_s11, 4  ;;  %s725_s27 = int_to_ptr.vmem [resolvable:$true] %s724_s27  ;;  %s749_s14 = int_to_ptr.vmem [resolvable:$true] %s748_s14 }
 0x1fc   : > { %s5496_s2 = sld [smem:[#allocation74_spill]] }
 0x202   : > { %s5497_s1 = smov %s5496_s2  ;;  %s3977_s6 = scalar_lea.hbm %s5496_s2, 16 }
 0x203   : > { %p3978_p0 = scmp.ne.s32.totalorder %s5497_s1, %s3977_s6  ;;  %p3984_p13 = scmp.lt.u32.totalorder %s3977_s6, %s5497_s1 }
 0x205   : > { %p3980_p3 = pnand %p3978_p0, %p5488_p4 }
 0x207   : > { %p3981_p10 = pneg %p3980_p3 }
 0x209   : > { %p3986_p12 = pnand %p3984_p13, %p3981_p10 }
 0x20b   : > { %3989 = shalt.err (!%p3986_p12)
}
 0x20c   : > { %s3990_s20 = scalar_lea.vmem %s725_s27, 16  ;;  %s3997_s17 = scalar_lea.vmem %s725_s27, 32 }
 0x20d   : > { %p3991_p2 = scmp.ne.s32.totalorder %s725_s27, %s3990_s20  ;;  %p3998_p5 = scmp.lt.s32.totalorder %s725_s27, %s725_s27 }
 0x20e   : > { %p3999_p7 = scmp.lt.s32.totalorder %s3997_s17, %s3990_s20 }
 0x20f   : > { %p3993_p8 = pnand %p3991_p2, %p5488_p4 }
 0x210   : > { %p4000_p1 = por %p3999_p7, %p3998_p5 }
 0x211   : > { %p3994_p9 = pneg %p3993_p8 }
 0x213   : > { %p4001_p11 = pnand %p4000_p1, %p3994_p9 }
 0x215   : > { %4004 = shalt.err (!%p4001_p11)
}
 0x216   : > { %3314 = dma.hbm_to_vmem [thread:$0]  (!%p5489_p6), %s5497_s1, 16, %s725_s27, [#allocation27]  }
 0x217   : > { %s5498_s15 = sld [smem:[#allocation76_spill]] }
 0x21d   : > { %s4005_s16 = scalar_lea.hbm %s5498_s15, 16 }
 0x21e   : > { %p4006_p0 = scmp.ne.s32.totalorder %s5498_s15, %s4005_s16  ;;  %p4012_p13 = scmp.lt.u32.totalorder %s4005_s16, %s5498_s15 }
 0x220   : > { %p4008_p3 = pnand %p4006_p0, %p5488_p4 }
 0x222   : > { %p4009_p10 = pneg %p4008_p3 }
 0x224   : > { %p4014_p12 = pnand %p4012_p13, %p4009_p10 }
 0x226   : > { %4017 = shalt.err (!%p4014_p12)
}
 0x227   : > { %s4018_s20 = scalar_lea.vmem %s749_s14, 16  ;;  %s4025_s27 = scalar_lea.vmem %s749_s14, 32 }
 0x228   : > { %p4019_p2 = scmp.ne.s32.totalorder %s749_s14, %s4018_s20  ;;  %p4026_p5 = scmp.lt.s32.totalorder %s749_s14, %s749_s14 }
 0x229   : > { %p4027_p7 = scmp.lt.s32.totalorder %s4025_s27, %s4018_s20 }
 0x22a   : > { %p4021_p8 = pnand %p4019_p2, %p5488_p4 }
 0x22b   : > { %p4028_p1 = por %p4027_p7, %p4026_p5 }
 0x22c   : > { %p4022_p9 = pneg %p4021_p8 }
 0x22e   : > { %p4029_p11 = pnand %p4028_p1, %p4022_p9 }
 0x230   : > { %4032 = shalt.err (!%p4029_p11)
}
 0x231   : > { %s5499_s11 = sld [smem:[#allocation56_spill]]  ;;  %s5500_s6 = sld [smem:[#allocation53_spill]] }
 0x232   : > { %s5501_s10 = sld [smem:[#allocation52_spill]]  ;;  %s5502_s21 = sld [smem:[#allocation51_spill]] }
 0x233   : > { %3320 = dma.hbm_to_vmem [thread:$0]  (!%p5489_p6), %s5498_s15, 16, %s749_s14, [#allocation30]  }
 0x234   : > { %s2790_s29 = sadd.s32 4294967294, %s4285_s5   ;;  %s60_s16 = sadd.s32 1, %s4277_s4 }
 0x235   : > { %p61_p4 = scmp.ge.s32.totalorder %s60_s16, 4  ;;  %p5504_p6 = scmp.eq.s32.totalorder %s4285_s5, 0 }
 0x236   : > { %p5506_p13 = scmp.eq.s32.totalorder %s4498_s22, 0  ;;  %p547_p9 = scmp.eq.s32.totalorder %s4498_s22, 7 }
 0x237   : > { %s63_s2 = sadd.s32 1, %s5499_s11  ;;  %s70_s0 = sadd.s32 1, %s5500_s6 }
 0x238   : > { %p77_p0 = scmp.ne.s32.totalorder %s5500_s6, %s5501_s10  ;;  %p83_p3 = scmp.ne.s32.totalorder %s5501_s10, %s5502_s21 }
 0x239   : > { %s5562_s16 = smov (%p61_p4, %s60_s16), 0  ;;  %s5564_s2 = smov (!%p61_p4, %s63_s2), %s5499_s11 }
 0x23a   : > { %5503 = sst [smem:[#allocation58_spill]] %s5562_s16  ;;  %p4960_p10 = por %p5504_p6, %p77_p0 }
 0x23b   : > { %p4969_p12 = por %p5506_p13, %p83_p3  ;;  %p65_p2 = scmp.ge.s32.totalorder %s5564_s2, 2 }
 0x23c   : > { %s429_s8 = ssub.s32 %s4277_s4, %s5562_s16  ;;  %s5509_s20 = sadd.s32 1, %s4253_s26 }
 0x23d   : > { %s5507_s7 = scalar_select %p4969_p12, 1, 0 }
 0x23e   : > { %p430_p8 = scmp.eq.s32.totalorder %s429_s8, 0  ;;  %s5566_s2 = smov (%p65_p2, %s5564_s2), 0 }
 0x23f   : > { %5508 = sst [smem:[#allocation59_spill]] %s5566_s2  ;;  %s67_s17 = ssub.s32 %s5499_s11, %s5566_s2 }
 0x240   : > { %s4981_s27 = scalar_select %p430_p8, %s4253_s26, %s5509_s20  }
 0x241   : > { %p4988_p5 = por %p547_p9, %p77_p0  ;;  %p68_p7 = scmp.eq.s32.totalorder %s67_s17, 0 }
 0x242   : > { %p553_p1 = scmp.eq.s32.totalorder %s2790_s29, 7  ;;  %s759_s1 = sand.u32 1, %s5500_s6  }
 0x243   : > { %s5510_s28 = scalar_select %p4988_p5, 1, 0 }
 0x244   : > { %s2810_s13 = sshll.u32 %s5499_s11, 7  ;;  %s5568_s6 = smov (!%p68_p7, %s5500_s6), %s70_s0 }
 0x245   : > { %p5000_p11 = por %p553_p1, %p83_p3  ;;  %s2809_s15 = sshll.u32 %s759_s1, 3 }
 0x246   : > { %s5512_s23 = sld [smem:[#allocation60_spill]]  ;;  %p5513_p4 = scmp.lt.s32.totalorder %s4285_s5, 8 }
 0x247   : > { %s5511_s8 = scalar_select %p5000_p11, 1, 0 }
 0x248   : > { %p5013_p0 = pnand %p5513_p4, %p4960_p10  ;;  %s763_s10 = scalar_lea.vmem [#allocation5], %s2809_s15 }
 0x249   : > { %s770_s21 = sshll.u32 %s763_s10, 4  ;;  %s760_s29 = scalar_lea.sflag [#allocation6], %s759_s1  ;;  %s5017_s21 = int_to_ptr.vmem [resolvable:$true] %s770_s21 }
 0x24a   : > { %p4035_p6 = pneg %p5013_p0 }
 0x24c   : > { %s5007_s2 = scalar_lea.hbm %s5512_s23, %s2810_s13  ;;  %s4038_s14 = scalar_lea.hbm %s5512_s23, 256 }
 0x24d   : > { %s4033_s19 = scalar_lea.hbm %s5007_s2, 128  ;;  %p4039_p10 = scmp.lt.u32.totalorder %s5007_s2, %s5512_s23 }
 0x24e   : > { %p4034_p3 = scmp.ne.s32.totalorder %s5007_s2, %s4033_s19  ;;  %p4040_p8 = scmp.lt.u32.totalorder %s4038_s14, %s4033_s19 }
 0x24f   : > { %p4042_p7 = scmp.lt.u32.totalorder %s4033_s19, %s5007_s2 }
 0x250   : > { %p4036_p13 = pnand %p4035_p6, %p4034_p3  ;;  %p4041_p9 = por %p4040_p8, %p4039_p10 }
 0x252   : > { %p4037_p2 = pneg %p4036_p13  ;;  %p4043_p1 = por %p4042_p7, %p4041_p9 }
 0x254   : > { %p4044_p4 = pnand %p4043_p1, %p4037_p2 }
 0x256   : > { %4047 = shalt.err (!%p4044_p4)
}
 0x257   : > { %s4048_s1 = scalar_lea.vmem %s5017_s21, 128  ;;  %s4307_s15 = smov [#allocation5]  }
 0x258   : > { %p4049_p3 = scmp.ne.s32.totalorder %s5017_s21, %s4048_s1  ;;  %s4053_s10 = sshll.u32 %s4307_s15, 4  ;;  %s4054_s10 = int_to_ptr.vmem [resolvable:$false] %s4053_s10 }
 0x259   : > { %s4055_s13 = scalar_lea.vmem %s4054_s10, 256  ;;  %p4056_p5 = scmp.lt.s32.totalorder %s5017_s21, %s4054_s10 }
 0x25a   : > { %p4051_p13 = pnand %p4049_p3, %p4035_p6  ;;  %p4057_p10 = scmp.lt.s32.totalorder %s4055_s13, %s4048_s1 }
 0x25c   : > { %p4052_p11 = pneg %p4051_p13  ;;  %p4058_p8 = por %p4057_p10, %p4056_p5 }
 0x25e   : > { %p4059_p9 = pnand %p4058_p8, %p4052_p11 }
 0x260   : > { %4062 = shalt.err (!%p4059_p9)
}
 0x261   : > { %3324 = dma.hbm_to_vmem [thread:$0]  (!%p5013_p0), %s5007_s2, 128, %s5017_s21, %s760_s29  }
 0x262   : > { %s2814_s19 = sshll.u32 %s4277_s4, 4  ;;  %s801_s0 = scalar_lea.vmem [#allocation34], %s4705_s3 }
 0x263   : > { %s808_s14 = sshll.u32 %s801_s0, 4  ;;  %s5515_s15 = sld [smem:[#allocation78_spill]]  ;;  %s809_s14 = int_to_ptr.vmem [resolvable:$true] %s808_s14 }
 0x264   : > { %p5516_p11 = scmp.ne.s32.totalorder %s5483_s18, 0 }
 0x269   : > { %s806_s1 = scalar_lea.hbm %s5515_s15, %s2814_s19  ;;  %s4068_s23 = scalar_lea.hbm %s5515_s15, 64 }
 0x26a   : > { %s4063_s10 = scalar_lea.hbm %s806_s1, 16  ;;  %p4069_p0 = scmp.lt.u32.totalorder %s806_s1, %s5515_s15 }
 0x26b   : > { %p4064_p5 = scmp.ne.s32.totalorder %s806_s1, %s4063_s10  ;;  %p4070_p7 = scmp.lt.u32.totalorder %s4068_s23, %s4063_s10 }
 0x26c   : > { %p4072_p4 = scmp.lt.u32.totalorder %s4063_s10, %s806_s1 }
 0x26d   : > { %p4066_p6 = pnand %p4064_p5, %p5516_p11  ;;  %p4071_p1 = por %p4070_p7, %p4069_p0 }
 0x26f   : > { %p4067_p2 = pneg %p4066_p6  ;;  %p4073_p3 = por %p4072_p4, %p4071_p1 }
 0x271   : > { %p4074_p13 = pnand %p4073_p3, %p4067_p2 }
 0x273   : > { %4077 = shalt.err (!%p4074_p13)
}
 0x274   : > { %s4078_s21 = scalar_lea.vmem %s809_s14, 16  ;;  %s4308_s29 = smov [#allocation34]  }
 0x275   : > { %p4079_p10 = scmp.ne.s32.totalorder %s809_s14, %s4078_s21  ;;  %s4083_s0 = sshll.u32 %s4308_s29, 4  ;;  %s4084_s0 = int_to_ptr.vmem [resolvable:$false] %s4083_s0 }
 0x276   : > { %s4085_s17 = scalar_lea.vmem %s4084_s0, 32  ;;  %p4086_p5 = scmp.lt.s32.totalorder %s809_s14, %s4084_s0 }
 0x277   : > { %p4081_p8 = pnand %p4079_p10, %p5516_p11  ;;  %p4087_p6 = scmp.lt.s32.totalorder %s4085_s17, %s4078_s21 }
 0x279   : > { %p4082_p9 = pneg %p4081_p8  ;;  %p4088_p12 = por %p4087_p6, %p4086_p5 }
 0x27b   : > { %p4089_p0 = pnand %p4088_p12, %p4082_p9 }
 0x27d   : > { %4092 = shalt.err (!%p4089_p0)
}
 0x27e   : > { %p5517_p7 = scmp.ne.s32.totalorder %s5482_s24, 0  ;;  %s5518_s20 = sld [smem:[#allocation80_spill]] }
 0x27f   : > { %s839_s11 = scalar_lea.vmem [#allocation37], %s4705_s3 }
 0x280   : > { %3330 = dma.hbm_to_vmem [thread:$0]  (!%p5517_p7), %s806_s1, 16, %s809_s14, %s4725_s12  }
 0x281   : > { %s846_s13 = sshll.u32 %s839_s11, 4  ;;  %s847_s13 = int_to_ptr.vmem [resolvable:$true] %s846_s13 }
 0x284   : > { %s5069_s10 = scalar_lea.hbm %s5518_s20, %s2814_s19  ;;  %s4098_s14 = scalar_lea.hbm %s5518_s20, 64 }
 0x285   : > { %s4093_s2 = scalar_lea.hbm %s5069_s10, 16  ;;  %p4099_p4 = scmp.lt.u32.totalorder %s5069_s10, %s5518_s20 }
 0x286   : > { %p4094_p12 = scmp.ne.s32.totalorder %s5069_s10, %s4093_s2  ;;  %p4100_p3 = scmp.lt.u32.totalorder %s4098_s14, %s4093_s2 }
 0x287   : > { %p4102_p10 = scmp.lt.u32.totalorder %s4093_s2, %s5069_s10 }
 0x288   : > { %p4096_p2 = pnand %p4094_p12, %p5516_p11  ;;  %p4101_p13 = por %p4100_p3, %p4099_p4 }
 0x28a   : > { %p4097_p1 = pneg %p4096_p2  ;;  %p4103_p8 = por %p4102_p10, %p4101_p13 }
 0x28c   : > { %p4104_p9 = pnand %p4103_p8, %p4097_p1 }
 0x28e   : > { %4107 = shalt.err (!%p4104_p9)
}
 0x28f   : > { %s4108_s3 = scalar_lea.vmem %s847_s13, 16  ;;  %s4309_s19 = smov [#allocation37]  }
 0x290   : > { %p4109_p5 = scmp.ne.s32.totalorder %s847_s13, %s4108_s3  ;;  %s4113_s0 = sshll.u32 %s4309_s19, 4  ;;  %s4114_s0 = int_to_ptr.vmem [resolvable:$false] %s4113_s0 }
 0x291   : > { %s4115_s17 = scalar_lea.vmem %s4114_s0, 32  ;;  %p4116_p12 = scmp.lt.s32.totalorder %s847_s13, %s4114_s0 }
 0x292   : > { %p4111_p6 = pnand %p4109_p5, %p5516_p11  ;;  %p4117_p2 = scmp.lt.s32.totalorder %s4115_s17, %s4108_s3 }
 0x294   : > { %p4112_p0 = pneg %p4111_p6  ;;  %p4118_p7 = por %p4117_p2, %p4116_p12 }
 0x296   : > { %p4119_p3 = pnand %p4118_p7, %p4112_p0 }
 0x298   : > { %4122 = shalt.err (!%p4119_p3)
}
 0x299   : > { %p5519_p4 = scmp.ne.s32.totalorder %s5482_s24, 0  ;;  %s5520_s23 = sld [smem:[#allocation57_spill]] }
 0x29b   : > { %3336 = dma.hbm_to_vmem [thread:$0]  (!%p5519_p4), %s5069_s10, 16, %s847_s13, %s4770_s9  }
 0x29f   : > { %p5521_p1 = scmp.ne.s32.totalorder %s5520_s23, 0 }
 0x2a0   : > { %s5522_s18 = sld [smem:[#allocation52_spill]] (!%p5521_p1)  ;;  %p5523_p11 = scmp.ne.s32.totalorder (!%p5521_p1), %s5507_s7, 0 }
 0x2a1   : > { %855 = sbr.rel (%p5521_p1) target bundleno = 4862 (0x12fe), region = 104 }
 0x2a6   : > { %s5093_s16 = sand.u32 (!%p5521_p1), 1, %s5522_s18  }
 0x2a7   : > { %s2820_s11 = sshll.u32 (!%p5521_p1), %s5093_s16, 3  ;;  %s858_s2 = scalar_lea.sflag (!%p5521_p1), [#allocation6], %s5093_s16 }
 0x2a8   : > { %s5099_s21 = scalar_lea.vmem [#allocation5], %s2820_s11 }
 0x2a9   : > { %4196 = dma.done.wait (%p5523_p11), %s858_s2, 128  }
 0x2aa   : > { %4198 = vsyncadd (%p5523_p11), %s858_s2, 4294967168  ;;  %p5524_p7 = scmp.eq.s32.totalorder %s4498_s22, 0 }
 0x2ac   : > { %4200 = dma.done.wait (%p5524_p7), [#allocation9], 144   ;;  %p5525_p13 = pmov %p5524_p7 }
 0x2ad   : > { %p5526_p10 = pmov %p5524_p7 }
 0x2ae   : > { %4202 = vsyncadd (%p5525_p13), [#allocation9], 4294967152 }
 0x2af   : > { %4204 = dma.done.wait (%p5526_p10), [#allocation12], 528   ;;  %p5527_p8 = pmov %p5524_p7 }
 0x2b0   : > { %p5528_p9 = pmov %p5524_p7 }
 0x2b1   : > { %4206 = vsyncadd (%p5527_p8), [#allocation12], 4294966768 }
 0x2b2   : > { %4208 = dma.done.wait (%p5528_p9), [#allocation15], 528   ;;  %p5529_p5 = pmov %p5524_p7 }
 0x2b4   : > { %4210 = vsyncadd (%p5529_p5), [#allocation15], 4294966768  ;;  %p5530_p6 = pmov %p5529_p5 }
 0x2b5   : > { %p5531_p0 = pmov %p5529_p5 }
 0x2b6   : > { %4212 = dma.done.wait (%p5530_p6), [#allocation18], 32  }
 0x2b7   : > { %4214 = vsyncadd (%p5531_p0), [#allocation18], 4294967264  ;;  %p5532_p12 = pmov %p5531_p0 }
 0x2b8   : > { %p5533_p2 = pmov %p5531_p0 }
 0x2b9   : > { %4216 = dma.done.wait (%p5532_p12), [#allocation21], 528  }
 0x2ba   : > { %4218 = vsyncadd (%p5533_p2), [#allocation21], 4294966768  ;;  %p5534_p3 = pmov %p5531_p0 }
 0x2bb   : > { %p5535_p4 = pmov %p5531_p0 }
 0x2bc   : > { %4220 = dma.done.wait (%p5534_p3), [#allocation24], 2064  }
 0x2bd   : > { %4222 = vsyncadd (%p5535_p4), [#allocation24], 4294965232  ;;  %p5536_p1 = pmov %p5531_p0 }
 0x2be   : > { %p5537_p11 = pmov %p5531_p0 }
 0x2bf   : > { %4224 = dma.done.wait (%p5536_p1), [#allocation27], 32  }
 0x2c0   : > { %4226 = vsyncadd (%p5537_p11), [#allocation27], 4294967264  ;;  %p5538_p7 = pmov %p5531_p0 }
 0x2c1   : > { %p5539_p13 = pmov %p5531_p0 }
 0x2c2   : > { %4228 = dma.done.wait (%p5538_p7), [#allocation30], 528  }
 0x2c3   : > { %4230 = vsyncadd (%p5539_p13), [#allocation30], 4294966768  ;;  %s930_s9 = sand.u32 1, %s4498_s22   ;;  %s5139_s24 = sand.u32 1, %s4249_s25  }
 0x2c4   : > { %s2837_s7 = sshll.u32 %s5139_s24, 5  ;;  %s931_s10 = scalar_lea.sflag [#allocation33], %s930_s9 }
 0x2c5   : > { %s5142_s13 = scalar_lea.vmem [#allocation32], %s2837_s7  ;;  %p5540_p10 = scmp.ne.s32.totalorder %s5480_s30, 0 }
 0x2c7   : > { %4232 = dma.done.wait (%p5540_p10), %s931_s10, 528  }
 0x2c8   : > { %4234 = vsyncadd (%p5540_p10), %s931_s10, 4294966768  ;;  %s2838_s12 = sshll.u32 %s5139_s24, 7  ;;  %s942_s14 = scalar_lea.vmem [#allocation34], %s5139_s24 }
 0x2c9   : > { %s948_s1 = scalar_lea.sflag [#allocation36], %s930_s9  ;;  %s5150_s29 = scalar_lea.vmem [#allocation35], %s2838_s12 }
 0x2ca   : > { %4236 = dma.done.wait (%p5540_p10), %s948_s1, 2064  }
 0x2cb   : > { %4238 = vsyncadd (%p5540_p10), %s948_s1, 4294965232  ;;  %s959_s22 = scalar_lea.vmem [#allocation37], %s5139_s24  ;;  %s5159_s3 = scalar_lea.vmem [#allocation38], %s2820_s11 }
 0x2cc   : > { %s5541_s19 = sld [smem:[#allocation54_spill]] }
 0x2d2   : > { %p2840_p8 = scmp.ne.s32.totalorder %s5541_s19, 0 }
 0x2d3   : > { %v5163_v0 = vld [vmem:[%s5099_s21] sm:$0xff] (!%p2840_p8)  ;;  %vm1043_vm0 = vcmask (!%p2840_p8), 261120   ;;  %v4310_v10 = vmov (!%p2840_p8), 0.0|0.0   ;;  %v1075_v12 = vld [vmem:[#allocation13 + $0x18] sm:$0xff] (!%p2840_p8)  ;;  %vm4311_vm1 = vmmov (!%p2840_p8), 0   ;;  %v4312_v13 = vmov (!%p2840_p8), 0.0  }
 0x2d4   : > { %1039 = sbr.rel (%p2840_p8) target bundleno = 4382 (0x111e), region = 192  ;;  %v1044_v1 = vsel (!%p2840_p8), %vm1043_vm0, %v5163_v0, 0.0  ;;  %v1072_v7 = vld [vmem:[#allocation13] sm:$0xff] (!%p2840_p8)  ;;  %v1073_v8 = vld [vmem:[#allocation13 + $0x8] sm:$0xff] (!%p2840_p8)  ;;  %v1074_v9 = vld [vmem:[#allocation13 + $0x10] sm:$0xff] (!%p2840_p8)  ;;  %3118 = vmatprep.subr.bf16.mxu1 (!%p2840_p8), %v4310_v10  ;;  %2961 = vmatprep.mubr.msk.f32.mxu1 (!%p2840_p8), %vm4311_vm1, %v4312_v13  ;;  %s4313_s30 = smov (!%p2840_p8), 64  }
 0x2d5   : > { %1045 = vadd.xlane.f32.xlu0 (!%p2840_p8), %v1044_v1  ;;  %v3119_v11 = vpack.c.bf16 (!%p2840_p8), %v1073_v8, %v1072_v7  ;;  %2984 = vmatprep.subr.mxu0 (!%p2840_p8), %v4312_v13  ;;  %v3122_v14 = vpack.c.bf16 (!%p2840_p8), %v1075_v12, %v1074_v9  ;;  %v2841_v19 = vld [vmem:[#allocation10] ss:$0 sm:$0xff] (!%p2840_p8)  ;;  %v2842_v21 = vld [vmem:[#allocation11] ss:$0 sm:$0xff] (!%p2840_p8)  ;;  %s4314_s0 = smov (!%p2840_p8), 96   ;;  %s4315_s17 = smov (!%p2840_p8), 88  }
 0x2d6   : > { %2986 = vmatprep.mubr.msk.f32.mxu0 (!%p2840_p8), %vm4311_vm1, %v4312_v13  ;;  %s4316_s23 = smov (!%p2840_p8), 120   ;;  %s4317_s18 = smov (!%p2840_p8), 80   ;;  %vm1154_vm2 = vcmask (!%p2840_p8), 64512   ;;  %v1149_v32 = vld [vmem:[#allocation8] sm:$0xff] (!%p2840_p8)  ;;  %vm1825_vm3 = vcmask (!%p2840_p8), 130048   ;;  %vm1827_vm4 = vcmask (!%p2840_p8), 195584  }
 0x2d7   : > { %3120 = vmatpush3.bf16.msra.mxu1 (!%p2840_p8), %v3119_v11  ;;  %s4318_s11 = smov (!%p2840_p8), 72   ;;  %s4319_s2 = smov (!%p2840_p8), 104   ;;  %vm2235_vm5 = vcmask (!%p2840_p8), 31744   ;;  %vm2260_vm8 = vcmask (!%p2840_p8), 7168  }
 0x2d8   : > { %3121 = vmatprep.subr.bf16.mxu1 (!%p2840_p8), %v4310_v10  ;;  %s4320_s21 = smov (!%p2840_p8), 112   ;;  %s4321_s9 = smov (!%p2840_p8), 48  }
 0x2d9   : > { %s4322_s7 = smov (!%p2840_p8), 56   ;;  %s4323_s10 = smov (!%p2840_p8), 40  }
 0x2da   : > { %s4324_s12 = smov (!%p2840_p8), 8   ;;  %s4325_s1 = smov (!%p2840_p8), 16  }
 0x2db   : > { %3123 = vmatpush3.bf16.msra.mxu1 %v3122_v14  ;;  %s4326_s19 = smov 24  }
 0x2dc   : > { %2964 = vmatprep.subr.mxu1 %v4312_v13 }
 0x362   : > { %v1046_v2 = vpop.xlane.xlu0 %1045 }
 0x363   : > { %v1048_v3 = vmul.f32 0.03125, %v1046_v2 }
 0x365   : > { %v1049_v4 = vsub.f32 %v5163_v0, %v1048_v3 }
 0x367   : > { %v1050_v5 = vmul.f32 %v1049_v4, %v1049_v4 }
 0x369   : > { %v1051_v6 = vsel %vm1043_vm0, %v1050_v5, 0.0 }
 0x36a   : > { %1052 = vadd.xlane.f32.xlu0 %v1051_v6 }
 0x3f7   : > { %v1053_v15 = vpop.xlane.xlu0 %1052 }
 0x3f8   : > { %v1054_v16 = vmul.f32 0.03125, %v1053_v15 }
 0x3fa   : > { %v1055_v17 = vadd.f32 1e-05, %v1054_v16 }
 0x3fc   : > { %3502 = vrsqrt.f32 %v1055_v17 }
 0x406   : > { %v3503_v18 = vpop.eup %3502 }
 0x407   : > { %v1057_v20 = vmul.f32 %v3503_v18, %v1049_v4  ;;  %v1829_v18 = vld [vmem:[#allocation14] sm:$0xff] }
 0x409   : > { %v1064_v22 = vmul.f32 %v2841_v19, %v1057_v20  ;;  %v1830_v19 = vld [vmem:[#allocation14 + $0x8] sm:$0xff] }
 0x40a   : > { %v3125_v20 = vpack.c.bf16 %v1830_v19, %v1829_v18  ;;  %v2040_v19 = vld [vmem:[#allocation23 + $0x60] sm:$0xff] }
 0x40b   : > { %v1071_v23 = vadd.f32 %v2842_v21, %v1064_v22  ;;  %v1831_v21 = vld [vmem:[#allocation14 + $0x10] sm:$0xff]  ;;  %v1832_v22 = vld [vmem:[#allocation14 + $0x18] sm:$0xff] }
 0x40d   : > { %2962 = vmatmul.mubr.msk.f32.vlgmr.msra.gmra.mrb[0].mxu1 %vm1043_vm0, %v1071_v23 }
 0x40e   : > { %2966 = vmatprep.mubr.msk.f32.mxu1 %vm4311_vm1, %v4312_v13 }
 0x4e0   : > { %v5180_v24 = vpop.f32.mrb[0].mxu1 }
 0x4e1   : > { %1239 = vrot.lane.b32.xlu0 %v5180_v24, %s4313_s30  ;;  %1152 = vrot.lane.b32.xlu1 %v5180_v24, %s4314_s0  ;;  %v2963_v25 = vpop.f32.mrb[1].mxu1  ;;  %v1150_v26 = vmul.f32 0.35355338, %v5180_v24 }
 0x4e5   : > { %1319 = vrot.lane.b32.xlu0 %v5180_v24, %s4315_s17 }
 0x4e9   : > { %1317 = vrot.lane.b32.xlu0 %v1150_v26, %s4316_s23 }
 0x4ed   : > { %1484 = vrot.lane.b32.xlu0 %v5180_v24, %s4317_s18 }
 0x4f1   : > { %1649 = vrot.lane.b32.xlu0 %v5180_v24, %s4318_s11 }
 0x4f5   : > { %1647 = vrot.lane.b32.xlu0 %v1150_v26, %s4319_s2 }
 0x553   : > { %v1240_v27 = vpop.permute.xlu0 %1239  ;;  %v1153_v28 = vpop.permute.xlu1 %1152 }
 0x554   : > { %2965 = vmatpush3.xpose.msk.msra.mxu1 %vm1154_vm2, %v1153_v28 }
 0x555   : > { %2969 = vmatprep.subr.mxu1 %v4312_v13 }
 0x557   : > { %v1320_v29 = vpop.permute.xlu0 %1319  ;;  %2967 = vmatmul.mubr.msk.f32.vlgmr.msra.gmra.mrb[2].mxu1 %vm1154_vm2, %v1150_v26 }
 0x558   : > { %2970 = vmatpush3.msra.mxu1 %v1240_v27  ;;  %2971 = vmatprep.mubr.msk.f32.mxu1 %vm4311_vm1, %v4312_v13 }
 0x559   : > { %2974 = vmatprep.subr.mxu1 %v4312_v13 }
 0x55b   : > { %v1318_v30 = vpop.permute.xlu0 %1317 }
 0x55f   : > { %v1485_v31 = vpop.permute.xlu0 %1484 }
 0x560   : > { %2985 = vmatpush3.xpose.msk.msra.mxu0 %vm1154_vm2, %v1485_v31 }
 0x561   : > { %2994 = vmatprep.subr.mxu0 %v4312_v13 }
 0x563   : > { %v1650_v39 = vpop.permute.xlu0 %1649 }
 0x567   : > { %v1648_v42 = vpop.permute.xlu0 %1647 }
 0x62a   : > { %v1226_v33 = vpop.f32.mrb[2].mxu1 }
 0x62b   : > { %v1227_v34 = vadd.f32 %v1226_v33, %v1149_v32  ;;  %v2968_v35 = vpop.f32.mrb[3].mxu1 }
 0x62d   : > { %v1230_v36 = vsel %vm1154_vm2, %v1227_v34, -inf }
 0x62e   : > { %1231 = vmax.xlane.f32.xlu1 %v1230_v36 }
 0x63f   : > { %1482 = vrot.lane.b32.xlu1 %v1150_v26, %s4320_s21 }
 0x6bb   : > { %v1232_v37 = vpop.xlane.xlu1 %1231 }
 0x6bc   : > { %v1233_v38 = vsub.f32 %v1227_v34, %v1232_v37 }
 0x6be   : > { %v1234_v40 = vmul.f32 1.442695, %v1233_v38 }
 0x6bf   : > { %v1483_v41 = vpop.permute.xlu1 %1482 }
 0x6c0   : > { %3504 = vpow2.f32 %v1234_v40  ;;  %2987 = vmatmul.mubr.msk.f32.vlgmr.msra.gmra.mrb[0].mxu0 %vm1154_vm2, %v1483_v41 }
 0x6c1   : > { %2995 = vmatpush3.xpose.msk.msra.mxu0 %vm1154_vm2, %v1650_v39  ;;  %2996 = vmatprep.mubr.msk.f32.mxu0 %vm4311_vm1, %v4312_v13 }
 0x6c2   : > { %3124 = vmatprep.subr.bf16.mxu0 %v4310_v10 }
 0x6c4   : > { %2997 = vmatmul.mubr.msk.f32.vlgmr.msra.gmra.mrb[2].mxu0 %vm1154_vm2, %v1648_v42 }
 0x6c5   : > { %3012 = vmatprep.mubr.msk.f32.mxu0 %vm4311_vm1, %v4312_v13  ;;  %3126 = vmatpush3.bf16.msra.mxu0 %v3125_v20  ;;  %v2041_v20 = vld [vmem:[#allocation23 + $0x68] sm:$0xff] }
 0x6c6   : > { %3127 = vmatprep.subr.bf16.mxu0 %v4310_v10 }
 0x6ca   : > { %v3505_v43 = vpop.eup %3504 }
 0x6cb   : > { %2972 = vmatmul.mubr.msk.f32.vlgmr.msra.gmra.mrb[4].mxu1 %vm1154_vm2, %v3505_v43  ;;  %v1236_v9 = vsel %vm1154_vm2, %v3505_v43, 0.0 }
 0x6cc   : > { %2975 = vmatpush3.xpose.msk.msra.mxu1 %vm1154_vm2, %v1320_v29  ;;  %2976 = vmatprep.mubr.msk.f32.mxu1 %vm4311_vm1, %v4312_v13 }
 0x6cd   : > { %2979 = vmatprep.subr.mxu1 %v4312_v13 }
 0x6cf   : > { %2977 = vmatmul.mubr.msk.f32.vlgmr.msra.gmra.mrb[6].mxu1 %vm1154_vm2, %v1318_v30 }
 0x6d0   : > { %2981 = vmatprep.mubr.msk.f32.mxu1 %vm4311_vm1, %v4312_v13 }
 0x793   : > { %v1556_v44 = vpop.f32.mrb[0].mxu0 }
 0x794   : > { %v1557_v45 = vadd.f32 %v1556_v44, %v1149_v32  ;;  %v2988_v46 = vpop.f32.mrb[1].mxu0 }
 0x795   : > { %v2856_v46 = vld [vmem:[#allocation16] ss:$0 sm:$0xff] }
 0x796   : > { %v1560_v47 = vsel %vm1154_vm2, %v1557_v45, -inf }
 0x797   : > { %1561 = vmax.xlane.f32.xlu1 %v1560_v47  ;;  %v1721_v48 = vpop.f32.mrb[2].mxu0 }
 0x798   : > { %v1722_v49 = vadd.f32 %v1721_v48, %v1149_v32  ;;  %v2998_v50 = vpop.f32.mrb[3].mxu0 }
 0x79a   : > { %v1725_v51 = vsel %vm1154_vm2, %v1722_v49, -inf }
 0x79b   : > { %1726 = vmax.xlane.f32.xlu0 %v1725_v51 }
 0x79e   : > { %v5215_v52 = vpop.f32.mrb[4].mxu1 }
 0x79f   : > { %v2973_v53 = vpop.f32.mrb[5].mxu1 }
 0x7a2   : > { %v1391_v54 = vpop.f32.mrb[6].mxu1 }
 0x7a3   : > { %v1392_v55 = vadd.f32 %v1391_v54, %v1149_v32  ;;  %v2978_v56 = vpop.f32.mrb[7].mxu1 }
 0x7a5   : > { %v1395_v57 = vsel %vm1154_vm2, %v1392_v55, -inf }
 0x7a6   : > { %1396 = vmax.xlane.f32.xlu0 %v1395_v57  ;;  %v1943_v57 = vld [vmem:[#allocation20] sm:$0xff] }
 0x7a8   : > { %1569 = vrot.lane.b32.xlu1 %v5180_v24, %s4321_s9 }
 0x7bc   : > { %1404 = vrot.lane.b32.xlu0 %v5180_v24, %s4322_s7 }
 0x7c0   : > { %1734 = vrot.lane.b32.xlu0 %v5180_v24, %s4323_s10  ;;  %v3128_v24 = vpack.c.bf16 %v1832_v22, %v1831_v21  ;;  %v3155_v21 = vpack.c.bf16 %v2041_v20, %v2040_v19 }
 0x7c2   : > { %3129 = vmatpush3.bf16.msra.mxu0 %v3128_v24 }
 0x7c3   : > { %3136 = vmatprep.subr.bf16.mxu0 %v4310_v10 }
 0x824   : > { %v1562_v58 = vpop.xlane.xlu1 %1561 }
 0x825   : > { %v1563_v59 = vsub.f32 %v1557_v45, %v1562_v58  ;;  %v1944_v58 = vld [vmem:[#allocation20 + $0x8] sm:$0xff] }
 0x827   : > { %v1564_v60 = vmul.f32 1.442695, %v1563_v59  ;;  %v3131_v59 = vpack.c.bf16 %v1944_v58, %v1943_v57 }
 0x828   : > { %v1727_v61 = vpop.xlane.xlu0 %1726  ;;  %v1570_v12 = vpop.permute.xlu1 %1569 }
 0x829   : > { %3506 = vpow2.f32 %v1564_v60  ;;  %v1728_v62 = vsub.f32 %v1722_v49, %v1727_v61  ;;  %v1945_v60 = vld [vmem:[#allocation20 + $0x10] sm:$0xff]  ;;  %v1946_v61 = vld [vmem:[#allocation20 + $0x18] sm:$0xff] }
 0x82b   : > { %v1729_v63 = vmul.f32 1.442695, %v1728_v62  ;;  %v2028_v62 = vld [vmem:[#allocation23] sm:$0xff] }
 0x82d   : > { %3508 = vpow2.f32 %v1729_v63  ;;  %v2029_v63 = vld [vmem:[#allocation23 + $0x8] sm:$0xff] }
 0x833   : > { %v3507_v1 = vpop.eup %3506  ;;  %v1397_v2 = vpop.xlane.xlu0 %1396 }
 0x834   : > { %v1398_v3 = vsub.f32 %v1392_v55, %v1397_v2  ;;  %v1566_v4 = vsel %vm1154_vm2, %v3507_v1, 0.0  ;;  %v3137_v2 = vpack.c.bf16 %v2029_v63, %v2028_v62  ;;  %v2865_v63 = vld [vmem:[#allocation31] ss:$0 sm:$0xff] }
 0x835   : > { %1567 = vadd.xlane.f32.xlu0 %v1566_v4 }
 0x836   : > { %v1399_v5 = vmul.f32 1.442695, %v1398_v3  ;;  %v2031_v3 = vld [vmem:[#allocation23 + $0x18] sm:$0xff] }
 0x837   : > { %v3509_v6 = vpop.eup %3508  ;;  %v1405_v7 = vpop.permute.xlu0 %1404 }
 0x838   : > { %3510 = vpow2.f32 %v1399_v5  ;;  %2980 = vmatpush3.msra.mxu1 %v1405_v7  ;;  %v1731_v8 = vsel %vm1154_vm2, %v3509_v6, 0.0  ;;  %v2032_v5 = vld [vmem:[#allocation23 + $0x20] sm:$0xff] }
 0x839   : > { %1732 = vadd.xlane.f32.xlu0 %v1731_v8  ;;  %2989 = vmatprep.subr.mxu1 %v4312_v13  ;;  %v2034_v8 = vld [vmem:[#allocation23 + $0x30] sm:$0xff] }
 0x83b   : > { %v1735_v15 = vpop.permute.xlu0 %1734 }
 0x83d   : > { %1237 = vadd.xlane.f32.xlu0 %v1236_v9  ;;  %v2035_v9 = vld [vmem:[#allocation23 + $0x38] sm:$0xff] }
 0x842   : > { %v3511_v11 = vpop.eup %3510 }
 0x843   : > { %2982 = vmatmul.mubr.msk.f32.vlgmr.msra.gmra.mrb[8].mxu1 %vm1154_vm2, %v3511_v11  ;;  %v1401_v14 = vsel %vm1154_vm2, %v3511_v11, 0.0  ;;  %v3146_v11 = vpack.c.bf16 %v2035_v9, %v2034_v8 }
 0x844   : > { %2990 = vmatpush3.msra.mxu1 %v1570_v12  ;;  %1402 = vadd.xlane.f32.xlu1 %v1401_v14  ;;  %v2036_v12 = vld [vmem:[#allocation23 + $0x40] sm:$0xff]  ;;  %v2037_v14 = vld [vmem:[#allocation23 + $0x48] sm:$0xff] }
 0x845   : > { %2991 = vmatprep.mubr.msk.f32.mxu1 %vm4311_vm1, %v4312_v13  ;;  %2999 = vmatprep.subr.mxu1 %v4312_v13 }
 0x847   : > { %2992 = vmatmul.mubr.msk.f32.vlgmr.msra.gmra.mrb[10].mxu1 %vm1154_vm2, %v3507_v1  ;;  %v2030_v1 = vld [vmem:[#allocation23 + $0x10] sm:$0xff] }
 0x848   : > { %3000 = vmatpush3.msra.mxu1 %v1735_v15  ;;  %3001 = vmatprep.mubr.msk.f32.mxu1 %vm4311_vm1, %v4312_v13  ;;  %v3140_v4 = vpack.c.bf16 %v2031_v3, %v2030_v1  ;;  %v3149_v15 = vpack.c.bf16 %v2037_v14, %v2036_v12 }
 0x849   : > { %3130 = vmatprep.subr.bf16.mxu1 %v4310_v10 }
 0x84b   : > { %3002 = vmatmul.mubr.msk.f32.vlgmr.msra.gmra.mrb[12].mxu1 %vm1154_vm2, %v3509_v6  ;;  %v2033_v6 = vld [vmem:[#allocation23 + $0x28] sm:$0xff] }
 0x84c   : > { %3023 = vmatprep.mubr.msk.f32.mxu1 %vm4311_vm1, %v4312_v13  ;;  %3132 = vmatpush3.bf16.msra.mxu1 %v3131_v59  ;;  %v3143_v7 = vpack.c.bf16 %v2033_v6, %v2032_v5  ;;  %v2863_v59 = vld [vmem:[#allocation26] ss:$0 sm:$0xff] }
 0x84d   : > { %3133 = vmatprep.subr.bf16.mxu1 %v4310_v10 }
 0x8c2   : > { %v1568_v17 = vpop.xlane.xlu0 %1567 }
 0x8c6   : > { %v1733_v23 = vpop.xlane.xlu0 %1732 }
 0x8ca   : > { %v1238_v37 = vpop.xlane.xlu0 %1237 }
 0x8d1   : > { %v1403_v16 = vpop.xlane.xlu1 %1402 }
 0x8d2   : > { %3512 = vrcp.f32 %v1403_v16  ;;  %v2038_v16 = vld [vmem:[#allocation23 + $0x50] sm:$0xff] }
 0x8d3   : > { %3514 = vrcp.f32 %v1568_v17  ;;  %v2039_v17 = vld [vmem:[#allocation23 + $0x58] sm:$0xff] }
 0x8d4   : > { %3516 = vrcp.f32 %v1733_v23  ;;  %v3152_v18 = vpack.c.bf16 %v2039_v17, %v2038_v16 }
 0x8d5   : > { %3518 = vrcp.f32 %v1238_v37 }
 0x8dc   : > { %v3513_v25 = vpop.eup %3512 }
 0x8dd   : > { %v3515_v29 = vpop.eup %3514 }
 0x8de   : > { %v3517_v33 = vpop.eup %3516 }
 0x8df   : > { %v3519_v38 = vpop.eup %3518 }
 0x8e0   : > { %v1316_v40 = vmul.f32 %v3519_v38, %v5215_v52 }
 0x916   : > { %v1476_v26 = vpop.f32.mrb[8].mxu1 }
 0x917   : > { %v1481_v27 = vmul.f32 %v3513_v25, %v1476_v26  ;;  %v2983_v28 = vpop.f32.mrb[9].mxu1  ;;  %v2858_v26 = vld [vmem:[#allocation17] ss:$0 sm:$0xff] }
 0x918   : > { %v2859_v28 = vld [vmem:[#allocation19] ss:$0 sm:$0xff] }
 0x919   : > { %1813 = vrot.lane.b32.xlu1 %v1481_v27, %s4324_s12 }
 0x91a   : > { %v1641_v30 = vpop.f32.mrb[10].mxu1 }
 0x91b   : > { %v1646_v31 = vmul.f32 %v3515_v29, %v1641_v30  ;;  %v2993_v32 = vpop.f32.mrb[11].mxu1 }
 0x91c   : > { %v2043_v32 = vld [vmem:[#allocation23 + $0x78] sm:$0xff] }
 0x91d   : > { %1817 = vrot.lane.b32.xlu0 %v1646_v31, %s4325_s1  ;;  %v2042_v31 = vld [vmem:[#allocation23 + $0x70] sm:$0xff] }
 0x91e   : > { %v1806_v34 = vpop.f32.mrb[12].mxu1 }
 0x91f   : > { %v1811_v35 = vmul.f32 %v3517_v33, %v1806_v34  ;;  %v3003_v36 = vpop.f32.mrb[13].mxu1  ;;  %v3158_v33 = vpack.c.bf16 %v2043_v32, %v2042_v31  ;;  %v2860_v34 = vld [vmem:[#allocation22] ss:$0 sm:$0xff] }
 0x921   : > { %1821 = vrot.lane.b32.xlu1 %v1811_v35, %s4326_s19 }
 0x98b   : > { %v1814_v39 = vpop.permute.xlu1 %1813 }
 0x98c   : > { %v1824_v42 = vsel %vm1154_vm2, %v1316_v40, %v1814_v39  ;;  %v2862_v39 = vld [vmem:[#allocation25] ss:$0 sm:$0xff] }
 0x98f   : > { %v1818_v41 = vpop.permute.xlu0 %1817 }
 0x990   : > { %v1826_v43 = vsel %vm1825_vm3, %v1824_v42, %v1818_v41 }
 0x993   : > { %v1822_v44 = vpop.permute.xlu1 %1821 }
 0x994   : > { %v1828_v45 = vsel %vm1827_vm4, %v1826_v43, %v1822_v44 }
 0x995   : > { %3013 = vmatmul.mubr.msk.f32.vlgmr.msra.gmra.mrb[4].mxu0 %vm1043_vm0, %v1828_v45 }
 0x996   : > { %3058 = vmatprep.mubr.msk.f32.mxu0 %vm4311_vm1, %v4312_v13  ;;  %3138 = vmatpush3.bf16.msra.mxu0 %v3137_v2 }
 0x997   : > { %3139 = vmatprep.subr.bf16.mxu0 %v4310_v10 }
 0x99a   : > { %3141 = vmatpush3.bf16.msra.mxu0 %v3140_v4  ;;  %v2239_v4 = vlaneseq }
 0x99b   : > { %3142 = vmatprep.subr.bf16.mxu0 %v4310_v10 }
 0x99c   : > { %v2240_v5 = vand.u32 127, %v2239_v4 }
 0x99e   : > { %3144 = vmatpush3.bf16.msra.mxu0 %v3143_v7 }
 0x99f   : > { %3145 = vmatprep.subr.bf16.mxu0 %v4310_v10 }
 0x9a2   : > { %3147 = vmatpush3.bf16.msra.mxu0 %v3146_v11 }
 0x9a3   : > { %3148 = vmatprep.subr.bf16.mxu0 %v4310_v10 }
 0x9a6   : > { %3150 = vmatpush3.bf16.msra.mxu0 %v3149_v15 }
 0x9a7   : > { %3151 = vmatprep.subr.bf16.mxu0 %v4310_v10 }
 0x9aa   : > { %3153 = vmatpush3.bf16.msra.mxu0 %v3152_v18 }
 0x9ab   : > { %3154 = vmatprep.subr.bf16.mxu0 %v4310_v10 }
 0x9ae   : > { %3156 = vmatpush3.bf16.msra.mxu0 %v3155_v21 }
 0x9af   : > { %3157 = vmatprep.subr.bf16.mxu0 %v4310_v10 }
 0x9b2   : > { %3159 = vmatpush3.bf16.msra.mxu0 %v3158_v33 }
 0xa68   : > { %v1909_v47 = vpop.f32.mrb[4].mxu0 }
 0xa69   : > { %v1910_v48 = vadd.f32 %v2856_v46, %v1909_v47  ;;  %v3014_v49 = vpop.f32.mrb[5].mxu0 }
 0xa6a   : > { %v2151_v49 = vld [vmem:[#allocation29] sm:$0xff] }
 0xa6b   : > { %v5245_v50 = vadd.f32 %v1910_v48, %v5163_v0  ;;  %v3134_v0 = vpack.c.bf16 %v1946_v61, %v1945_v60  ;;  %v2864_v61 = vld [vmem:[#allocation28] ss:$0 sm:$0xff] }
 0xa6d   : > { %v1916_v51 = vsel %vm1043_vm0, %v5245_v50, 0.0  ;;  %3135 = vmatpush3.bf16.msra.mxu1 %v3134_v0 }
 0xa6e   : > { %1917 = vadd.xlane.f32.xlu1 %v1916_v51  ;;  %3160 = vmatprep.subr.bf16.mxu1 %v4310_v10  ;;  %v2152_v51 = vld [vmem:[#allocation29 + $0x8] sm:$0xff] }
 0xafb   : > { %v1918_v52 = vpop.xlane.xlu1 %1917 }
 0xafc   : > { %v1919_v53 = vmul.f32 0.03125, %v1918_v52  ;;  %v3161_v52 = vpack.c.bf16 %v2152_v51, %v2151_v49 }
 0xafe   : > { %v1920_v54 = vsub.f32 %v5245_v50, %v1919_v53  ;;  %v2153_v53 = vld [vmem:[#allocation29 + $0x10] sm:$0xff] }
 0xb00   : > { %v1921_v55 = vmul.f32 %v1920_v54, %v1920_v54 }
 0xb02   : > { %v1922_v56 = vsel %vm1043_vm0, %v1921_v55, 0.0 }
 0xb03   : > { %1923 = vadd.xlane.f32.xlu0 %v1922_v56 }
 0xb90   : > { %v1924_v22 = vpop.xlane.xlu0 %1923 }
 0xb91   : > { %v1925_v23 = vmul.f32 0.03125, %v1924_v22 }
 0xb93   : > { %v1926_v24 = vadd.f32 1e-05, %v1925_v23 }
 0xb95   : > { %3520 = vrsqrt.f32 %v1926_v24 }
 0xb9f   : > { %v3521_v25 = vpop.eup %3520 }
 0xba0   : > { %v1928_v27 = vmul.f32 %v3521_v25, %v1920_v54  ;;  %v2154_v54 = vld [vmem:[#allocation29 + $0x18] sm:$0xff] }
 0xba2   : > { %v1935_v29 = vmul.f32 %v2858_v26, %v1928_v27 }
 0xba4   : > { %v1942_v30 = vadd.f32 %v2859_v28, %v1935_v29 }
 0xba6   : > { %3024 = vmatmul.mubr.msk.f32.vlgmr.msra.gmra.mrb[14].mxu1 %vm1043_vm0, %v1942_v30 }
 0xba7   : > { %3069 = vmatprep.mubr.msk.f32.mxu1 %vm4311_vm1, %v4312_v13  ;;  %3162 = vmatpush3.bf16.msra.mxu1 %v3161_v52 }
 0xba8   : > { %3163 = vmatprep.subr.bf16.mxu1 %v4310_v10 }
 0xc79   : > { %v2023_v35 = vpop.f32.mrb[14].mxu1 }
 0xc7a   : > { %v2024_v36 = vadd.f32 %v2860_v34, %v2023_v35  ;;  %v3025_v37 = vpop.f32.mrb[15].mxu1 }
 0xc7c   : > { %v2027_v38 = vmax.f32 %v2024_v36, 0.0 }
 0xc7e   : > { %3059 = vmatmul.mubr.f32.vlgmr.msra.gmra.mrb[6].mxu0 %v2027_v38 }
 0xd51   : > { %v2117_v40 = vpop.f32.mrb[6].mxu0 }
 0xd52   : > { %v2118_v41 = vadd.f32 %v2862_v39, %v2117_v40  ;;  %v3060_v42 = vpop.f32.mrb[7].mxu0 }
 0xd54   : > { %v2121_v43 = vadd.f32 %v2118_v41, %v5245_v50  ;;  %v3164_v50 = vpack.c.bf16 %v2154_v54, %v2153_v53 }
 0xd56   : > { %2258 = vst.msk [vmem:[#allocation2] sm:$0xff] %vm1043_vm0, %v2121_v43  ;;  %v2124_v13 = vsel %vm1043_vm0, %v2121_v43, 0.0  ;;  %3165 = vmatpush3.bf16.msra.mxu1 %v3164_v50 }
 0xd57   : > { %2125 = vadd.xlane.f32.xlu0 %v2124_v13 }
 0xde4   : > { %v2126_v44 = vpop.xlane.xlu0 %2125 }
 0xde5   : > { %v2127_v45 = vmul.f32 0.03125, %v2126_v44 }
 0xde7   : > { %v2128_v46 = vsub.f32 %v2121_v43, %v2127_v45 }
 0xde9   : > { %v2129_v47 = vmul.f32 %v2128_v46, %v2128_v46 }
 0xdeb   : > { %v2130_v48 = vsel %vm1043_vm0, %v2129_v47, 0.0 }
 0xdec   : > { %2131 = vadd.xlane.f32.xlu1 %v2130_v48 }
 0xe79   : > { %v2132_v55 = vpop.xlane.xlu1 %2131 }
 0xe7a   : > { %v2133_v56 = vmul.f32 0.03125, %v2132_v55 }
 0xe7c   : > { %v2134_v57 = vadd.f32 1e-05, %v2133_v56 }
 0xe7e   : > { %3522 = vrsqrt.f32 %v2134_v57 }
 0xe88   : > { %v3523_v58 = vpop.eup %3522 }
 0xe89   : > { %v2136_v60 = vmul.f32 %v3523_v58, %v2128_v46 }
 0xe8b   : > { %v2143_v0 = vmul.f32 %v2863_v59, %v2136_v60 }
 0xe8d   : > { %v2150_v62 = vadd.f32 %v2864_v61, %v2143_v0 }
 0xe8f   : > { %3070 = vmatmul.mubr.msk.f32.vlgmr.msra.gmra.mrb[16].mxu1 %vm1043_vm0, %v2150_v62  ;;  %2259 = vst.msk [vmem:[#allocation3] sm:$0xff] %vm1043_vm0, %v2150_v62 }
 0xf62   : > { %v2231_v1 = vpop.f32.mrb[16].mxu1 }
 0xf63   : > { %v2232_v10 = vadd.f32 %v2865_v63, %v2231_v1  ;;  %v3071_v2 = vpop.f32.mrb[17].mxu1 }
 0xf65   : > { %v2236_v3 = vsel %vm2235_vm5, %v2232_v10, -inf }
 0xf66   : > { %2237 = vmax.xlane.f32.xlu0 %v2236_v3 }
 0xff3   : > { %v2238_v6 = vpop.xlane.xlu0 %2237 }
 0xff4   : > { %vm2241_vm6 = vcmp.ge.f32.partialorder %v2232_v10, %v2238_v6 }
 0xff5   : > { %v2242_v7 = vsel %vm2241_vm6, %v2240_v5, 4 }
 0xff6   : > { %v2243_v8 = vsel %vm2235_vm5, %v2242_v7, 2147483647 }
 0xff7   : > { %v2245_v9 = vshra.s32 %v2243_v8, 16  ;;  %v2244_v12 = vand.u32 65535, %v2243_v8 }
 0xff9   : > { %v2247_v11 = vcvt.s32.f32 %v2245_v9  ;;  %v2246_v15 = vcvt.s32.f32 %v2244_v12 }
 0xffb   : > { %2248 = vmin.xlane.f32.xlu1 %v2247_v11 }
0x1088   : > { %v2249_v14 = vpop.xlane.xlu1 %2248 }
0x1089   : > { %vm2250_vm7 = vcmp.eq.f32.partialorder %v2247_v11, %v2249_v14  ;;  %v2255_v17 = vcvt.f32.s32 %v2249_v14 }
0x108a   : > { %v2251_v16 = vsel %vm2250_vm7, %v2246_v15, inf }
0x108b   : > { %2252 = vmin.xlane.f32.xlu0 %v2251_v16  ;;  %v2256_v19 = vshll.u32 %v2255_v17, 16 }
0x1118   : > { %v2253_v18 = vpop.xlane.xlu0 %2252 }
0x1119   : > { %v2254_v20 = vcvt.f32.s32 %v2253_v18 }
0x111b   : > { %v2257_v21 = vadd.s32 %v2256_v19, %v2254_v20 }
0x111d   : > { %2261 = vst.msk [vmem:[#allocation4] sm:$0xff] %vm2260_vm8, %v2257_v21 }
0x111e PF: > { %v2263_v22 = vld [vmem:[%s5142_s13] sm:$0xff]  ;;  %v2264_v23 = vld [vmem:[%s5142_s13 + $0x8] sm:$0xff]  ;;  %v2265_v24 = vld [vmem:[%s5142_s13 + $0x10] sm:$0xff]  ;;  %v4327_v25 = vmov 0.0|0.0   ;;  %vm4328_vm9 = vmmov 0   ;;  %v4329_v28 = vmov 0.0  }
0x111f   : > { %3166 = vmatprep.subr.bf16.mxu0 %v4327_v25  ;;  %v3167_v26 = vpack.c.bf16 %v2264_v23, %v2263_v22  ;;  %v2266_v27 = vld [vmem:[%s5142_s13 + $0x18] sm:$0xff]  ;;  %3080 = vmatprep.mubr.msk.f32.mxu0 %vm4328_vm9, %v4329_v28  ;;  %v2349_v29 = vld [vmem:[%s5150_s29] sm:$0xff]  ;;  %v2350_v30 = vld [vmem:[%s5150_s29 + $0x8] sm:$0xff]  ;;  %vm2274_vm10 = vcmask 261120   ;;  %s5542_s13 = sld [smem:[#allocation54_spill]]  ;;  %v4330_v56 = vmov 0  }
0x1120   : > { %3172 = vmatprep.subr.bf16.mxu1 %v4327_v25  ;;  %v2351_v31 = vld [vmem:[%s5150_s29 + $0x10] sm:$0xff]  ;;  %v2352_v32 = vld [vmem:[%s5150_s29 + $0x18] sm:$0xff]  ;;  %3115 = vmatprep.mubr.msk.f32.mxu1 %vm4328_vm9, %v4329_v28  ;;  %v3170_v33 = vpack.c.bf16 %v2266_v27, %v2265_v24  ;;  %v3173_v34 = vpack.c.bf16 %v2350_v30, %v2349_v29  ;;  %v2353_v36 = vld [vmem:[%s5150_s29 + $0x20] sm:$0xff] }
0x1121   : > { %3168 = vmatpush3.bf16.msra.mxu0 %v3167_v26  ;;  %v3176_v35 = vpack.c.bf16 %v2352_v32, %v2351_v31  ;;  %v2354_v37 = vld [vmem:[%s5150_s29 + $0x28] sm:$0xff]  ;;  %v2355_v40 = vld [vmem:[%s5150_s29 + $0x30] sm:$0xff]  ;;  %v2356_v41 = vld [vmem:[%s5150_s29 + $0x38] sm:$0xff]  ;;  %3524 = vset.pattern.permute.xlu0 %v4330_v56 }
0x1122   : > { %3169 = vmatprep.subr.bf16.mxu0 %v4327_v25  ;;  %3174 = vmatpush3.bf16.msra.mxu1 %v3173_v34  ;;  %v2262_v38 = vld [vmem:[#allocation3] sm:$0xff]  ;;  %v3179_v39 = vpack.c.bf16 %v2354_v37, %v2353_v36  ;;  %v3182_v42 = vpack.c.bf16 %v2356_v41, %v2355_v40  ;;  %v2359_v45 = vld [vmem:[%s5150_s29 + $0x50] sm:$0xff]  ;;  %v2360_v46 = vld [vmem:[%s5150_s29 + $0x58] sm:$0xff] }
0x1123   : > { %3175 = vmatprep.subr.bf16.mxu1 %v4327_v25  ;;  %v2357_v43 = vld [vmem:[%s5150_s29 + $0x40] sm:$0xff]  ;;  %v2358_v13 = vld [vmem:[%s5150_s29 + $0x48] sm:$0xff]  ;;  %v3188_v47 = vpack.c.bf16 %v2360_v46, %v2359_v45  ;;  %v2363_v52 = vld [vmem:[%s5150_s29 + $0x70] sm:$0xff] }
0x1124   : > { %v3185_v44 = vpack.c.bf16 %v2358_v13, %v2357_v43  ;;  %v2361_v48 = vld [vmem:[%s5150_s29 + $0x60] sm:$0xff]  ;;  %v2362_v49 = vld [vmem:[%s5150_s29 + $0x68] sm:$0xff]  ;;  %v2364_v53 = vld [vmem:[%s5150_s29 + $0x78] sm:$0xff] }
0x1125   : > { %3171 = vmatpush3.bf16.msra.mxu0 %v3170_v33  ;;  %v3191_v51 = vpack.c.bf16 %v2362_v49, %v2361_v48  ;;  %v3194_v54 = vpack.c.bf16 %v2364_v53, %v2363_v52  ;;  %v2442_v50 = vld [vmem:[#allocation4] sm:$0xff]  ;;  %v2443_v55 = vstv %s5542_s13  ;;  %v2867_v58 = vld [vmem:[%s942_s14] ss:$0 sm:$0xff]  ;;  %p2871_p9 = scmp.ne.s32.totalorder %s5542_s13, 3 }
0x1126   : > { %3177 = vmatpush3.bf16.msra.mxu1 %v3176_v35  ;;  %vm2444_vm11 = vcmp.eq.s32.totalorder %v2442_v50, %v2443_v55  ;;  %v2869_v62 = vld [vmem:[%s959_s22] ss:$0 sm:$0xff] }
0x1127   : > { %3178 = vmatprep.subr.bf16.mxu1 %v4327_v25  ;;  %v2870_v57 = vsel %vm2444_vm11, 1.0, %v4329_v28  ;;  %v2447_v3 = vld [vmem:[#allocation2] sm:$0xff] }
0x1128   : > { %3081 = vmatmul.mubr.msk.f32.vlgmr.msra.gmra.mrb[0].mxu0 %vm2274_vm10, %v2262_v38  ;;  %2450 = vperm.xlu0 %3524, %v2870_v57  }
0x112a   : > { %3180 = vmatpush3.bf16.msra.mxu1 %v3179_v39 }
0x112b   : > { %3181 = vmatprep.subr.bf16.mxu1 %v4327_v25 }
0x112e   : > { %3183 = vmatpush3.bf16.msra.mxu1 %v3182_v42 }
0x112f   : > { %3184 = vmatprep.subr.bf16.mxu1 %v4327_v25 }
0x1132   : > { %3186 = vmatpush3.bf16.msra.mxu1 %v3185_v44 }
0x1133   : > { %3187 = vmatprep.subr.bf16.mxu1 %v4327_v25 }
0x1136   : > { %3189 = vmatpush3.bf16.msra.mxu1 %v3188_v47 }
0x1137   : > { %3190 = vmatprep.subr.bf16.mxu1 %v4327_v25 }
0x113a   : > { %3192 = vmatpush3.bf16.msra.mxu1 %v3191_v51 }
0x113b   : > { %3193 = vmatprep.subr.bf16.mxu1 %v4327_v25 }
0x113e   : > { %3195 = vmatpush3.bf16.msra.mxu1 %v3194_v54 }
0x11a7   : > { %v2451_v1 = vpop.permute.xlu0 %2450 }
0x11fb   : > { %v2344_v59 = vpop.f32.mrb[0].mxu0 }
0x11fc   : > { %v2345_v60 = vadd.f32 %v2867_v58, %v2344_v59  ;;  %v3082_v61 = vpop.f32.mrb[1].mxu0 }
0x11fe   : > { %v2348_v0 = vmax.f32 %v2345_v60, 0.0 }
0x1200   : > { %3116 = vmatmul.mubr.f32.vlgmr.msra.gmra.mrb[0].mxu1 %v2348_v0 }
0x12d3   : > { %v2438_v63 = vpop.f32.mrb[0].mxu1 }
0x12d4   : > { %v2439_v10 = vadd.f32 %v2869_v62, %v2438_v63  ;;  %v3117_v2 = vpop.f32.mrb[1].mxu1  ;;  %2459 = sbr.rel (%p2871_p9) target bundleno = 4835 (0x12e3), region = 196 }
0x12d6   : > { %v2453_v4 = vmul.f32 %v2451_v1, %v2439_v10 }
0x12d8   : > { %v2454_v5 = vadd.f32 %v2453_v4, %v2447_v3 }
0x12da   : > { %2455 = vst.msk [vmem:[#allocation2] sm:$0xff] %vm2274_vm10, %v2454_v5 }
0x12e1   : > { %v2460_v6 = vld [vmem:[#allocation2] sm:$0xff] }
0x12e2   : > { %2461 = vst.msk [vmem:[%s5159_s3] sm:$0xff] %vm2274_vm10, %v2460_v6 }
0x12e3 PF: > { %s5543_s14 = sld [smem:[#allocation55_spill]]  ;;  %s2476_s23 = sshll.u32 %s5159_s3, 4  ;;  %s2477_s23 = int_to_ptr.vmem [resolvable:$true] %s2476_s23 }
0x12e4   : > { %s5544_s30 = sld [smem:[#allocation81_spill]]  ;;  %s2463_s18 = scalar_lea.sflag [#allocation7], %s5093_s16 }
0x12e5   : > { %s4123_s11 = scalar_lea.vmem %s2477_s23, 128  ;;  %p5546_p6 = scmp.ne.s32.totalorder %s5510_s28, 0 }
0x12e6   : > { %p4124_p5 = scmp.ne.s32.totalorder %s2477_s23, %s4123_s11  ;;  %s4331_s2 = smov [#allocation38]  }
0x12e7   : > { %s4127_s21 = sshll.u32 %s4331_s2, 4  ;;  %s4128_s21 = int_to_ptr.vmem [resolvable:$false] %s4127_s21 }
0x12e8   : > { %p4125_p0 = pnand %p4124_p5, %p5546_p6  ;;  %s4129_s9 = scalar_lea.vmem %s4128_s21, 256 }
0x12e9   : > { %s2873_s24 = sshll.u32 %s5543_s14, 7  ;;  %p4130_p2 = scmp.lt.s32.totalorder %s2477_s23, %s4128_s21 }
0x12ea   : > { %s5545_s17 = smov %s5544_s30  ;;  %s5304_s0 = scalar_lea.hbm %s5544_s30, %s2873_s24 }
0x12eb   : > { %p4126_p12 = pneg %p4125_p0  ;;  %p4131_p3 = scmp.lt.s32.totalorder %s4129_s9, %s4123_s11 }
0x12ed   : > { %p4132_p4 = por %p4131_p3, %p4130_p2 }
0x12ef   : > { %p4133_p1 = pnand %p4132_p4, %p4126_p12 }
0x12f1   : > { %4136 = shalt.err (!%p4133_p1)
}
0x12f2   : > { %s4137_s16 = scalar_lea.hbm %s5304_s0, 128  ;;  %s4141_s10 = scalar_lea.hbm %s5545_s17, 256 }
0x12f3   : > { %p4138_p11 = scmp.ne.s32.totalorder %s5304_s0, %s4137_s16  ;;  %p4142_p10 = scmp.lt.u32.totalorder %s5304_s0, %s5545_s17 }
0x12f4   : > { %p4143_p8 = scmp.lt.u32.totalorder %s4141_s10, %s4137_s16  ;;  %p4145_p5 = scmp.lt.u32.totalorder %s4137_s16, %s5304_s0 }
0x12f5   : > { %p4139_p7 = pnand %p4138_p11, %p5546_p6 }
0x12f6   : > { %p4144_p9 = por %p4143_p8, %p4142_p10 }
0x12f7   : > { %p4140_p13 = pneg %p4139_p7 }
0x12f8   : > { %p4146_p0 = por %p4145_p5, %p4144_p9 }
0x12fa   : > { %p4147_p12 = pnand %p4146_p0, %p4140_p13 }
0x12fc   : > { %4150 = shalt.err (!%p4147_p12)
}
0x12fd   : > { %3270 = dma.vmem_to_hbm [thread:$0]  (%p5546_p6), %s2477_s23, 128, %s5304_s0, %s2463_s18  }
0x12fe PF: > { %s5547_s19 = sld [smem:[#allocation51_spill]]  ;;  %p3374_p2 = scmp.ge.s32.totalorder %s4285_s5, 2 }
0x12ff   : > { %p5548_p3 = scmp.ne.s32.totalorder %s5511_s8, 0 }
0x1301   : > { %p3338_p4 = pnand %p3374_p2, %p5548_p3 }
0x1304   : > { %s2488_s13 = sand.u32 1, %s5547_s19  }
0x1305   : > { %s2489_s14 = scalar_lea.sflag [#allocation7], %s2488_s13 }
0x1306   : > { %4240 = dma.done.wait (!%p3338_p4), %s2489_s14, 128  }
0x1307   : > { %4242 = vsyncadd (!%p3338_p4), %s2489_s14, 4294967168  ;;  %s51_s5 = sadd.s32 1, %s4285_s5   ;;  %s5549_s28 = sld [smem:[#allocation52_spill]] }
0x1308   : > { %p48_p1 = scmp.ge.s32.totalorder %s51_s5, 10   ;;  %s5550_s3 = sld [smem:[#allocation53_spill]] }
0x1309   : > { %s5551_s0 = sld [smem:[#allocation56_spill]]  ;;  %s5552_s24 = sld [smem:[#allocation58_spill]] }
0x130a   : > { %s5553_s30 = sld [smem:[#allocation59_spill]]  ;;  %s5554_s2 = smov %s4249_s25 }
0x130b   : > { %s5555_s25 = smov %s4253_s26  ;;  %s5556_s26 = smov %s4981_s27 }
0x130c   : > { %s5559_s29 = smov %s4277_s4  ;;  %50 = sbr.rel (!%p48_p1) target bundleno = 44 (0x2c), region = 269 }
0x130d   : > { %s5557_s27 = smov %s5549_s28  ;;  %s5558_s28 = smov %s5568_s6 }
0x130f   : > { %s5560_s4 = smov %s5552_s24 }
0x1313   :  { %2494 = vsyncpa [#allocation6], 1 }
0x1314   :  { %2496 = vsyncpa [#allocation6 + $0x1], 1 }
0x1315   :  { %2497 = vsyncpa [#allocation9], 1 }
0x1316   :  { %2498 = vsyncpa [#allocation12], 1 }
0x1317   :  { %2499 = vsyncpa [#allocation15], 1 }
0x1318   :  { %2500 = vsyncpa [#allocation18], 1 }
0x1319   :  { %2501 = vsyncpa [#allocation21], 1 }
0x131a   :  { %2502 = vsyncpa [#allocation24], 1 }
0x131b   :  { %2503 = vsyncpa [#allocation27], 1 }
0x131c   :  { %2504 = vsyncpa [#allocation30], 1 }
0x131d   :  { %2505 = vsyncpa [#allocation33], 1 }
0x131e   :  { %2507 = vsyncpa [#allocation33 + $0x1], 1 }
0x131f   :  { %2508 = vsyncpa [#allocation36], 1 }
0x1320   :  { %2510 = vsyncpa [#allocation36 + $0x1], 1 }
0x1321   :  { %2511 = vsyncpa [#allocation7], 1 }
0x1322   :  { %2513 = vsyncpa [#allocation7 + $0x1], 1 }

// kernel: tpu_custom_call.1
= control target key start
LH: loop header
LB: loop body
LE: loop exit
PB: predicated region body
PF: predicated region fallthrough
CT: control target
= control target key end

     0   :  { %s5362_s0 = inlined_call_operand.hbm [shape: f32[2,8,32], index: 0, kind: input, shape index: {}]   ;;  %s5363_s1 = inlined_call_operand.hbm [shape: f32[8,8], index: 1, kind: input, shape index: {}]   ;;  %s5364_s2 = inlined_call_operand.hbm [shape: f32[1,32], index: 2, kind: input, shape index: {}]   ;;  %s5365_s3 = inlined_call_operand.hbm [shape: f32[1,32], index: 3, kind: input, shape index: {}]   ;;  %s5366_s4 = inlined_call_operand.hbm [shape: f32[32,96], index: 4, kind: input, shape index: {}]   ;;  %s5367_s5 = inlined_call_operand.hbm [shape: f32[32,32], index: 5, kind: input, shape index: {}]   ;;  %s5368_s6 = inlined_call_operand.hbm [shape: f32[1,32], index: 6, kind: input, shape index: {}]   ;;  %s5369_s7 = inlined_call_operand.hbm [shape: f32[1,32], index: 7, kind: input, shape index: {}]   ;;  %s5370_s8 = inlined_call_operand.hbm [shape: f32[1,32], index: 8, kind: input, shape index: {}]   ;;  %s5371_s9 = inlined_call_operand.hbm [shape: f32[32,128], index: 9, kind: input, shape index: {}]   ;;  %s5372_s10 = inlined_call_operand.hbm [shape: f32[1,128], index: 10, kind: input, shape index: {}]   ;;  %s5373_s11 = inlined_call_operand.hbm [shape: f32[128,32], index: 11, kind: input, shape index: {}]   ;;  %s5374_s12 = inlined_call_operand.hbm [shape: f32[1,32], index: 12, kind: input, shape index: {}]   ;;  %s5375_s13 = inlined_call_operand.hbm [shape: f32[1,32], index: 13, kind: input, shape index: {}]   ;;  %s5376_s14 = inlined_call_operand.hbm [shape: f32[1,32], index: 14, kind: input, shape index: {}]   ;;  %s5377_s15 = inlined_call_operand.hbm [shape: f32[32,4], index: 15, kind: input, shape index: {}]   ;;  %s5378_s16 = inlined_call_operand.hbm [shape: f32[1,4], index: 16, kind: input, shape index: {}]   ;;  %s5379_s17 = inlined_call_operand.hbm [shape: f32[4,32,128], index: 17, kind: input, shape index: {}]   ;;  %s5380_s18 = inlined_call_operand.hbm [shape: f32[4,1,128], index: 18, kind: input, shape index: {}]   ;;  %s5381_s19 = inlined_call_operand.hbm [shape: f32[4,128,32], index: 19, kind: input, shape index: {}]   ;;  %s5382_s20 = inlined_call_operand.hbm [shape: f32[4,1,32], index: 20, kind: input, shape index: {}]   ;;  %s5383_s21 = inlined_call_operand.hbm [shape: f32[2,8,32], index: 21, kind: output, shape index: {}]  }
   0x1   :  { %5437 = sst [smem:[#allocation60_spill]] %s5362_s0 }
   0x2   :  { %5438 = sst [smem:[#allocation61_spill]] %s5363_s1 }
   0x3   :  { %5439 = sst [smem:[#allocation62_spill]] %s5364_s2 }
   0x4   :  { %5440 = sst [smem:[#allocation63_spill]] %s5365_s3 }
   0x5   :  { %5441 = sst [smem:[#allocation64_spill]] %s5366_s4 }
   0x6   :  { %5442 = sst [smem:[#allocation65_spill]] %s5367_s5 }
   0x7   :  { %5443 = sst [smem:[#allocation66_spill]] %s5368_s6 }
   0x8   :  { %5444 = sst [smem:[#allocation67_spill]] %s5369_s7 }
   0x9   :  { %5445 = sst [smem:[#allocation68_spill]] %s5370_s8 }
   0xa   :  { %5446 = sst [smem:[#allocation69_spill]] %s5371_s9 }
   0xb   :  { %5447 = sst [smem:[#allocation70_spill]] %s5372_s10 }
   0xc   :  { %5448 = sst [smem:[#allocation71_spill]] %s5373_s11 }
   0xd   :  { %5449 = sst [smem:[#allocation72_spill]] %s5374_s12 }
   0xe   :  { %5450 = sst [smem:[#allocation73_spill]] %s5375_s13 }
   0xf   :  { %5451 = sst [smem:[#allocation74_spill]] %s5376_s14 }
  0x10   :  { %5452 = sst [smem:[#allocation75_spill]] %s5377_s15 }
  0x11   :  { %5453 = sst [smem:[#allocation76_spill]] %s5378_s16 }
  0x12   :  { %5454 = sst [smem:[#allocation77_spill]] %s5379_s17 }
  0x13   :  { %5455 = sst [smem:[#allocation78_spill]] %s5380_s18 }
  0x14   :  { %5456 = sst [smem:[#allocation79_spill]] %s5381_s19 }
  0x15   :  { %5457 = sst [smem:[#allocation80_spill]] %s5382_s20 }
  0x16   :  { %5458 = sst [smem:[#allocation81_spill]] %s5383_s21 }
  0x17   :  { %26 = vsyncpa [#allocation6], 0 }
  0x18   :  { %28 = vsyncpa [#allocation6 + $0x1], 0 }
  0x19   :  { %29 = vsyncpa [#allocation9], 0 }
  0x1a   :  { %30 = vsyncpa [#allocation12], 0 }
  0x1b   :  { %31 = vsyncpa [#allocation15], 0 }
  0x1c   :  { %32 = vsyncpa [#allocation18], 0 }
  0x1d   :  { %33 = vsyncpa [#allocation21], 0 }
  0x1e   :  { %34 = vsyncpa [#allocation24], 0 }
  0x1f   :  { %35 = vsyncpa [#allocation27], 0 }
  0x20   :  { %36 = vsyncpa [#allocation30], 0 }
  0x21   :  { %37 = vsyncpa [#allocation33], 0 }
  0x22   :  { %39 = vsyncpa [#allocation33 + $0x1], 0 }
  0x23   :  { %40 = vsyncpa [#allocation36], 0 }
  0x24   :  { %42 = vsyncpa [#allocation36 + $0x1], 0 }
  0x25   :  { %43 = vsyncpa [#allocation7], 0 }
  0x26   :  { %45 = vsyncpa [#allocation7 + $0x1], 0  ;;  %s4442_s2 = smov 0   ;;  %s4444_s25 = smov 0  }
  0x27   :  { %s4446_s26 = smov 0   ;;  %s4448_s27 = smov 0  }
  0x28   :  { %s4450_s3 = smov 0   ;;  %s4452_s28 = smov 0  }
  0x29   :  { %s4454_s29 = smov 0   ;;  %s4456_s0 = smov 0  }
  0x2a   :  { %s4458_s4 = smov 0   ;;  %s4460_s30 = smov 0  }
  0x2b   :  { %s4462_s5 = smov 0  }
  0x2c LB: > { %5459 = sst [smem:[#allocation51_spill]] %s4257_s27  ;;  %s4498_s22 = sadd.s32 4294967295, %s4285_s5   ;;  %s4285_s5 = sphi %s4462_s5, %s51_s5   ;;  %s4281_s30 = sphi %s4460_s30, %s5553_s30   ;;  %s4277_s4 = sphi %s4458_s4, %s5560_s4   ;;  %s4273_s0 = sphi %s4456_s0, %s5551_s0   ;;  %s4269_s29 = sphi %s4454_s29, %s5559_s29   ;;  %s4265_s28 = sphi %s4452_s28, %s5558_s28   ;;  %s4261_s3 = sphi %s4450_s3, %s5550_s3   ;;  %s4257_s27 = sphi %s4448_s27, %s5557_s27   ;;  %s4253_s26 = sphi %s4446_s26, %s5556_s26   ;;  %s4249_s25 = sphi %s4444_s25, %s5555_s25   ;;  %s4245_s2 = sphi %s4442_s2, %s5554_s2  }
  0x2d   : > { %5460 = sst [smem:[#allocation52_spill]] %s4261_s3  ;;  %p2791_p0 = scmp.ge.s32.totalorder %s4285_s5, 1 }
  0x2e   : > { %5461 = sst [smem:[#allocation53_spill]] %s4265_s28  ;;  %p5401_p1 = scmp.eq.s32.totalorder %s4498_s22, 0 }
  0x2f   : > { %5462 = sst [smem:[#allocation54_spill]] %s4269_s29  ;;  %p560_p2 = scmp.lt.s32.totalorder %s4285_s5, 9 }
  0x30   : > { %5463 = sst [smem:[#allocation55_spill]] %s4273_s0  ;;  %s4287_s1 = smov [#allocation8]  }
  0x31   : > { %5464 = sst [smem:[#allocation56_spill]] %s4281_s30  ;;  %p4503_p3 = pnand %p2791_p0, %p560_p2 }
  0x32   : > { %s573_s24 = sshll.u32 %s4287_s1, 4  ;;  %s4288_s21 = smov [#allocation11]   ;;  %s574_s24 = int_to_ptr.vmem [resolvable:$true] %s573_s24 }
  0x33   : > { %s5465_s23 = scalar_select %p4503_p3, 1, 0 }
  0x34   : > { %p3272_p4 = pneg %p4503_p3  ;;  %s595_s0 = sshll.u32 %s4288_s21, 4  ;;  %s4515_s0 = int_to_ptr.vmem [resolvable:$true] %s595_s0 }
  0x35   : > { %5466 = sst [smem:[#allocation57_spill]] %s5465_s23  ;;  %s4289_s20 = smov [#allocation14]  }
  0x36   : > { %p4511_p5 = pnand %p3272_p4, %p5401_p1  ;;  %s4517_s18 = sshll.u32 %s4289_s20, 4  ;;  %s619_s18 = int_to_ptr.vmem [resolvable:$true] %s4517_s18 }
  0x37   : > { %s5468_s28 = sld [smem:[#allocation61_spill]] }
  0x38   : > { %s5467_s29 = scalar_select %p4511_p5, 1, 0 }
  0x39   : > { %p4527_p7 = pneg %p4511_p5 }
  0x3b   : > { %s5470_s21 = scalar_select %p4527_p7, 1, 0 }
  0x3d   : > { %s5469_s16 = smov %s5468_s28  ;;  %s3525_s1 = scalar_lea.hbm %s5468_s28, 128 }
  0x3e   : > { %p3526_p6 = scmp.ne.s32.totalorder %s5469_s16, %s3525_s1  ;;  %p3532_p10 = scmp.lt.u32.totalorder %s3525_s1, %s5469_s16 }
  0x40   : > { %p3528_p8 = pnand %p4527_p7, %p3526_p6 }
  0x42   : > { %p3529_p9 = pneg %p3528_p8 }
  0x44   : > { %p3534_p11 = pnand %p3532_p10, %p3529_p9 }
  0x46   : > { %3537 = shalt.err (!%p3534_p11)
}
  0x47   : > { %s3538_s27 = scalar_lea.vmem %s574_s24, 128  ;;  %p3546_p2 = scmp.lt.s32.totalorder %s574_s24, %s574_s24 }
  0x48   : > { %p3539_p12 = scmp.ne.s32.totalorder %s574_s24, %s3538_s27  ;;  %p3547_p4 = scmp.lt.s32.totalorder %s3538_s27, %s3538_s27 }
  0x4a   : > { %p3541_p13 = pnand %p3539_p12, %p4527_p7  ;;  %p3548_p1 = por %p3547_p4, %p3546_p2 }
  0x4c   : > { %p3542_p0 = pneg %p3541_p13 }
  0x4e   : > { %p3549_p3 = pnand %p3548_p1, %p3542_p0 }
  0x50   : > { %3552 = shalt.err (!%p3549_p3)
}
  0x51   : > { %3275 = dma.hbm_to_vmem [thread:$0]  (!%p4511_p5), %s5469_s16, 128, %s574_s24, [#allocation9]  }
  0x52   : > { %s5471_s23 = sld [smem:[#allocation63_spill]] }
  0x58   : > { %s3553_s1 = scalar_lea.hbm %s5471_s23, 16 }
  0x59   : > { %p3554_p6 = scmp.ne.s32.totalorder %s5471_s23, %s3553_s1  ;;  %p3560_p1 = scmp.lt.u32.totalorder %s3553_s1, %s5471_s23 }
  0x5b   : > { %p3556_p8 = pnand %p3554_p6, %p4527_p7 }
  0x5d   : > { %p3557_p9 = pneg %p3556_p8 }
  0x5f   : > { %p3562_p3 = pnand %p3560_p1, %p3557_p9 }
  0x61   : > { %3565 = shalt.err (!%p3562_p3)
}
  0x62   : > { %s3566_s24 = scalar_lea.vmem %s4515_s0, 16  ;;  %s3573_s12 = scalar_lea.vmem %s4515_s0, 32 }
  0x63   : > { %p3567_p10 = scmp.ne.s32.totalorder %s4515_s0, %s3566_s24  ;;  %p3574_p13 = scmp.lt.s32.totalorder %s4515_s0, %s4515_s0 }
  0x64   : > { %p3575_p0 = scmp.lt.s32.totalorder %s3573_s12, %s3566_s24 }
  0x65   : > { %p3569_p11 = pnand %p3567_p10, %p4527_p7 }
  0x66   : > { %p3576_p2 = por %p3575_p0, %p3574_p13 }
  0x67   : > { %p3570_p12 = pneg %p3569_p11 }
  0x69   : > { %p3577_p4 = pnand %p3576_p2, %p3570_p12 }
  0x6b   : > { %3580 = shalt.err (!%p3577_p4)
}
  0x6c   : > { %3281 = dma.hbm_to_vmem [thread:$0]  (!%p4511_p5), %s5471_s23, 16, %s4515_s0, [#allocation12]  }
  0x6d   : > { %s5472_s30 = sld [smem:[#allocation65_spill]] }
  0x73   : > { %s5473_s1 = smov %s5472_s30  ;;  %s3581_s20 = scalar_lea.hbm %s5472_s30, 512 }
  0x74   : > { %p3582_p6 = scmp.ne.s32.totalorder %s5473_s1, %s3581_s20  ;;  %p3588_p1 = scmp.lt.u32.totalorder %s3581_s20, %s5473_s1 }
  0x76   : > { %p3584_p8 = pnand %p3582_p6, %p4527_p7 }
  0x78   : > { %p3585_p9 = pneg %p3584_p8 }
  0x7a   : > { %p3590_p3 = pnand %p3588_p1, %p3585_p9 }
  0x7c   : > { %3593 = shalt.err (!%p3590_p3)
}
  0x7d   : > { %s3594_s10 = scalar_lea.vmem %s619_s18, 512  ;;  %p3602_p13 = scmp.lt.s32.totalorder %s619_s18, %s619_s18 }
  0x7e   : > { %p3595_p10 = scmp.ne.s32.totalorder %s619_s18, %s3594_s10  ;;  %p3603_p0 = scmp.lt.s32.totalorder %s3594_s10, %s3594_s10 }
  0x80   : > { %p3597_p11 = pnand %p3595_p10, %p4527_p7  ;;  %p3604_p2 = por %p3603_p0, %p3602_p13 }
  0x82   : > { %p3598_p12 = pneg %p3597_p11 }
  0x84   : > { %p3605_p4 = pnand %p3604_p2, %p3598_p12 }
  0x86   : > { %3608 = shalt.err (!%p3605_p4)
}
  0x87   : > { %s4290_s16 = smov 128   ;;  %s4291_s0 = smov 8  }
  0x88   : > { %3287 = dma.hbm_to_vmem [thread:$0]  (!%p4511_p5), %s5473_s1, 512, %s619_s18, [#allocation15], %s4290_s16, %s4290_s16, %s4291_s0  }
  0x89   : > { %s4292_s14 = smov [#allocation17]   ;;  %s4293_s20 = smov [#allocation20]  }
  0x8a   : > { %s643_s30 = sshll.u32 %s4292_s14, 4  ;;  %s664_s27 = sshll.u32 %s4293_s20, 4  ;;  %s644_s30 = int_to_ptr.vmem [resolvable:$true] %s643_s30  ;;  %s665_s27 = int_to_ptr.vmem [resolvable:$true] %s664_s27 }
  0x8b   : > { %s5474_s7 = sld [smem:[#allocation67_spill]] }
  0x91   : > { %s3609_s10 = scalar_lea.hbm %s5474_s7, 16 }
  0x92   : > { %p3610_p6 = scmp.ne.s32.totalorder %s5474_s7, %s3609_s10  ;;  %p3616_p1 = scmp.lt.u32.totalorder %s3609_s10, %s5474_s7 }
  0x94   : > { %p3612_p8 = pnand %p3610_p6, %p4527_p7 }
  0x96   : > { %p3613_p9 = pneg %p3612_p8 }
  0x98   : > { %p3618_p3 = pnand %p3616_p1, %p3613_p9 }
  0x9a   : > { %3621 = shalt.err (!%p3618_p3)
}
  0x9b   : > { %s3622_s18 = scalar_lea.vmem %s644_s30, 16  ;;  %s3629_s3 = scalar_lea.vmem %s644_s30, 32 }
  0x9c   : > { %p3623_p10 = scmp.ne.s32.totalorder %s644_s30, %s3622_s18  ;;  %p3630_p13 = scmp.lt.s32.totalorder %s644_s30, %s644_s30 }
  0x9d   : > { %p3631_p0 = scmp.lt.s32.totalorder %s3629_s3, %s3622_s18 }
  0x9e   : > { %p3625_p11 = pnand %p3623_p10, %p4527_p7 }
  0x9f   : > { %p3632_p2 = por %p3631_p0, %p3630_p13 }
  0xa0   : > { %p3626_p12 = pneg %p3625_p11 }
  0xa2   : > { %p3633_p4 = pnand %p3632_p2, %p3626_p12 }
  0xa4   : > { %3636 = shalt.err (!%p3633_p4)
}
  0xa5   : > { %3293 = dma.hbm_to_vmem [thread:$0]  (!%p4511_p5), %s5474_s7, 16, %s644_s30, [#allocation18]  }
  0xa6   : > { %s5475_s9 = sld [smem:[#allocation69_spill]] }
  0xac   : > { %s3637_s28 = scalar_lea.hbm %s5475_s9, 512 }
  0xad   : > { %p3638_p6 = scmp.ne.s32.totalorder %s5475_s9, %s3637_s28  ;;  %p3644_p1 = scmp.lt.u32.totalorder %s3637_s28, %s5475_s9 }
  0xaf   : > { %p3640_p8 = pnand %p3638_p6, %p4527_p7 }
  0xb1   : > { %p3641_p9 = pneg %p3640_p8 }
  0xb3   : > { %p3646_p3 = pnand %p3644_p1, %p3641_p9 }
  0xb5   : > { %3649 = shalt.err (!%p3646_p3)
}
  0xb6   : > { %s3650_s10 = scalar_lea.vmem %s665_s27, 512  ;;  %p3658_p13 = scmp.lt.s32.totalorder %s665_s27, %s665_s27 }
  0xb7   : > { %p3651_p10 = scmp.ne.s32.totalorder %s665_s27, %s3650_s10  ;;  %p3659_p0 = scmp.lt.s32.totalorder %s3650_s10, %s3650_s10 }
  0xb9   : > { %p3653_p11 = pnand %p3651_p10, %p4527_p7  ;;  %p3660_p2 = por %p3659_p0, %p3658_p13 }
  0xbb   : > { %p3654_p12 = pneg %p3653_p11 }
  0xbd   : > { %p3661_p4 = pnand %p3660_p2, %p3654_p12 }
  0xbf   : > { %3664 = shalt.err (!%p3661_p4)
}
  0xc0   : > { %3299 = dma.hbm_to_vmem [thread:$0]  (!%p4511_p5), %s5475_s9, 512, %s665_s27, [#allocation21], %s4290_s16, %s4290_s16, %s4291_s0  }
  0xc1   : > { %s4294_s3 = smov [#allocation23]   ;;  %s4295_s23 = smov [#allocation26]  }
  0xc2   : > { %s688_s8 = sshll.u32 %s4294_s3, 4  ;;  %s713_s6 = sshll.u32 %s4295_s23, 4  ;;  %s689_s8 = int_to_ptr.vmem [resolvable:$true] %s688_s8  ;;  %s714_s6 = int_to_ptr.vmem [resolvable:$true] %s713_s6 }
  0xc3   : > { %s5476_s11 = sld [smem:[#allocation71_spill]] }
  0xc9   : > { %s3665_s14 = scalar_lea.hbm %s5476_s11, 2048 }
  0xca   : > { %p3666_p6 = scmp.ne.s32.totalorder %s5476_s11, %s3665_s14  ;;  %p3672_p1 = scmp.lt.u32.totalorder %s3665_s14, %s5476_s11 }
  0xcc   : > { %p3668_p8 = pnand %p3666_p6, %p4527_p7 }
  0xce   : > { %p3669_p9 = pneg %p3668_p8 }
  0xd0   : > { %p3674_p3 = pnand %p3672_p1, %p3669_p9 }
  0xd2   : > { %3677 = shalt.err (!%p3674_p3)
}
  0xd3   : > { %s3678_s27 = scalar_lea.vmem %s689_s8, 2048  ;;  %p3686_p13 = scmp.lt.s32.totalorder %s689_s8, %s689_s8 }
  0xd4   : > { %p3679_p10 = scmp.ne.s32.totalorder %s689_s8, %s3678_s27  ;;  %p3687_p0 = scmp.lt.s32.totalorder %s3678_s27, %s3678_s27 }
  0xd6   : > { %p3681_p11 = pnand %p3679_p10, %p4527_p7  ;;  %p3688_p2 = por %p3687_p0, %p3686_p13 }
  0xd8   : > { %p3682_p12 = pneg %p3681_p11 }
  0xda   : > { %p3689_p4 = pnand %p3688_p2, %p3682_p12 }
  0xdc   : > { %3692 = shalt.err (!%p3689_p4)
}
  0xdd   : > { %3305 = dma.hbm_to_vmem [thread:$0]  (!%p4511_p5), %s5476_s11, 2048, %s689_s8, [#allocation24], %s4290_s16, %s4290_s16, %s4291_s0  }
  0xde   : > { %s5477_s13 = sld [smem:[#allocation73_spill]] }
  0xe4   : > { %s3693_s19 = scalar_lea.hbm %s5477_s13, 16 }
  0xe5   : > { %p3694_p6 = scmp.ne.s32.totalorder %s5477_s13, %s3693_s19  ;;  %p3700_p1 = scmp.lt.u32.totalorder %s3693_s19, %s5477_s13 }
  0xe7   : > { %p3696_p8 = pnand %p3694_p6, %p4527_p7 }
  0xe9   : > { %p3697_p9 = pneg %p3696_p8 }
  0xeb   : > { %p3702_p3 = pnand %p3700_p1, %p3697_p9 }
  0xed   : > { %3705 = shalt.err (!%p3702_p3)
}
  0xee   : > { %s3706_s12 = scalar_lea.vmem %s714_s6, 16  ;;  %s3713_s8 = scalar_lea.vmem %s714_s6, 32 }
  0xef   : > { %p3707_p10 = scmp.ne.s32.totalorder %s714_s6, %s3706_s12  ;;  %p3714_p13 = scmp.lt.s32.totalorder %s714_s6, %s714_s6 }
  0xf0   : > { %p3715_p0 = scmp.lt.s32.totalorder %s3713_s8, %s3706_s12 }
  0xf1   : > { %p3709_p11 = pnand %p3707_p10, %p4527_p7 }
  0xf2   : > { %p3716_p2 = por %p3715_p0, %p3714_p13 }
  0xf3   : > { %p3710_p12 = pneg %p3709_p11 }
  0xf5   : > { %p3717_p4 = pnand %p3716_p2, %p3710_p12 }
  0xf7   : > { %3720 = shalt.err (!%p3717_p4)
}
  0xf8   : > { %3311 = dma.hbm_to_vmem [thread:$0]  (!%p4511_p5), %s5477_s13, 16, %s714_s6, [#allocation27]  }
  0xf9   : > { %s4296_s30 = smov [#allocation29]   ;;  %s5478_s15 = sld [smem:[#allocation75_spill]] }
  0xfa   : > { %s734_s18 = sshll.u32 %s4296_s30, 4  ;;  %s735_s18 = int_to_ptr.vmem [resolvable:$true] %s734_s18 }
  0xff   : > { %s3721_s19 = scalar_lea.hbm %s5478_s15, 512 }
 0x100   : > { %p3722_p6 = scmp.ne.s32.totalorder %s5478_s15, %s3721_s19  ;;  %p3728_p1 = scmp.lt.u32.totalorder %s3721_s19, %s5478_s15 }
 0x102   : > { %p3724_p8 = pnand %p3722_p6, %p4527_p7 }
 0x104   : > { %p3725_p9 = pneg %p3724_p8 }
 0x106   : > { %p3730_p3 = pnand %p3728_p1, %p3725_p9 }
 0x108   : > { %3733 = shalt.err (!%p3730_p3)
}
 0x109   : > { %s3734_s6 = scalar_lea.vmem %s735_s18, 512  ;;  %p3742_p13 = scmp.lt.s32.totalorder %s735_s18, %s735_s18 }
 0x10a   : > { %p3735_p10 = scmp.ne.s32.totalorder %s735_s18, %s3734_s6  ;;  %p3743_p0 = scmp.lt.s32.totalorder %s3734_s6, %s3734_s6 }
 0x10c   : > { %p3737_p11 = pnand %p3735_p10, %p4527_p7  ;;  %p3744_p2 = por %p3743_p0, %p3742_p13 }
 0x10e   : > { %p3738_p12 = pneg %p3737_p11 }
 0x110   : > { %p3745_p4 = pnand %p3744_p2, %p3738_p12 }
 0x112   : > { %3748 = shalt.err (!%p3745_p4)
}
 0x113   : > { %3317 = dma.hbm_to_vmem [thread:$0]  (!%p4511_p5), %s5478_s15, 512, %s735_s18, [#allocation30], %s4290_s16, %s4290_s16, %s4291_s0  }
 0x114   : > { %p5411_p6 = scmp.eq.s32.totalorder %s4285_s5, 0  ;;  %p439_p8 = scmp.ne.s32.totalorder %s4253_s26, %s4249_s25 }
 0x115   : > { %p445_p9 = scmp.ne.s32.totalorder %s4249_s25, %s4245_s2  ;;  %p5410_p1 = scmp.lt.s32.totalorder %s4285_s5, 8 }
 0x116   : > { %s5412_s27 = sand.u32 1, %s4285_s5   ;;  %p441_p3 = por %p439_p8, %p5411_p6 }
 0x117   : > { %p5479_p10 = scmp.eq.s32.totalorder %s4498_s22, 0  ;;  %s4705_s3 = sand.u32 1, %s4253_s26  }
 0x118   : > { %s2811_s23 = sshll.u32 %s4705_s3, 5  ;;  %s2876_s18 = sshll.u32 %s4277_s4, 9 }
 0x119   : > { %p4700_p11 = por %p445_p9, %p5479_p10  ;;  %s5481_s17 = sld [smem:[#allocation77_spill]] }
 0x11a   : > { %s781_s2 = scalar_lea.vmem [#allocation32], %s2811_s23  ;;  %p4716_p12 = pnand %p5410_p1, %p441_p3 }
 0x11b   : > { %s5480_s30 = scalar_select %p4700_p11, 1, 0 }
 0x11c   : > { %s788_s20 = sshll.u32 %s781_s2, 4  ;;  %s2815_s6 = sshll.u32 %s4705_s3, 7  ;;  %s4720_s20 = int_to_ptr.vmem [resolvable:$true] %s788_s20 }
 0x11d   : > { %s5482_s24 = scalar_select %p4716_p12, 1, 0 }
 0x11e   : > { %s4725_s12 = scalar_lea.sflag [#allocation33], %s5412_s27  ;;  %p4731_p0 = pneg %p4716_p12 }
 0x11f   : > { %s4712_s14 = scalar_lea.hbm %s5481_s17, %s2876_s18  ;;  %s3754_s28 = scalar_lea.hbm %s5481_s17, 2048 }
 0x120   : > { %s3749_s8 = scalar_lea.hbm %s4712_s14, 512  ;;  %p3755_p8 = scmp.lt.u32.totalorder %s4712_s14, %s5481_s17 }
 0x121   : > { %p3750_p13 = scmp.ne.s32.totalorder %s4712_s14, %s3749_s8  ;;  %p3756_p9 = scmp.lt.u32.totalorder %s3754_s28, %s3749_s8 }
 0x122   : > { %s5483_s18 = scalar_select %p4731_p0, 1, 0 }
 0x123   : > { %p3752_p2 = pnand %p4731_p0, %p3750_p13  ;;  %p3757_p3 = por %p3756_p9, %p3755_p8 }
 0x124   : > { %p3758_p10 = scmp.lt.u32.totalorder %s3749_s8, %s4712_s14 }
 0x125   : > { %p3753_p4 = pneg %p3752_p2 }
 0x126   : > { %p3759_p1 = por %p3758_p10, %p3757_p3 }
 0x128   : > { %p3760_p6 = pnand %p3759_p1, %p3753_p4 }
 0x12a   : > { %3763 = shalt.err (!%p3760_p6)
}
 0x12b   : > { %s3764_s27 = scalar_lea.vmem %s4720_s20, 512  ;;  %s4297_s23 = smov [#allocation32]  }
 0x12c   : > { %p3765_p13 = scmp.ne.s32.totalorder %s4720_s20, %s3764_s27  ;;  %s3769_s19 = sshll.u32 %s4297_s23, 4  ;;  %s3770_s19 = int_to_ptr.vmem [resolvable:$false] %s3769_s19 }
 0x12d   : > { %s3771_s10 = scalar_lea.vmem %s3770_s19, 1024  ;;  %p3772_p5 = scmp.lt.s32.totalorder %s4720_s20, %s3770_s19 }
 0x12e   : > { %p3767_p2 = pnand %p3765_p13, %p4731_p0  ;;  %p3773_p7 = scmp.lt.s32.totalorder %s3771_s10, %s3764_s27 }
 0x130   : > { %p3768_p11 = pneg %p3767_p2  ;;  %p3774_p8 = por %p3773_p7, %p3772_p5 }
 0x132   : > { %p3775_p9 = pnand %p3774_p8, %p3768_p11 }
 0x134   : > { %3778 = shalt.err (!%p3775_p9)
}
 0x135   : > { %3327 = dma.hbm_to_vmem [thread:$0]  (!%p4716_p12), %s4712_s14, 512, %s4720_s20, %s4725_s12, %s4290_s16, %s4290_s16, %s4291_s0  }
 0x136   : > { %s2877_s8 = sshll.u32 %s4277_s4, 11  ;;  %s5484_s27 = sld [smem:[#allocation79_spill]] }
 0x137   : > { %s819_s10 = scalar_lea.vmem [#allocation35], %s2815_s6  ;;  %s5486_s7 = sand.u32 1, %s4285_s5  }
 0x138   : > { %s826_s1 = sshll.u32 %s819_s10, 4  ;;  %s4770_s9 = scalar_lea.sflag [#allocation36], %s5486_s7  ;;  %s4766_s1 = int_to_ptr.vmem [resolvable:$true] %s826_s1 }
 0x13c   : > { %s5485_s23 = smov %s5484_s27  ;;  %s4762_s19 = scalar_lea.hbm %s5484_s27, %s2877_s8 }
 0x13d   : > { %s3779_s11 = scalar_lea.hbm %s4762_s19, 2048  ;;  %s3784_s8 = scalar_lea.hbm %s5485_s23, 8192 }
 0x13e   : > { %p3780_p5 = scmp.ne.s32.totalorder %s4762_s19, %s3779_s11  ;;  %p3785_p1 = scmp.lt.u32.totalorder %s4762_s19, %s5485_s23 }
 0x13f   : > { %p3786_p11 = scmp.lt.u32.totalorder %s3784_s8, %s3779_s11  ;;  %p3788_p3 = scmp.lt.u32.totalorder %s3779_s11, %s4762_s19 }
 0x140   : > { %p3782_p7 = pnand %p3780_p5, %p4731_p0 }
 0x141   : > { %p3787_p4 = por %p3786_p11, %p3785_p1 }
 0x142   : > { %p3783_p6 = pneg %p3782_p7 }
 0x143   : > { %p3789_p10 = por %p3788_p3, %p3787_p4 }
 0x145   : > { %p3790_p13 = pnand %p3789_p10, %p3783_p6 }
 0x147   : > { %3793 = shalt.err (!%p3790_p13)
}
 0x148   : > { %s3794_s7 = scalar_lea.vmem %s4766_s1, 2048  ;;  %s4298_s6 = smov [#allocation35]  }
 0x149   : > { %p3795_p2 = scmp.ne.s32.totalorder %s4766_s1, %s3794_s7  ;;  %s3799_s27 = sshll.u32 %s4298_s6, 4  ;;  %s3800_s27 = int_to_ptr.vmem [resolvable:$false] %s3799_s27 }
 0x14a   : > { %s3801_s10 = scalar_lea.vmem %s3800_s27, 4096  ;;  %p3802_p5 = scmp.lt.s32.totalorder %s4766_s1, %s3800_s27 }
 0x14b   : > { %p3797_p8 = pnand %p3795_p2, %p4731_p0  ;;  %p3803_p7 = scmp.lt.s32.totalorder %s3801_s10, %s3794_s7 }
 0x14d   : > { %p3798_p9 = pneg %p3797_p8  ;;  %p3804_p1 = por %p3803_p7, %p3802_p5 }
 0x14f   : > { %p3805_p11 = pnand %p3804_p1, %p3798_p9 }
 0x151   : > { %3808 = shalt.err (!%p3805_p11)
}
 0x152   : > { %3333 = dma.hbm_to_vmem [thread:$0]  (!%p4716_p12), %s4762_s19, 2048, %s4766_s1, %s4770_s9, %s4290_s16, %s4290_s16, %s4291_s0  }
 0x153   : > { %s4299_s11 = smov [#allocation10]   ;;  %s4300_s20 = smov [#allocation13]  }
 0x154   : > { %s584_s14 = sshll.u32 %s4299_s11, 4  ;;  %s605_s8 = sshll.u32 %s4300_s20, 4  ;;  %s585_s14 = int_to_ptr.vmem [resolvable:$true] %s584_s14  ;;  %s606_s8 = int_to_ptr.vmem [resolvable:$true] %s605_s8 }
 0x155   : > { %s5487_s7 = sld [smem:[#allocation62_spill]]  ;;  %p5488_p4 = scmp.ne.s32.totalorder %s5470_s21, 0 }
 0x15b   : > { %s3809_s6 = scalar_lea.hbm %s5487_s7, 16 }
 0x15c   : > { %p3810_p6 = scmp.ne.s32.totalorder %s5487_s7, %s3809_s6  ;;  %p3816_p13 = scmp.lt.u32.totalorder %s3809_s6, %s5487_s7 }
 0x15e   : > { %p3812_p3 = pnand %p3810_p6, %p5488_p4 }
 0x160   : > { %p3813_p10 = pneg %p3812_p3 }
 0x162   : > { %p3818_p2 = pnand %p3816_p13, %p3813_p10 }
 0x164   : > { %3821 = shalt.err (!%p3818_p2)
}
 0x165   : > { %s3822_s1 = scalar_lea.vmem %s585_s14, 16  ;;  %s3829_s19 = scalar_lea.vmem %s585_s14, 32 }
 0x166   : > { %p3823_p8 = scmp.ne.s32.totalorder %s585_s14, %s3822_s1  ;;  %p3830_p7 = scmp.lt.s32.totalorder %s585_s14, %s585_s14 }
 0x167   : > { %p3831_p1 = scmp.lt.s32.totalorder %s3829_s19, %s3822_s1 }
 0x168   : > { %p3825_p9 = pnand %p3823_p8, %p5488_p4 }
 0x169   : > { %p3832_p11 = por %p3831_p1, %p3830_p7 }
 0x16a   : > { %p3826_p5 = pneg %p3825_p9 }
 0x16c   : > { %p3833_p12 = pnand %p3832_p11, %p3826_p5 }
 0x16e   : > { %3836 = shalt.err (!%p3833_p12)
}
 0x16f   : > { %p5489_p6 = scmp.ne.s32.totalorder %s5467_s29, 0  ;;  %s5490_s28 = sld [smem:[#allocation64_spill]] }
 0x171   : > { %3278 = dma.hbm_to_vmem [thread:$0]  (!%p5489_p6), %s5487_s7, 16, %s585_s14, [#allocation9]  }
 0x175   : > { %s5491_s6 = smov %s5490_s28  ;;  %s3837_s2 = scalar_lea.hbm %s5490_s28, 512 }
 0x176   : > { %p3838_p3 = scmp.ne.s32.totalorder %s5491_s6, %s3837_s2  ;;  %p3844_p12 = scmp.lt.u32.totalorder %s3837_s2, %s5491_s6 }
 0x178   : > { %p3840_p10 = pnand %p3838_p3, %p5488_p4 }
 0x17a   : > { %p3841_p13 = pneg %p3840_p10 }
 0x17c   : > { %p3846_p2 = pnand %p3844_p12, %p3841_p13 }
 0x17e   : > { %3849 = shalt.err (!%p3846_p2)
}
 0x17f   : > { %s3850_s11 = scalar_lea.vmem %s606_s8, 512  ;;  %p3858_p7 = scmp.lt.s32.totalorder %s606_s8, %s606_s8 }
 0x180   : > { %p3851_p8 = scmp.ne.s32.totalorder %s606_s8, %s3850_s11  ;;  %p3859_p1 = scmp.lt.s32.totalorder %s3850_s11, %s3850_s11 }
 0x182   : > { %p3853_p9 = pnand %p3851_p8, %p5488_p4  ;;  %p3860_p11 = por %p3859_p1, %p3858_p7 }
 0x184   : > { %p3854_p5 = pneg %p3853_p9 }
 0x186   : > { %p3861_p0 = pnand %p3860_p11, %p3854_p5 }
 0x188   : > { %3864 = shalt.err (!%p3861_p0)
}
 0x189   : > { %3284 = dma.hbm_to_vmem [thread:$0]  (!%p5489_p6), %s5491_s6, 512, %s606_s8, [#allocation12], %s4290_s16, %s4290_s16, %s4291_s0  }
 0x18a   : > { %s4301_s13 = smov [#allocation16]   ;;  %s4302_s28 = smov [#allocation19]  }
 0x18b   : > { %s632_s15 = sshll.u32 %s4301_s13, 4  ;;  %s654_s2 = sshll.u32 %s4302_s28, 4  ;;  %s633_s15 = int_to_ptr.vmem [resolvable:$true] %s632_s15  ;;  %s655_s2 = int_to_ptr.vmem [resolvable:$true] %s654_s2 }
 0x18c   : > { %s5492_s1 = sld [smem:[#allocation66_spill]] }
 0x192   : > { %s3865_s19 = scalar_lea.hbm %s5492_s1, 16 }
 0x193   : > { %p3866_p0 = scmp.ne.s32.totalorder %s5492_s1, %s3865_s19  ;;  %p3872_p13 = scmp.lt.u32.totalorder %s3865_s19, %s5492_s1 }
 0x195   : > { %p3868_p3 = pnand %p3866_p0, %p5488_p4 }
 0x197   : > { %p3869_p10 = pneg %p3868_p3 }
 0x199   : > { %p3874_p12 = pnand %p3872_p13, %p3869_p10 }
 0x19b   : > { %3877 = shalt.err (!%p3874_p12)
}
 0x19c   : > { %s3878_s16 = scalar_lea.vmem %s633_s15, 16  ;;  %s3885_s0 = scalar_lea.vmem %s633_s15, 32 }
 0x19d   : > { %p3879_p2 = scmp.ne.s32.totalorder %s633_s15, %s3878_s16  ;;  %p3886_p5 = scmp.lt.s32.totalorder %s633_s15, %s633_s15 }
 0x19e   : > { %p3887_p7 = scmp.lt.s32.totalorder %s3885_s0, %s3878_s16 }
 0x19f   : > { %p3881_p8 = pnand %p3879_p2, %p5488_p4 }
 0x1a0   : > { %p3888_p1 = por %p3887_p7, %p3886_p5 }
 0x1a1   : > { %p3882_p9 = pneg %p3881_p8 }
 0x1a3   : > { %p3889_p11 = pnand %p3888_p1, %p3882_p9 }
 0x1a5   : > { %3892 = shalt.err (!%p3889_p11)
}
 0x1a6   : > { %3290 = dma.hbm_to_vmem [thread:$0]  (!%p5489_p6), %s5492_s1, 16, %s633_s15, [#allocation15]  }
 0x1a7   : > { %s5493_s13 = sld [smem:[#allocation68_spill]] }
 0x1ad   : > { %s3893_s28 = scalar_lea.hbm %s5493_s13, 16 }
 0x1ae   : > { %p3894_p0 = scmp.ne.s32.totalorder %s5493_s13, %s3893_s28  ;;  %p3900_p13 = scmp.lt.u32.totalorder %s3893_s28, %s5493_s13 }
 0x1b0   : > { %p3896_p3 = pnand %p3894_p0, %p5488_p4 }
 0x1b2   : > { %p3897_p10 = pneg %p3896_p3 }
 0x1b4   : > { %p3902_p12 = pnand %p3900_p13, %p3897_p10 }
 0x1b6   : > { %3905 = shalt.err (!%p3902_p12)
}
 0x1b7   : > { %s3906_s14 = scalar_lea.vmem %s655_s2, 16  ;;  %s3913_s15 = scalar_lea.vmem %s655_s2, 32 }
 0x1b8   : > { %p3907_p2 = scmp.ne.s32.totalorder %s655_s2, %s3906_s14  ;;  %p3914_p5 = scmp.lt.s32.totalorder %s655_s2, %s655_s2 }
 0x1b9   : > { %p3915_p7 = scmp.lt.s32.totalorder %s3913_s15, %s3906_s14 }
 0x1ba   : > { %p3909_p8 = pnand %p3907_p2, %p5488_p4 }
 0x1bb   : > { %p3916_p1 = por %p3915_p7, %p3914_p5 }
 0x1bc   : > { %p3910_p9 = pneg %p3909_p8 }
 0x1be   : > { %p3917_p11 = pnand %p3916_p1, %p3910_p9 }
 0x1c0   : > { %3920 = shalt.err (!%p3917_p11)
}
 0x1c1   : > { %3296 = dma.hbm_to_vmem [thread:$0]  (!%p5489_p6), %s5493_s13, 16, %s655_s2, [#allocation18]  }
 0x1c2   : > { %s4303_s8 = smov [#allocation22]   ;;  %s4304_s17 = smov [#allocation25]  }
 0x1c3   : > { %s678_s7 = sshll.u32 %s4303_s8, 4  ;;  %s702_s20 = sshll.u32 %s4304_s17, 4  ;;  %s679_s7 = int_to_ptr.vmem [resolvable:$true] %s678_s7  ;;  %s703_s20 = int_to_ptr.vmem [resolvable:$true] %s702_s20 }
 0x1c4   : > { %s5494_s10 = sld [smem:[#allocation70_spill]] }
 0x1ca   : > { %s3921_s19 = scalar_lea.hbm %s5494_s10, 16 }
 0x1cb   : > { %p3922_p0 = scmp.ne.s32.totalorder %s5494_s10, %s3921_s19  ;;  %p3928_p13 = scmp.lt.u32.totalorder %s3921_s19, %s5494_s10 }
 0x1cd   : > { %p3924_p3 = pnand %p3922_p0, %p5488_p4 }
 0x1cf   : > { %p3925_p10 = pneg %p3924_p3 }
 0x1d1   : > { %p3930_p12 = pnand %p3928_p13, %p3925_p10 }
 0x1d3   : > { %3933 = shalt.err (!%p3930_p12)
}
 0x1d4   : > { %s3934_s2 = scalar_lea.vmem %s679_s7, 16  ;;  %s3941_s0 = scalar_lea.vmem %s679_s7, 32 }
 0x1d5   : > { %p3935_p2 = scmp.ne.s32.totalorder %s679_s7, %s3934_s2  ;;  %p3942_p5 = scmp.lt.s32.totalorder %s679_s7, %s679_s7 }
 0x1d6   : > { %p3943_p7 = scmp.lt.s32.totalorder %s3941_s0, %s3934_s2 }
 0x1d7   : > { %p3937_p8 = pnand %p3935_p2, %p5488_p4 }
 0x1d8   : > { %p3944_p1 = por %p3943_p7, %p3942_p5 }
 0x1d9   : > { %p3938_p9 = pneg %p3937_p8 }
 0x1db   : > { %p3945_p11 = pnand %p3944_p1, %p3938_p9 }
 0x1dd   : > { %3948 = shalt.err (!%p3945_p11)
}
 0x1de   : > { %3302 = dma.hbm_to_vmem [thread:$0]  (!%p5489_p6), %s5494_s10, 16, %s679_s7, [#allocation21]  }
 0x1df   : > { %s5495_s19 = sld [smem:[#allocation72_spill]] }
 0x1e5   : > { %s3949_s11 = scalar_lea.hbm %s5495_s19, 16 }
 0x1e6   : > { %p3950_p0 = scmp.ne.s32.totalorder %s5495_s19, %s3949_s11  ;;  %p3956_p13 = scmp.lt.u32.totalorder %s3949_s11, %s5495_s19 }
 0x1e8   : > { %p3952_p3 = pnand %p3950_p0, %p5488_p4 }
 0x1ea   : > { %p3953_p10 = pneg %p3952_p3 }
 0x1ec   : > { %p3958_p12 = pnand %p3956_p13, %p3953_p10 }
 0x1ee   : > { %3961 = shalt.err (!%p3958_p12)
}
 0x1ef   : > { %s3962_s0 = scalar_lea.vmem %s703_s20, 16  ;;  %s3969_s7 = scalar_lea.vmem %s703_s20, 32 }
 0x1f0   : > { %p3963_p2 = scmp.ne.s32.totalorder %s703_s20, %s3962_s0  ;;  %p3970_p5 = scmp.lt.s32.totalorder %s703_s20, %s703_s20 }
 0x1f1   : > { %p3971_p7 = scmp.lt.s32.totalorder %s3969_s7, %s3962_s0 }
 0x1f2   : > { %p3965_p8 = pnand %p3963_p2, %p5488_p4 }
 0x1f3   : > { %p3972_p1 = por %p3971_p7, %p3970_p5 }
 0x1f4   : > { %p3966_p9 = pneg %p3965_p8 }
 0x1f6   : > { %p3973_p11 = pnand %p3972_p1, %p3966_p9 }
 0x1f8   : > { %3976 = shalt.err (!%p3973_p11)
}
 0x1f9   : > { %3308 = dma.hbm_to_vmem [thread:$0]  (!%p5489_p6), %s5495_s19, 16, %s703_s20, [#allocation24]  }
 0x1fa   : > { %s4305_s28 = smov [#allocation28]   ;;  %s4306_s11 = smov [#allocation31]  }
 0x1fb   : > { %s724_s27 = sshll.u32 %s4305_s28, 4  ;;  %s748_s14 = sshll.u32 %s4306_s11, 4  ;;  %s725_s27 = int_to_ptr.vmem [resolvable:$true] %s724_s27  ;;  %s749_s14 = int_to_ptr.vmem [resolvable:$true] %s748_s14 }
 0x1fc   : > { %s5496_s2 = sld [smem:[#allocation74_spill]] }
 0x202   : > { %s5497_s1 = smov %s5496_s2  ;;  %s3977_s6 = scalar_lea.hbm %s5496_s2, 16 }
 0x203   : > { %p3978_p0 = scmp.ne.s32.totalorder %s5497_s1, %s3977_s6  ;;  %p3984_p13 = scmp.lt.u32.totalorder %s3977_s6, %s5497_s1 }
 0x205   : > { %p3980_p3 = pnand %p3978_p0, %p5488_p4 }
 0x207   : > { %p3981_p10 = pneg %p3980_p3 }
 0x209   : > { %p3986_p12 = pnand %p3984_p13, %p3981_p10 }
 0x20b   : > { %3989 = shalt.err (!%p3986_p12)
}
 0x20c   : > { %s3990_s20 = scalar_lea.vmem %s725_s27, 16  ;;  %s3997_s17 = scalar_lea.vmem %s725_s27, 32 }
 0x20d   : > { %p3991_p2 = scmp.ne.s32.totalorder %s725_s27, %s3990_s20  ;;  %p3998_p5 = scmp.lt.s32.totalorder %s725_s27, %s725_s27 }
 0x20e   : > { %p3999_p7 = scmp.lt.s32.totalorder %s3997_s17, %s3990_s20 }
 0x20f   : > { %p3993_p8 = pnand %p3991_p2, %p5488_p4 }
 0x210   : > { %p4000_p1 = por %p3999_p7, %p3998_p5 }
 0x211   : > { %p3994_p9 = pneg %p3993_p8 }
 0x213   : > { %p4001_p11 = pnand %p4000_p1, %p3994_p9 }
 0x215   : > { %4004 = shalt.err (!%p4001_p11)
}
 0x216   : > { %3314 = dma.hbm_to_vmem [thread:$0]  (!%p5489_p6), %s5497_s1, 16, %s725_s27, [#allocation27]  }
 0x217   : > { %s5498_s15 = sld [smem:[#allocation76_spill]] }
 0x21d   : > { %s4005_s16 = scalar_lea.hbm %s5498_s15, 16 }
 0x21e   : > { %p4006_p0 = scmp.ne.s32.totalorder %s5498_s15, %s4005_s16  ;;  %p4012_p13 = scmp.lt.u32.totalorder %s4005_s16, %s5498_s15 }
 0x220   : > { %p4008_p3 = pnand %p4006_p0, %p5488_p4 }
 0x222   : > { %p4009_p10 = pneg %p4008_p3 }
 0x224   : > { %p4014_p12 = pnand %p4012_p13, %p4009_p10 }
 0x226   : > { %4017 = shalt.err (!%p4014_p12)
}
 0x227   : > { %s4018_s20 = scalar_lea.vmem %s749_s14, 16  ;;  %s4025_s27 = scalar_lea.vmem %s749_s14, 32 }
 0x228   : > { %p4019_p2 = scmp.ne.s32.totalorder %s749_s14, %s4018_s20  ;;  %p4026_p5 = scmp.lt.s32.totalorder %s749_s14, %s749_s14 }
 0x229   : > { %p4027_p7 = scmp.lt.s32.totalorder %s4025_s27, %s4018_s20 }
 0x22a   : > { %p4021_p8 = pnand %p4019_p2, %p5488_p4 }
 0x22b   : > { %p4028_p1 = por %p4027_p7, %p4026_p5 }
 0x22c   : > { %p4022_p9 = pneg %p4021_p8 }
 0x22e   : > { %p4029_p11 = pnand %p4028_p1, %p4022_p9 }
 0x230   : > { %4032 = shalt.err (!%p4029_p11)
}
 0x231   : > { %s5499_s11 = sld [smem:[#allocation56_spill]]  ;;  %s5500_s6 = sld [smem:[#allocation53_spill]] }
 0x232   : > { %s5501_s10 = sld [smem:[#allocation52_spill]]  ;;  %s5502_s21 = sld [smem:[#allocation51_spill]] }
 0x233   : > { %3320 = dma.hbm_to_vmem [thread:$0]  (!%p5489_p6), %s5498_s15, 16, %s749_s14, [#allocation30]  }
 0x234   : > { %s2790_s29 = sadd.s32 4294967294, %s4285_s5   ;;  %s60_s16 = sadd.s32 1, %s4277_s4 }
 0x235   : > { %p61_p4 = scmp.ge.s32.totalorder %s60_s16, 4  ;;  %p5504_p6 = scmp.eq.s32.totalorder %s4285_s5, 0 }
 0x236   : > { %p5506_p13 = scmp.eq.s32.totalorder %s4498_s22, 0  ;;  %p547_p9 = scmp.eq.s32.totalorder %s4498_s22, 7 }
 0x237   : > { %s63_s2 = sadd.s32 1, %s5499_s11  ;;  %s70_s0 = sadd.s32 1, %s5500_s6 }
 0x238   : > { %p77_p0 = scmp.ne.s32.totalorder %s5500_s6, %s5501_s10  ;;  %p83_p3 = scmp.ne.s32.totalorder %s5501_s10, %s5502_s21 }
 0x239   : > { %s5562_s16 = smov (%p61_p4, %s60_s16), 0  ;;  %s5564_s2 = smov (!%p61_p4, %s63_s2), %s5499_s11 }
 0x23a   : > { %5503 = sst [smem:[#allocation58_spill]] %s5562_s16  ;;  %p4960_p10 = por %p5504_p6, %p77_p0 }
 0x23b   : > { %p4969_p12 = por %p5506_p13, %p83_p3  ;;  %p65_p2 = scmp.ge.s32.totalorder %s5564_s2, 2 }
 0x23c   : > { %s429_s8 = ssub.s32 %s4277_s4, %s5562_s16  ;;  %s5509_s20 = sadd.s32 1, %s4253_s26 }
 0x23d   : > { %s5507_s7 = scalar_select %p4969_p12, 1, 0 }
 0x23e   : > { %p430_p8 = scmp.eq.s32.totalorder %s429_s8, 0  ;;  %s5566_s2 = smov (%p65_p2, %s5564_s2), 0 }
 0x23f   : > { %5508 = sst [smem:[#allocation59_spill]] %s5566_s2  ;;  %s67_s17 = ssub.s32 %s5499_s11, %s5566_s2 }
 0x240   : > { %s4981_s27 = scalar_select %p430_p8, %s4253_s26, %s5509_s20  }
 0x241   : > { %p4988_p5 = por %p547_p9, %p77_p0  ;;  %p68_p7 = scmp.eq.s32.totalorder %s67_s17, 0 }
 0x242   : > { %p553_p1 = scmp.eq.s32.totalorder %s2790_s29, 7  ;;  %s759_s1 = sand.u32 1, %s5500_s6  }
 0x243   : > { %s5510_s28 = scalar_select %p4988_p5, 1, 0 }
 0x244   : > { %s2810_s13 = sshll.u32 %s5499_s11, 7  ;;  %s5568_s6 = smov (!%p68_p7, %s5500_s6), %s70_s0 }
 0x245   : > { %p5000_p11 = por %p553_p1, %p83_p3  ;;  %s2809_s15 = sshll.u32 %s759_s1, 3 }
 0x246   : > { %s5512_s23 = sld [smem:[#allocation60_spill]]  ;;  %p5513_p4 = scmp.lt.s32.totalorder %s4285_s5, 8 }
 0x247   : > { %s5511_s8 = scalar_select %p5000_p11, 1, 0 }
 0x248   : > { %p5013_p0 = pnand %p5513_p4, %p4960_p10  ;;  %s763_s10 = scalar_lea.vmem [#allocation5], %s2809_s15 }
 0x249   : > { %s770_s21 = sshll.u32 %s763_s10, 4  ;;  %s760_s29 = scalar_lea.sflag [#allocation6], %s759_s1  ;;  %s5017_s21 = int_to_ptr.vmem [resolvable:$true] %s770_s21 }
 0x24a   : > { %p4035_p6 = pneg %p5013_p0 }
 0x24c   : > { %s5007_s2 = scalar_lea.hbm %s5512_s23, %s2810_s13  ;;  %s4038_s14 = scalar_lea.hbm %s5512_s23, 256 }
 0x24d   : > { %s4033_s19 = scalar_lea.hbm %s5007_s2, 128  ;;  %p4039_p10 = scmp.lt.u32.totalorder %s5007_s2, %s5512_s23 }
 0x24e   : > { %p4034_p3 = scmp.ne.s32.totalorder %s5007_s2, %s4033_s19  ;;  %p4040_p8 = scmp.lt.u32.totalorder %s4038_s14, %s4033_s19 }
 0x24f   : > { %p4042_p7 = scmp.lt.u32.totalorder %s4033_s19, %s5007_s2 }
 0x250   : > { %p4036_p13 = pnand %p4035_p6, %p4034_p3  ;;  %p4041_p9 = por %p4040_p8, %p4039_p10 }
 0x252   : > { %p4037_p2 = pneg %p4036_p13  ;;  %p4043_p1 = por %p4042_p7, %p4041_p9 }
 0x254   : > { %p4044_p4 = pnand %p4043_p1, %p4037_p2 }
 0x256   : > { %4047 = shalt.err (!%p4044_p4)
}
 0x257   : > { %s4048_s1 = scalar_lea.vmem %s5017_s21, 128  ;;  %s4307_s15 = smov [#allocation5]  }
 0x258   : > { %p4049_p3 = scmp.ne.s32.totalorder %s5017_s21, %s4048_s1  ;;  %s4053_s10 = sshll.u32 %s4307_s15, 4  ;;  %s4054_s10 = int_to_ptr.vmem [resolvable:$false] %s4053_s10 }
 0x259   : > { %s4055_s13 = scalar_lea.vmem %s4054_s10, 256  ;;  %p4056_p5 = scmp.lt.s32.totalorder %s5017_s21, %s4054_s10 }
 0x25a   : > { %p4051_p13 = pnand %p4049_p3, %p4035_p6  ;;  %p4057_p10 = scmp.lt.s32.totalorder %s4055_s13, %s4048_s1 }
 0x25c   : > { %p4052_p11 = pneg %p4051_p13  ;;  %p4058_p8 = por %p4057_p10, %p4056_p5 }
 0x25e   : > { %p4059_p9 = pnand %p4058_p8, %p4052_p11 }
 0x260   : > { %4062 = shalt.err (!%p4059_p9)
}
 0x261   : > { %3324 = dma.hbm_to_vmem [thread:$0]  (!%p5013_p0), %s5007_s2, 128, %s5017_s21, %s760_s29  }
 0x262   : > { %s2814_s19 = sshll.u32 %s4277_s4, 4  ;;  %s801_s0 = scalar_lea.vmem [#allocation34], %s4705_s3 }
 0x263   : > { %s808_s14 = sshll.u32 %s801_s0, 4  ;;  %s5515_s15 = sld [smem:[#allocation78_spill]]  ;;  %s809_s14 = int_to_ptr.vmem [resolvable:$true] %s808_s14 }
 0x264   : > { %p5516_p11 = scmp.ne.s32.totalorder %s5483_s18, 0 }
 0x269   : > { %s806_s1 = scalar_lea.hbm %s5515_s15, %s2814_s19  ;;  %s4068_s23 = scalar_lea.hbm %s5515_s15, 64 }
 0x26a   : > { %s4063_s10 = scalar_lea.hbm %s806_s1, 16  ;;  %p4069_p0 = scmp.lt.u32.totalorder %s806_s1, %s5515_s15 }
 0x26b   : > { %p4064_p5 = scmp.ne.s32.totalorder %s806_s1, %s4063_s10  ;;  %p4070_p7 = scmp.lt.u32.totalorder %s4068_s23, %s4063_s10 }
 0x26c   : > { %p4072_p4 = scmp.lt.u32.totalorder %s4063_s10, %s806_s1 }
 0x26d   : > { %p4066_p6 = pnand %p4064_p5, %p5516_p11  ;;  %p4071_p1 = por %p4070_p7, %p4069_p0 }
 0x26f   : > { %p4067_p2 = pneg %p4066_p6  ;;  %p4073_p3 = por %p4072_p4, %p4071_p1 }
 0x271   : > { %p4074_p13 = pnand %p4073_p3, %p4067_p2 }
 0x273   : > { %4077 = shalt.err (!%p4074_p13)
}
 0x274   : > { %s4078_s21 = scalar_lea.vmem %s809_s14, 16  ;;  %s4308_s29 = smov [#allocation34]  }
 0x275   : > { %p4079_p10 = scmp.ne.s32.totalorder %s809_s14, %s4078_s21  ;;  %s4083_s0 = sshll.u32 %s4308_s29, 4  ;;  %s4084_s0 = int_to_ptr.vmem [resolvable:$false] %s4083_s0 }
 0x276   : > { %s4085_s17 = scalar_lea.vmem %s4084_s0, 32  ;;  %p4086_p5 = scmp.lt.s32.totalorder %s809_s14, %s4084_s0 }
 0x277   : > { %p4081_p8 = pnand %p4079_p10, %p5516_p11  ;;  %p4087_p6 = scmp.lt.s32.totalorder %s4085_s17, %s4078_s21 }
 0x279   : > { %p4082_p9 = pneg %p4081_p8  ;;  %p4088_p12 = por %p4087_p6, %p4086_p5 }
 0x27b   : > { %p4089_p0 = pnand %p4088_p12, %p4082_p9 }
 0x27d   : > { %4092 = shalt.err (!%p4089_p0)
}
 0x27e   : > { %p5517_p7 = scmp.ne.s32.totalorder %s5482_s24, 0  ;;  %s5518_s20 = sld [smem:[#allocation80_spill]] }
 0x27f   : > { %s839_s11 = scalar_lea.vmem [#allocation37], %s4705_s3 }
 0x280   : > { %3330 = dma.hbm_to_vmem [thread:$0]  (!%p5517_p7), %s806_s1, 16, %s809_s14, %s4725_s12  }
 0x281   : > { %s846_s13 = sshll.u32 %s839_s11, 4  ;;  %s847_s13 = int_to_ptr.vmem [resolvable:$true] %s846_s13 }
 0x284   : > { %s5069_s10 = scalar_lea.hbm %s5518_s20, %s2814_s19  ;;  %s4098_s14 = scalar_lea.hbm %s5518_s20, 64 }
 0x285   : > { %s4093_s2 = scalar_lea.hbm %s5069_s10, 16  ;;  %p4099_p4 = scmp.lt.u32.totalorder %s5069_s10, %s5518_s20 }
 0x286   : > { %p4094_p12 = scmp.ne.s32.totalorder %s5069_s10, %s4093_s2  ;;  %p4100_p3 = scmp.lt.u32.totalorder %s4098_s14, %s4093_s2 }
 0x287   : > { %p4102_p10 = scmp.lt.u32.totalorder %s4093_s2, %s5069_s10 }
 0x288   : > { %p4096_p2 = pnand %p4094_p12, %p5516_p11  ;;  %p4101_p13 = por %p4100_p3, %p4099_p4 }
 0x28a   : > { %p4097_p1 = pneg %p4096_p2  ;;  %p4103_p8 = por %p4102_p10, %p4101_p13 }
 0x28c   : > { %p4104_p9 = pnand %p4103_p8, %p4097_p1 }
 0x28e   : > { %4107 = shalt.err (!%p4104_p9)
}
 0x28f   : > { %s4108_s3 = scalar_lea.vmem %s847_s13, 16  ;;  %s4309_s19 = smov [#allocation37]  }
 0x290   : > { %p4109_p5 = scmp.ne.s32.totalorder %s847_s13, %s4108_s3  ;;  %s4113_s0 = sshll.u32 %s4309_s19, 4  ;;  %s4114_s0 = int_to_ptr.vmem [resolvable:$false] %s4113_s0 }
 0x291   : > { %s4115_s17 = scalar_lea.vmem %s4114_s0, 32  ;;  %p4116_p12 = scmp.lt.s32.totalorder %s847_s13, %s4114_s0 }
 0x292   : > { %p4111_p6 = pnand %p4109_p5, %p5516_p11  ;;  %p4117_p2 = scmp.lt.s32.totalorder %s4115_s17, %s4108_s3 }
 0x294   : > { %p4112_p0 = pneg %p4111_p6  ;;  %p4118_p7 = por %p4117_p2, %p4116_p12 }
 0x296   : > { %p4119_p3 = pnand %p4118_p7, %p4112_p0 }
 0x298   : > { %4122 = shalt.err (!%p4119_p3)
}
 0x299   : > { %p5519_p4 = scmp.ne.s32.totalorder %s5482_s24, 0  ;;  %s5520_s23 = sld [smem:[#allocation57_spill]] }
 0x29b   : > { %3336 = dma.hbm_to_vmem [thread:$0]  (!%p5519_p4), %s5069_s10, 16, %s847_s13, %s4770_s9  }
 0x29f   : > { %p5521_p1 = scmp.ne.s32.totalorder %s5520_s23, 0 }
 0x2a0   : > { %s5522_s18 = sld [smem:[#allocation52_spill]] (!%p5521_p1)  ;;  %p5523_p11 = scmp.ne.s32.totalorder (!%p5521_p1), %s5507_s7, 0 }
 0x2a1   : > { %855 = sbr.rel (%p5521_p1) target bundleno = 4862 (0x12fe), region = 104 }
 0x2a6   : > { %s5093_s16 = sand.u32 (!%p5521_p1), 1, %s5522_s18  }
 0x2a7   : > { %s2820_s11 = sshll.u32 (!%p5521_p1), %s5093_s16, 3  ;;  %s858_s2 = scalar_lea.sflag (!%p5521_p1), [#allocation6], %s5093_s16 }
 0x2a8   : > { %s5099_s21 = scalar_lea.vmem [#allocation5], %s2820_s11 }
 0x2a9   : > { %4196 = dma.done.wait (%p5523_p11), %s858_s2, 128  }
 0x2aa   : > { %4198 = vsyncadd (%p5523_p11), %s858_s2, 4294967168  ;;  %p5524_p7 = scmp.eq.s32.totalorder %s4498_s22, 0 }
 0x2ac   : > { %4200 = dma.done.wait (%p5524_p7), [#allocation9], 144   ;;  %p5525_p13 = pmov %p5524_p7 }
 0x2ad   : > { %p5526_p10 = pmov %p5524_p7 }
 0x2ae   : > { %4202 = vsyncadd (%p5525_p13), [#allocation9], 4294967152 }
 0x2af   : > { %4204 = dma.done.wait (%p5526_p10), [#allocation12], 528   ;;  %p5527_p8 = pmov %p5524_p7 }
 0x2b0   : > { %p5528_p9 = pmov %p5524_p7 }
 0x2b1   : > { %4206 = vsyncadd (%p5527_p8), [#allocation12], 4294966768 }
 0x2b2   : > { %4208 = dma.done.wait (%p5528_p9), [#allocation15], 528   ;;  %p5529_p5 = pmov %p5524_p7 }
 0x2b4   : > { %4210 = vsyncadd (%p5529_p5), [#allocation15], 4294966768  ;;  %p5530_p6 = pmov %p5529_p5 }
 0x2b5   : > { %p5531_p0 = pmov %p5529_p5 }
 0x2b6   : > { %4212 = dma.done.wait (%p5530_p6), [#allocation18], 32  }
 0x2b7   : > { %4214 = vsyncadd (%p5531_p0), [#allocation18], 4294967264  ;;  %p5532_p12 = pmov %p5531_p0 }
 0x2b8   : > { %p5533_p2 = pmov %p5531_p0 }
 0x2b9   : > { %4216 = dma.done.wait (%p5532_p12), [#allocation21], 528  }
 0x2ba   : > { %4218 = vsyncadd (%p5533_p2), [#allocation21], 4294966768  ;;  %p5534_p3 = pmov %p5531_p0 }
 0x2bb   : > { %p5535_p4 = pmov %p5531_p0 }
 0x2bc   : > { %4220 = dma.done.wait (%p5534_p3), [#allocation24], 2064  }
 0x2bd   : > { %4222 = vsyncadd (%p5535_p4), [#allocation24], 4294965232  ;;  %p5536_p1 = pmov %p5531_p0 }
 0x2be   : > { %p5537_p11 = pmov %p5531_p0 }
 0x2bf   : > { %4224 = dma.done.wait (%p5536_p1), [#allocation27], 32  }
 0x2c0   : > { %4226 = vsyncadd (%p5537_p11), [#allocation27], 4294967264  ;;  %p5538_p7 = pmov %p5531_p0 }
 0x2c1   : > { %p5539_p13 = pmov %p5531_p0 }
 0x2c2   : > { %4228 = dma.done.wait (%p5538_p7), [#allocation30], 528  }
 0x2c3   : > { %4230 = vsyncadd (%p5539_p13), [#allocation30], 4294966768  ;;  %s930_s9 = sand.u32 1, %s4498_s22   ;;  %s5139_s24 = sand.u32 1, %s4249_s25  }
 0x2c4   : > { %s2837_s7 = sshll.u32 %s5139_s24, 5  ;;  %s931_s10 = scalar_lea.sflag [#allocation33], %s930_s9 }
 0x2c5   : > { %s5142_s13 = scalar_lea.vmem [#allocation32], %s2837_s7  ;;  %p5540_p10 = scmp.ne.s32.totalorder %s5480_s30, 0 }
 0x2c7   : > { %4232 = dma.done.wait (%p5540_p10), %s931_s10, 528  }
 0x2c8   : > { %4234 = vsyncadd (%p5540_p10), %s931_s10, 4294966768  ;;  %s2838_s12 = sshll.u32 %s5139_s24, 7  ;;  %s942_s14 = scalar_lea.vmem [#allocation34], %s5139_s24 }
 0x2c9   : > { %s948_s1 = scalar_lea.sflag [#allocation36], %s930_s9  ;;  %s5150_s29 = scalar_lea.vmem [#allocation35], %s2838_s12 }
 0x2ca   : > { %4236 = dma.done.wait (%p5540_p10), %s948_s1, 2064  }
 0x2cb   : > { %4238 = vsyncadd (%p5540_p10), %s948_s1, 4294965232  ;;  %s959_s22 = scalar_lea.vmem [#allocation37], %s5139_s24  ;;  %s5159_s3 = scalar_lea.vmem [#allocation38], %s2820_s11 }
 0x2cc   : > { %s5541_s19 = sld [smem:[#allocation54_spill]] }
 0x2d2   : > { %p2840_p8 = scmp.ne.s32.totalorder %s5541_s19, 0 }
 0x2d3   : > { %v5163_v0 = vld [vmem:[%s5099_s21] sm:$0xff] (!%p2840_p8)  ;;  %vm1043_vm0 = vcmask (!%p2840_p8), 261120   ;;  %v4310_v10 = vmov (!%p2840_p8), 0.0|0.0   ;;  %v1075_v12 = vld [vmem:[#allocation13 + $0x18] sm:$0xff] (!%p2840_p8)  ;;  %vm4311_vm1 = vmmov (!%p2840_p8), 0   ;;  %v4312_v13 = vmov (!%p2840_p8), 0.0  }
 0x2d4   : > { %1039 = sbr.rel (%p2840_p8) target bundleno = 4382 (0x111e), region = 192  ;;  %v1044_v1 = vsel (!%p2840_p8), %vm1043_vm0, %v5163_v0, 0.0  ;;  %v1072_v7 = vld [vmem:[#allocation13] sm:$0xff] (!%p2840_p8)  ;;  %v1073_v8 = vld [vmem:[#allocation13 + $0x8] sm:$0xff] (!%p2840_p8)  ;;  %v1074_v9 = vld [vmem:[#allocation13 + $0x10] sm:$0xff] (!%p2840_p8)  ;;  %3118 = vmatprep.subr.bf16.mxu1 (!%p2840_p8), %v4310_v10  ;;  %2961 = vmatprep.mubr.msk.f32.mxu1 (!%p2840_p8), %vm4311_vm1, %v4312_v13  ;;  %s4313_s30 = smov (!%p2840_p8), 64  }
 0x2d5   : > { %1045 = vadd.xlane.f32.xlu0 (!%p2840_p8), %v1044_v1  ;;  %v3119_v11 = vpack.c.bf16 (!%p2840_p8), %v1073_v8, %v1072_v7  ;;  %2984 = vmatprep.subr.mxu0 (!%p2840_p8), %v4312_v13  ;;  %v3122_v14 = vpack.c.bf16 (!%p2840_p8), %v1075_v12, %v1074_v9  ;;  %v2841_v19 = vld [vmem:[#allocation10] ss:$0 sm:$0xff] (!%p2840_p8)  ;;  %v2842_v21 = vld [vmem:[#allocation11] ss:$0 sm:$0xff] (!%p2840_p8)  ;;  %s4314_s0 = smov (!%p2840_p8), 96   ;;  %s4315_s17 = smov (!%p2840_p8), 88  }
 0x2d6   : > { %2986 = vmatprep.mubr.msk.f32.mxu0 (!%p2840_p8), %vm4311_vm1, %v4312_v13  ;;  %s4316_s23 = smov (!%p2840_p8), 120   ;;  %s4317_s18 = smov (!%p2840_p8), 80   ;;  %vm1154_vm2 = vcmask (!%p2840_p8), 64512   ;;  %v1149_v32 = vld [vmem:[#allocation8] sm:$0xff] (!%p2840_p8)  ;;  %vm1825_vm3 = vcmask (!%p2840_p8), 130048   ;;  %vm1827_vm4 = vcmask (!%p2840_p8), 195584  }
 0x2d7   : > { %3120 = vmatpush3.bf16.msra.mxu1 (!%p2840_p8), %v3119_v11  ;;  %s4318_s11 = smov (!%p2840_p8), 72   ;;  %s4319_s2 = smov (!%p2840_p8), 104   ;;  %vm2235_vm5 = vcmask (!%p2840_p8), 31744   ;;  %vm2260_vm8 = vcmask (!%p2840_p8), 7168  }
 0x2d8   : > { %3121 = vmatprep.subr.bf16.mxu1 (!%p2840_p8), %v4310_v10  ;;  %s4320_s21 = smov (!%p2840_p8), 112   ;;  %s4321_s9 = smov (!%p2840_p8), 48  }
 0x2d9   : > { %s4322_s7 = smov (!%p2840_p8), 56   ;;  %s4323_s10 = smov (!%p2840_p8), 40  }
 0x2da   : > { %s4324_s12 = smov (!%p2840_p8), 8   ;;  %s4325_s1 = smov (!%p2840_p8), 16  }
 0x2db   : > { %3123 = vmatpush3.bf16.msra.mxu1 %v3122_v14  ;;  %s4326_s19 = smov 24  }
 0x2dc   : > { %2964 = vmatprep.subr.mxu1 %v4312_v13 }
 0x362   : > { %v1046_v2 = vpop.xlane.xlu0 %1045 }
 0x363   : > { %v1048_v3 = vmul.f32 0.03125, %v1046_v2 }
 0x365   : > { %v1049_v4 = vsub.f32 %v5163_v0, %v1048_v3 }
 0x367   : > { %v1050_v5 = vmul.f32 %v1049_v4, %v1049_v4 }
 0x369   : > { %v1051_v6 = vsel %vm1043_vm0, %v1050_v5, 0.0 }
 0x36a   : > { %1052 = vadd.xlane.f32.xlu0 %v1051_v6 }
 0x3f7   : > { %v1053_v15 = vpop.xlane.xlu0 %1052 }
 0x3f8   : > { %v1054_v16 = vmul.f32 0.03125, %v1053_v15 }
 0x3fa   : > { %v1055_v17 = vadd.f32 1e-05, %v1054_v16 }
 0x3fc   : > { %3502 = vrsqrt.f32 %v1055_v17 }
 0x406   : > { %v3503_v18 = vpop.eup %3502 }
 0x407   : > { %v1057_v20 = vmul.f32 %v3503_v18, %v1049_v4  ;;  %v1829_v18 = vld [vmem:[#allocation14] sm:$0xff] }
 0x409   : > { %v1064_v22 = vmul.f32 %v2841_v19, %v1057_v20  ;;  %v1830_v19 = vld [vmem:[#allocation14 + $0x8] sm:$0xff] }
 0x40a   : > { %v3125_v20 = vpack.c.bf16 %v1830_v19, %v1829_v18  ;;  %v2040_v19 = vld [vmem:[#allocation23 + $0x60] sm:$0xff] }
 0x40b   : > { %v1071_v23 = vadd.f32 %v2842_v21, %v1064_v22  ;;  %v1831_v21 = vld [vmem:[#allocation14 + $0x10] sm:$0xff]  ;;  %v1832_v22 = vld [vmem:[#allocation14 + $0x18] sm:$0xff] }
 0x40d   : > { %2962 = vmatmul.mubr.msk.f32.vlgmr.msra.gmra.mrb[0].mxu1 %vm1043_vm0, %v1071_v23 }
 0x40e   : > { %2966 = vmatprep.mubr.msk.f32.mxu1 %vm4311_vm1, %v4312_v13 }
 0x4e0   : > { %v5180_v24 = vpop.f32.mrb[0].mxu1 }
 0x4e1   : > { %1239 = vrot.lane.b32.xlu0 %v5180_v24, %s4313_s30  ;;  %1152 = vrot.lane.b32.xlu1 %v5180_v24, %s4314_s0  ;;  %v2963_v25 = vpop.f32.mrb[1].mxu1  ;;  %v1150_v26 = vmul.f32 0.35355338, %v5180_v24 }
 0x4e5   : > { %1319 = vrot.lane.b32.xlu0 %v5180_v24, %s4315_s17 }
 0x4e9   : > { %1317 = vrot.lane.b32.xlu0 %v1150_v26, %s4316_s23 }
 0x4ed   : > { %1484 = vrot.lane.b32.xlu0 %v5180_v24, %s4317_s18 }
 0x4f1   : > { %1649 = vrot.lane.b32.xlu0 %v5180_v24, %s4318_s11 }
 0x4f5   : > { %1647 = vrot.lane.b32.xlu0 %v1150_v26, %s4319_s2 }
 0x553   : > { %v1240_v27 = vpop.permute.xlu0 %1239  ;;  %v1153_v28 = vpop.permute.xlu1 %1152 }
 0x554   : > { %2965 = vmatpush3.xpose.msk.msra.mxu1 %vm1154_vm2, %v1153_v28 }
 0x555   : > { %2969 = vmatprep.subr.mxu1 %v4312_v13 }
 0x557   : > { %v1320_v29 = vpop.permute.xlu0 %1319  ;;  %2967 = vmatmul.mubr.msk.f32.vlgmr.msra.gmra.mrb[2].mxu1 %vm1154_vm2, %v1150_v26 }
 0x558   : > { %2970 = vmatpush3.msra.mxu1 %v1240_v27  ;;  %2971 = vmatprep.mubr.msk.f32.mxu1 %vm4311_vm1, %v4312_v13 }
 0x559   : > { %2974 = vmatprep.subr.mxu1 %v4312_v13 }
 0x55b   : > { %v1318_v30 = vpop.permute.xlu0 %1317 }
 0x55f   : > { %v1485_v31 = vpop.permute.xlu0 %1484 }
 0x560   : > { %2985 = vmatpush3.xpose.msk.msra.mxu0 %vm1154_vm2, %v1485_v31 }
 0x561   : > { %2994 = vmatprep.subr.mxu0 %v4312_v13 }
 0x563   : > { %v1650_v39 = vpop.permute.xlu0 %1649 }
 0x567   : > { %v1648_v42 = vpop.permute.xlu0 %1647 }
 0x62a   : > { %v1226_v33 = vpop.f32.mrb[2].mxu1 }
 0x62b   : > { %v1227_v34 = vadd.f32 %v1226_v33, %v1149_v32  ;;  %v2968_v35 = vpop.f32.mrb[3].mxu1 }
 0x62d   : > { %v1230_v36 = vsel %vm1154_vm2, %v1227_v34, -inf }
 0x62e   : > { %1231 = vmax.xlane.f32.xlu1 %v1230_v36 }
 0x63f   : > { %1482 = vrot.lane.b32.xlu1 %v1150_v26, %s4320_s21 }
 0x6bb   : > { %v1232_v37 = vpop.xlane.xlu1 %1231 }
 0x6bc   : > { %v1233_v38 = vsub.f32 %v1227_v34, %v1232_v37 }
 0x6be   : > { %v1234_v40 = vmul.f32 1.442695, %v1233_v38 }
 0x6bf   : > { %v1483_v41 = vpop.permute.xlu1 %1482 }
 0x6c0   : > { %3504 = vpow2.f32 %v1234_v40  ;;  %2987 = vmatmul.mubr.msk.f32.vlgmr.msra.gmra.mrb[0].mxu0 %vm1154_vm2, %v1483_v41 }
 0x6c1   : > { %2995 = vmatpush3.xpose.msk.msra.mxu0 %vm1154_vm2, %v1650_v39  ;;  %2996 = vmatprep.mubr.msk.f32.mxu0 %vm4311_vm1, %v4312_v13 }
 0x6c2   : > { %3124 = vmatprep.subr.bf16.mxu0 %v4310_v10 }
 0x6c4   : > { %2997 = vmatmul.mubr.msk.f32.vlgmr.msra.gmra.mrb[2].mxu0 %vm1154_vm2, %v1648_v42 }
 0x6c5   : > { %3012 = vmatprep.mubr.msk.f32.mxu0 %vm4311_vm1, %v4312_v13  ;;  %3126 = vmatpush3.bf16.msra.mxu0 %v3125_v20  ;;  %v2041_v20 = vld [vmem:[#allocation23 + $0x68] sm:$0xff] }
 0x6c6   : > { %3127 = vmatprep.subr.bf16.mxu0 %v4310_v10 }
 0x6ca   : > { %v3505_v43 = vpop.eup %3504 }
 0x6cb   : > { %2972 = vmatmul.mubr.msk.f32.vlgmr.msra.gmra.mrb[4].mxu1 %vm1154_vm2, %v3505_v43  ;;  %v1236_v9 = vsel %vm1154_vm2, %v3505_v43, 0.0 }
 0x6cc   : > { %2975 = vmatpush3.xpose.msk.msra.mxu1 %vm1154_vm2, %v1320_v29  ;;  %2976 = vmatprep.mubr.msk.f32.mxu1 %vm4311_vm1, %v4312_v13 }
 0x6cd   : > { %2979 = vmatprep.subr.mxu1 %v4312_v13 }
 0x6cf   : > { %2977 = vmatmul.mubr.msk.f32.vlgmr.msra.gmra.mrb[6].mxu1 %vm1154_vm2, %v1318_v30 }
 0x6d0   : > { %2981 = vmatprep.mubr.msk.f32.mxu1 %vm4311_vm1, %v4312_v13 }
 0x793   : > { %v1556_v44 = vpop.f32.mrb[0].mxu0 }
 0x794   : > { %v1557_v45 = vadd.f32 %v1556_v44, %v1149_v32  ;;  %v2988_v46 = vpop.f32.mrb[1].mxu0 }
 0x795   : > { %v2856_v46 = vld [vmem:[#allocation16] ss:$0 sm:$0xff] }
 0x796   : > { %v1560_v47 = vsel %vm1154_vm2, %v1557_v45, -inf }
 0x797   : > { %1561 = vmax.xlane.f32.xlu1 %v1560_v47  ;;  %v1721_v48 = vpop.f32.mrb[2].mxu0 }
 0x798   : > { %v1722_v49 = vadd.f32 %v1721_v48, %v1149_v32  ;;  %v2998_v50 = vpop.f32.mrb[3].mxu0 }
 0x79a   : > { %v1725_v51 = vsel %vm1154_vm2, %v1722_v49, -inf }
 0x79b   : > { %1726 = vmax.xlane.f32.xlu0 %v1725_v51 }
 0x79e   : > { %v5215_v52 = vpop.f32.mrb[4].mxu1 }
 0x79f   : > { %v2973_v53 = vpop.f32.mrb[5].mxu1 }
 0x7a2   : > { %v1391_v54 = vpop.f32.mrb[6].mxu1 }
 0x7a3   : > { %v1392_v55 = vadd.f32 %v1391_v54, %v1149_v32  ;;  %v2978_v56 = vpop.f32.mrb[7].mxu1 }
 0x7a5   : > { %v1395_v57 = vsel %vm1154_vm2, %v1392_v55, -inf }
 0x7a6   : > { %1396 = vmax.xlane.f32.xlu0 %v1395_v57  ;;  %v1943_v57 = vld [vmem:[#allocation20] sm:$0xff] }
 0x7a8   : > { %1569 = vrot.lane.b32.xlu1 %v5180_v24, %s4321_s9 }
 0x7bc   : > { %1404 = vrot.lane.b32.xlu0 %v5180_v24, %s4322_s7 }
 0x7c0   : > { %1734 = vrot.lane.b32.xlu0 %v5180_v24, %s4323_s10  ;;  %v3128_v24 = vpack.c.bf16 %v1832_v22, %v1831_v21  ;;  %v3155_v21 = vpack.c.bf16 %v2041_v20, %v2040_v19 }
 0x7c2   : > { %3129 = vmatpush3.bf16.msra.mxu0 %v3128_v24 }
 0x7c3   : > { %3136 = vmatprep.subr.bf16.mxu0 %v4310_v10 }
 0x824   : > { %v1562_v58 = vpop.xlane.xlu1 %1561 }
 0x825   : > { %v1563_v59 = vsub.f32 %v1557_v45, %v1562_v58  ;;  %v1944_v58 = vld [vmem:[#allocation20 + $0x8] sm:$0xff] }
 0x827   : > { %v1564_v60 = vmul.f32 1.442695, %v1563_v59  ;;  %v3131_v59 = vpack.c.bf16 %v1944_v58, %v1943_v57 }
 0x828   : > { %v1727_v61 = vpop.xlane.xlu0 %1726  ;;  %v1570_v12 = vpop.permute.xlu1 %1569 }
 0x829   : > { %3506 = vpow2.f32 %v1564_v60  ;;  %v1728_v62 = vsub.f32 %v1722_v49, %v1727_v61  ;;  %v1945_v60 = vld [vmem:[#allocation20 + $0x10] sm:$0xff]  ;;  %v1946_v61 = vld [vmem:[#allocation20 + $0x18] sm:$0xff] }
 0x82b   : > { %v1729_v63 = vmul.f32 1.442695, %v1728_v62  ;;  %v2028_v62 = vld [vmem:[#allocation23] sm:$0xff] }
 0x82d   : > { %3508 = vpow2.f32 %v1729_v63  ;;  %v2029_v63 = vld [vmem:[#allocation23 + $0x8] sm:$0xff] }
 0x833   : > { %v3507_v1 = vpop.eup %3506  ;;  %v1397_v2 = vpop.xlane.xlu0 %1396 }
 0x834   : > { %v1398_v3 = vsub.f32 %v1392_v55, %v1397_v2  ;;  %v1566_v4 = vsel %vm1154_vm2, %v3507_v1, 0.0  ;;  %v3137_v2 = vpack.c.bf16 %v2029_v63, %v2028_v62  ;;  %v2865_v63 = vld [vmem:[#allocation31] ss:$0 sm:$0xff] }
 0x835   : > { %1567 = vadd.xlane.f32.xlu0 %v1566_v4 }
 0x836   : > { %v1399_v5 = vmul.f32 1.442695, %v1398_v3  ;;  %v2031_v3 = vld [vmem:[#allocation23 + $0x18] sm:$0xff] }
 0x837   : > { %v3509_v6 = vpop.eup %3508  ;;  %v1405_v7 = vpop.permute.xlu0 %1404 }
 0x838   : > { %3510 = vpow2.f32 %v1399_v5  ;;  %2980 = vmatpush3.msra.mxu1 %v1405_v7  ;;  %v1731_v8 = vsel %vm1154_vm2, %v3509_v6, 0.0  ;;  %v2032_v5 = vld [vmem:[#allocation23 + $0x20] sm:$0xff] }
 0x839   : > { %1732 = vadd.xlane.f32.xlu0 %v1731_v8  ;;  %2989 = vmatprep.subr.mxu1 %v4312_v13  ;;  %v2034_v8 = vld [vmem:[#allocation23 + $0x30] sm:$0xff] }
 0x83b   : > { %v1735_v15 = vpop.permute.xlu0 %1734 }
 0x83d   : > { %1237 = vadd.xlane.f32.xlu0 %v1236_v9  ;;  %v2035_v9 = vld [vmem:[#allocation23 + $0x38] sm:$0xff] }
 0x842   : > { %v3511_v11 = vpop.eup %3510 }
 0x843   : > { %2982 = vmatmul.mubr.msk.f32.vlgmr.msra.gmra.mrb[8].mxu1 %vm1154_vm2, %v3511_v11  ;;  %v1401_v14 = vsel %vm1154_vm2, %v3511_v11, 0.0  ;;  %v3146_v11 = vpack.c.bf16 %v2035_v9, %v2034_v8 }
 0x844   : > { %2990 = vmatpush3.msra.mxu1 %v1570_v12  ;;  %1402 = vadd.xlane.f32.xlu1 %v1401_v14  ;;  %v2036_v12 = vld [vmem:[#allocation23 + $0x40] sm:$0xff]  ;;  %v2037_v14 = vld [vmem:[#allocation23 + $0x48] sm:$0xff] }
 0x845   : > { %2991 = vmatprep.mubr.msk.f32.mxu1 %vm4311_vm1, %v4312_v13  ;;  %2999 = vmatprep.subr.mxu1 %v4312_v13 }
 0x847   : > { %2992 = vmatmul.mubr.msk.f32.vlgmr.msra.gmra.mrb[10].mxu1 %vm1154_vm2, %v3507_v1  ;;  %v2030_v1 = vld [vmem:[#allocation23 + $0x10] sm:$0xff] }
 0x848   : > { %3000 = vmatpush3.msra.mxu1 %v1735_v15  ;;  %3001 = vmatprep.mubr.msk.f32.mxu1 %vm4311_vm1, %v4312_v13  ;;  %v3140_v4 = vpack.c.bf16 %v2031_v3, %v2030_v1  ;;  %v3149_v15 = vpack.c.bf16 %v2037_v14, %v2036_v12 }
 0x849   : > { %3130 = vmatprep.subr.bf16.mxu1 %v4310_v10 }
 0x84b   : > { %3002 = vmatmul.mubr.msk.f32.vlgmr.msra.gmra.mrb[12].mxu1 %vm1154_vm2, %v3509_v6  ;;  %v2033_v6 = vld [vmem:[#allocation23 + $0x28] sm:$0xff] }
 0x84c   : > { %3023 = vmatprep.mubr.msk.f32.mxu1 %vm4311_vm1, %v4312_v13  ;;  %3132 = vmatpush3.bf16.msra.mxu1 %v3131_v59  ;;  %v3143_v7 = vpack.c.bf16 %v2033_v6, %v2032_v5  ;;  %v2863_v59 = vld [vmem:[#allocation26] ss:$0 sm:$0xff] }
 0x84d   : > { %3133 = vmatprep.subr.bf16.mxu1 %v4310_v10 }
 0x8c2   : > { %v1568_v17 = vpop.xlane.xlu0 %1567 }
 0x8c6   : > { %v1733_v23 = vpop.xlane.xlu0 %1732 }
 0x8ca   : > { %v1238_v37 = vpop.xlane.xlu0 %1237 }
 0x8d1   : > { %v1403_v16 = vpop.xlane.xlu1 %1402 }
 0x8d2   : > { %3512 = vrcp.f32 %v1403_v16  ;;  %v2038_v16 = vld [vmem:[#allocation23 + $0x50] sm:$0xff] }
 0x8d3   : > { %3514 = vrcp.f32 %v1568_v17  ;;  %v2039_v17 = vld [vmem:[#allocation23 + $0x58] sm:$0xff] }
 0x8d4   : > { %3516 = vrcp.f32 %v1733_v23  ;;  %v3152_v18 = vpack.c.bf16 %v2039_v17, %v2038_v16 }
 0x8d5   : > { %3518 = vrcp.f32 %v1238_v37 }
 0x8dc   : > { %v3513_v25 = vpop.eup %3512 }
 0x8dd   : > { %v3515_v29 = vpop.eup %3514 }
 0x8de   : > { %v3517_v33 = vpop.eup %3516 }
 0x8df   : > { %v3519_v38 = vpop.eup %3518 }
 0x8e0   : > { %v1316_v40 = vmul.f32 %v3519_v38, %v5215_v52 }
 0x916   : > { %v1476_v26 = vpop.f32.mrb[8].mxu1 }
 0x917   : > { %v1481_v27 = vmul.f32 %v3513_v25, %v1476_v26  ;;  %v2983_v28 = vpop.f32.mrb[9].mxu1  ;;  %v2858_v26 = vld [vmem:[#allocation17] ss:$0 sm:$0xff] }
 0x918   : > { %v2859_v28 = vld [vmem:[#allocation19] ss:$0 sm:$0xff] }
 0x919   : > { %1813 = vrot.lane.b32.xlu1 %v1481_v27, %s4324_s12 }
 0x91a   : > { %v1641_v30 = vpop.f32.mrb[10].mxu1 }
 0x91b   : > { %v1646_v31 = vmul.f32 %v3515_v29, %v1641_v30  ;;  %v2993_v32 = vpop.f32.mrb[11].mxu1 }
 0x91c   : > { %v2043_v32 = vld [vmem:[#allocation23 + $0x78] sm:$0xff] }
 0x91d   : > { %1817 = vrot.lane.b32.xlu0 %v1646_v31, %s4325_s1  ;;  %v2042_v31 = vld [vmem:[#allocation23 + $0x70] sm:$0xff] }
 0x91e   : > { %v1806_v34 = vpop.f32.mrb[12].mxu1 }
 0x91f   : > { %v1811_v35 = vmul.f32 %v3517_v33, %v1806_v34  ;;  %v3003_v36 = vpop.f32.mrb[13].mxu1  ;;  %v3158_v33 = vpack.c.bf16 %v2043_v32, %v2042_v31  ;;  %v2860_v34 = vld [vmem:[#allocation22] ss:$0 sm:$0xff] }
 0x921   : > { %1821 = vrot.lane.b32.xlu1 %v1811_v35, %s4326_s19 }
 0x98b   : > { %v1814_v39 = vpop.permute.xlu1 %1813 }
 0x98c   : > { %v1824_v42 = vsel %vm1154_vm2, %v1316_v40, %v1814_v39  ;;  %v2862_v39 = vld [vmem:[#allocation25] ss:$0 sm:$0xff] }
 0x98f   : > { %v1818_v41 = vpop.permute.xlu0 %1817 }
 0x990   : > { %v1826_v43 = vsel %vm1825_vm3, %v1824_v42, %v1818_v41 }
 0x993   : > { %v1822_v44 = vpop.permute.xlu1 %1821 }
 0x994   : > { %v1828_v45 = vsel %vm1827_vm4, %v1826_v43, %v1822_v44 }
 0x995   : > { %3013 = vmatmul.mubr.msk.f32.vlgmr.msra.gmra.mrb[4].mxu0 %vm1043_vm0, %v1828_v45 }
 0x996   : > { %3058 = vmatprep.mubr.msk.f32.mxu0 %vm4311_vm1, %v4312_v13  ;;  %3138 = vmatpush3.bf16.msra.mxu0 %v3137_v2 }
 0x997   : > { %3139 = vmatprep.subr.bf16.mxu0 %v4310_v10 }
 0x99a   : > { %3141 = vmatpush3.bf16.msra.mxu0 %v3140_v4  ;;  %v2239_v4 = vlaneseq }
 0x99b   : > { %3142 = vmatprep.subr.bf16.mxu0 %v4310_v10 }
 0x99c   : > { %v2240_v5 = vand.u32 127, %v2239_v4 }
 0x99e   : > { %3144 = vmatpush3.bf16.msra.mxu0 %v3143_v7 }
 0x99f   : > { %3145 = vmatprep.subr.bf16.mxu0 %v4310_v10 }
 0x9a2   : > { %3147 = vmatpush3.bf16.msra.mxu0 %v3146_v11 }
 0x9a3   : > { %3148 = vmatprep.subr.bf16.mxu0 %v4310_v10 }
 0x9a6   : > { %3150 = vmatpush3.bf16.msra.mxu0 %v3149_v15 }
 0x9a7   : > { %3151 = vmatprep.subr.bf16.mxu0 %v4310_v10 }
 0x9aa   : > { %3153 = vmatpush3.bf16.msra.mxu0 %v3152_v18 }
 0x9ab   : > { %3154 = vmatprep.subr.bf16.mxu0 %v4310_v10 }
 0x9ae   : > { %3156 = vmatpush3.bf16.msra.mxu0 %v3155_v21 }
 0x9af   : > { %3157 = vmatprep.subr.bf16.mxu0 %v4310_v10 }
 0x9b2   : > { %3159 = vmatpush3.bf16.msra.mxu0 %v3158_v33 }
 0xa68   : > { %v1909_v47 = vpop.f32.mrb[4].mxu0 }
 0xa69   : > { %v1910_v48 = vadd.f32 %v2856_v46, %v1909_v47  ;;  %v3014_v49 = vpop.f32.mrb[5].mxu0 }
 0xa6a   : > { %v2151_v49 = vld [vmem:[#allocation29] sm:$0xff] }
 0xa6b   : > { %v5245_v50 = vadd.f32 %v1910_v48, %v5163_v0  ;;  %v3134_v0 = vpack.c.bf16 %v1946_v61, %v1945_v60  ;;  %v2864_v61 = vld [vmem:[#allocation28] ss:$0 sm:$0xff] }
 0xa6d   : > { %v1916_v51 = vsel %vm1043_vm0, %v5245_v50, 0.0  ;;  %3135 = vmatpush3.bf16.msra.mxu1 %v3134_v0 }
 0xa6e   : > { %1917 = vadd.xlane.f32.xlu1 %v1916_v51  ;;  %3160 = vmatprep.subr.bf16.mxu1 %v4310_v10  ;;  %v2152_v51 = vld [vmem:[#allocation29 + $0x8] sm:$0xff] }
 0xafb   : > { %v1918_v52 = vpop.xlane.xlu1 %1917 }
 0xafc   : > { %v1919_v53 = vmul.f32 0.03125, %v1918_v52  ;;  %v3161_v52 = vpack.c.bf16 %v2152_v51, %v2151_v49 }
 0xafe   : > { %v1920_v54 = vsub.f32 %v5245_v50, %v1919_v53  ;;  %v2153_v53 = vld [vmem:[#allocation29 + $0x10] sm:$0xff] }
 0xb00   : > { %v1921_v55 = vmul.f32 %v1920_v54, %v1920_v54 }
 0xb02   : > { %v1922_v56 = vsel %vm1043_vm0, %v1921_v55, 0.0 }
 0xb03   : > { %1923 = vadd.xlane.f32.xlu0 %v1922_v56 }
 0xb90   : > { %v1924_v22 = vpop.xlane.xlu0 %1923 }
 0xb91   : > { %v1925_v23 = vmul.f32 0.03125, %v1924_v22 }
 0xb93   : > { %v1926_v24 = vadd.f32 1e-05, %v1925_v23 }
 0xb95   : > { %3520 = vrsqrt.f32 %v1926_v24 }
 0xb9f   : > { %v3521_v25 = vpop.eup %3520 }
 0xba0   : > { %v1928_v27 = vmul.f32 %v3521_v25, %v1920_v54  ;;  %v2154_v54 = vld [vmem:[#allocation29 + $0x18] sm:$0xff] }
 0xba2   : > { %v1935_v29 = vmul.f32 %v2858_v26, %v1928_v27 }
 0xba4   : > { %v1942_v30 = vadd.f32 %v2859_v28, %v1935_v29 }
 0xba6   : > { %3024 = vmatmul.mubr.msk.f32.vlgmr.msra.gmra.mrb[14].mxu1 %vm1043_vm0, %v1942_v30 }
 0xba7   : > { %3069 = vmatprep.mubr.msk.f32.mxu1 %vm4311_vm1, %v4312_v13  ;;  %3162 = vmatpush3.bf16.msra.mxu1 %v3161_v52 }
 0xba8   : > { %3163 = vmatprep.subr.bf16.mxu1 %v4310_v10 }
 0xc79   : > { %v2023_v35 = vpop.f32.mrb[14].mxu1 }
 0xc7a   : > { %v2024_v36 = vadd.f32 %v2860_v34, %v2023_v35  ;;  %v3025_v37 = vpop.f32.mrb[15].mxu1 }
 0xc7c   : > { %v2027_v38 = vmax.f32 %v2024_v36, 0.0 }
 0xc7e   : > { %3059 = vmatmul.mubr.f32.vlgmr.msra.gmra.mrb[6].mxu0 %v2027_v38 }
 0xd51   : > { %v2117_v40 = vpop.f32.mrb[6].mxu0 }
 0xd52   : > { %v2118_v41 = vadd.f32 %v2862_v39, %v2117_v40  ;;  %v3060_v42 = vpop.f32.mrb[7].mxu0 }
 0xd54   : > { %v2121_v43 = vadd.f32 %v2118_v41, %v5245_v50  ;;  %v3164_v50 = vpack.c.bf16 %v2154_v54, %v2153_v53 }
 0xd56   : > { %2258 = vst.msk [vmem:[#allocation2] sm:$0xff] %vm1043_vm0, %v2121_v43  ;;  %v2124_v13 = vsel %vm1043_vm0, %v2121_v43, 0.0  ;;  %3165 = vmatpush3.bf16.msra.mxu1 %v3164_v50 }
 0xd57   : > { %2125 = vadd.xlane.f32.xlu0 %v2124_v13 }
 0xde4   : > { %v2126_v44 = vpop.xlane.xlu0 %2125 }
 0xde5   : > { %v2127_v45 = vmul.f32 0.03125, %v2126_v44 }
 0xde7   : > { %v2128_v46 = vsub.f32 %v2121_v43, %v2127_v45 }
 0xde9   : > { %v2129_v47 = vmul.f32 %v2128_v46, %v2128_v46 }
 0xdeb   : > { %v2130_v48 = vsel %vm1043_vm0, %v2129_v47, 0.0 }
 0xdec   : > { %2131 = vadd.xlane.f32.xlu1 %v2130_v48 }
 0xe79   : > { %v2132_v55 = vpop.xlane.xlu1 %2131 }
 0xe7a   : > { %v2133_v56 = vmul.f32 0.03125, %v2132_v55 }
 0xe7c   : > { %v2134_v57 = vadd.f32 1e-05, %v2133_v56 }
 0xe7e   : > { %3522 = vrsqrt.f32 %v2134_v57 }
 0xe88   : > { %v3523_v58 = vpop.eup %3522 }
 0xe89   : > { %v2136_v60 = vmul.f32 %v3523_v58, %v2128_v46 }
 0xe8b   : > { %v2143_v0 = vmul.f32 %v2863_v59, %v2136_v60 }
 0xe8d   : > { %v2150_v62 = vadd.f32 %v2864_v61, %v2143_v0 }
 0xe8f   : > { %3070 = vmatmul.mubr.msk.f32.vlgmr.msra.gmra.mrb[16].mxu1 %vm1043_vm0, %v2150_v62  ;;  %2259 = vst.msk [vmem:[#allocation3] sm:$0xff] %vm1043_vm0, %v2150_v62 }
 0xf62   : > { %v2231_v1 = vpop.f32.mrb[16].mxu1 }
 0xf63   : > { %v2232_v10 = vadd.f32 %v2865_v63, %v2231_v1  ;;  %v3071_v2 = vpop.f32.mrb[17].mxu1 }
 0xf65   : > { %v2236_v3 = vsel %vm2235_vm5, %v2232_v10, -inf }
 0xf66   : > { %2237 = vmax.xlane.f32.xlu0 %v2236_v3 }
 0xff3   : > { %v2238_v6 = vpop.xlane.xlu0 %2237 }
 0xff4   : > { %vm2241_vm6 = vcmp.ge.f32.partialorder %v2232_v10, %v2238_v6 }
 0xff5   : > { %v2242_v7 = vsel %vm2241_vm6, %v2240_v5, 4 }
 0xff6   : > { %v2243_v8 = vsel %vm2235_vm5, %v2242_v7, 2147483647 }
 0xff7   : > { %v2245_v9 = vshra.s32 %v2243_v8, 16  ;;  %v2244_v12 = vand.u32 65535, %v2243_v8 }
 0xff9   : > { %v2247_v11 = vcvt.s32.f32 %v2245_v9  ;;  %v2246_v15 = vcvt.s32.f32 %v2244_v12 }
 0xffb   : > { %2248 = vmin.xlane.f32.xlu1 %v2247_v11 }
0x1088   : > { %v2249_v14 = vpop.xlane.xlu1 %2248 }
0x1089   : > { %vm2250_vm7 = vcmp.eq.f32.partialorder %v2247_v11, %v2249_v14  ;;  %v2255_v17 = vcvt.f32.s32 %v2249_v14 }
0x108a   : > { %v2251_v16 = vsel %vm2250_vm7, %v2246_v15, inf }
0x108b   : > { %2252 = vmin.xlane.f32.xlu0 %v2251_v16  ;;  %v2256_v19 = vshll.u32 %v2255_v17, 16 }
0x1118   : > { %v2253_v18 = vpop.xlane.xlu0 %2252 }
0x1119   : > { %v2254_v20 = vcvt.f32.s32 %v2253_v18 }
0x111b   : > { %v2257_v21 = vadd.s32 %v2256_v19, %v2254_v20 }
0x111d   : > { %2261 = vst.msk [vmem:[#allocation4] sm:$0xff] %vm2260_vm8, %v2257_v21 }
0x111e PF: > { %v2263_v22 = vld [vmem:[%s5142_s13] sm:$0xff]  ;;  %v2264_v23 = vld [vmem:[%s5142_s13 + $0x8] sm:$0xff]  ;;  %v2265_v24 = vld [vmem:[%s5142_s13 + $0x10] sm:$0xff]  ;;  %v4327_v25 = vmov 0.0|0.0   ;;  %vm4328_vm9 = vmmov 0   ;;  %v4329_v28 = vmov 0.0  }
0x111f   : > { %3166 = vmatprep.subr.bf16.mxu0 %v4327_v25  ;;  %v3167_v26 = vpack.c.bf16 %v2264_v23, %v2263_v22  ;;  %v2266_v27 = vld [vmem:[%s5142_s13 + $0x18] sm:$0xff]  ;;  %3080 = vmatprep.mubr.msk.f32.mxu0 %vm4328_vm9, %v4329_v28  ;;  %v2349_v29 = vld [vmem:[%s5150_s29] sm:$0xff]  ;;  %v2350_v30 = vld [vmem:[%s5150_s29 + $0x8] sm:$0xff]  ;;  %vm2274_vm10 = vcmask 261120   ;;  %s5542_s13 = sld [smem:[#allocation54_spill]]  ;;  %v4330_v56 = vmov 0  }
0x1120   : > { %3172 = vmatprep.subr.bf16.mxu1 %v4327_v25  ;;  %v2351_v31 = vld [vmem:[%s5150_s29 + $0x10] sm:$0xff]  ;;  %v2352_v32 = vld [vmem:[%s5150_s29 + $0x18] sm:$0xff]  ;;  %3115 = vmatprep.mubr.msk.f32.mxu1 %vm4328_vm9, %v4329_v28  ;;  %v3170_v33 = vpack.c.bf16 %v2266_v27, %v2265_v24  ;;  %v3173_v34 = vpack.c.bf16 %v2350_v30, %v2349_v29  ;;  %v2353_v36 = vld [vmem:[%s5150_s29 + $0x20] sm:$0xff] }
0x1121   : > { %3168 = vmatpush3.bf16.msra.mxu0 %v3167_v26  ;;  %v3176_v35 = vpack.c.bf16 %v2352_v32, %v2351_v31  ;;  %v2354_v37 = vld [vmem:[%s5150_s29 + $0x28] sm:$0xff]  ;;  %v2355_v40 = vld [vmem:[%s5150_s29 + $0x30] sm:$0xff]  ;;  %v2356_v41 = vld [vmem:[%s5150_s29 + $0x38] sm:$0xff]  ;;  %3524 = vset.pattern.permute.xlu0 %v4330_v56 }
0x1122   : > { %3169 = vmatprep.subr.bf16.mxu0 %v4327_v25  ;;  %3174 = vmatpush3.bf16.msra.mxu1 %v3173_v34  ;;  %v2262_v38 = vld [vmem:[#allocation3] sm:$0xff]  ;;  %v3179_v39 = vpack.c.bf16 %v2354_v37, %v2353_v36  ;;  %v3182_v42 = vpack.c.bf16 %v2356_v41, %v2355_v40  ;;  %v2359_v45 = vld [vmem:[%s5150_s29 + $0x50] sm:$0xff]  ;;  %v2360_v46 = vld [vmem:[%s5150_s29 + $0x58] sm:$0xff] }
0x1123   : > { %3175 = vmatprep.subr.bf16.mxu1 %v4327_v25  ;;  %v2357_v43 = vld [vmem:[%s5150_s29 + $0x40] sm:$0xff]  ;;  %v2358_v13 = vld [vmem:[%s5150_s29 + $0x48] sm:$0xff]  ;;  %v3188_v47 = vpack.c.bf16 %v2360_v46, %v2359_v45  ;;  %v2363_v52 = vld [vmem:[%s5150_s29 + $0x70] sm:$0xff] }
0x1124   : > { %v3185_v44 = vpack.c.bf16 %v2358_v13, %v2357_v43  ;;  %v2361_v48 = vld [vmem:[%s5150_s29 + $0x60] sm:$0xff]  ;;  %v2362_v49 = vld [vmem:[%s5150_s29 + $0x68] sm:$0xff]  ;;  %v2364_v53 = vld [vmem:[%s5150_s29 + $0x78] sm:$0xff] }
0x1125   : > { %3171 = vmatpush3.bf16.msra.mxu0 %v3170_v33  ;;  %v3191_v51 = vpack.c.bf16 %v2362_v49, %v2361_v48  ;;  %v3194_v54 = vpack.c.bf16 %v2364_v53, %v2363_v52  ;;  %v2442_v50 = vld [vmem:[#allocation4] sm:$0xff]  ;;  %v2443_v55 = vstv %s5542_s13  ;;  %v2867_v58 = vld [vmem:[%s942_s14] ss:$0 sm:$0xff]  ;;  %p2871_p9 = scmp.ne.s32.totalorder %s5542_s13, 3 }
0x1126   : > { %3177 = vmatpush3.bf16.msra.mxu1 %v3176_v35  ;;  %vm2444_vm11 = vcmp.eq.s32.totalorder %v2442_v50, %v2443_v55  ;;  %v2869_v62 = vld [vmem:[%s959_s22] ss:$0 sm:$0xff] }
0x1127   : > { %3178 = vmatprep.subr.bf16.mxu1 %v4327_v25  ;;  %v2870_v57 = vsel %vm2444_vm11, 1.0, %v4329_v28  ;;  %v2447_v3 = vld [vmem:[#allocation2] sm:$0xff] }
0x1128   : > { %3081 = vmatmul.mubr.msk.f32.vlgmr.msra.gmra.mrb[0].mxu0 %vm2274_vm10, %v2262_v38  ;;  %2450 = vperm.xlu0 %3524, %v2870_v57  }
0x112a   : > { %3180 = vmatpush3.bf16.msra.mxu1 %v3179_v39 }
0x112b   : > { %3181 = vmatprep.subr.bf16.mxu1 %v4327_v25 }
0x112e   : > { %3183 = vmatpush3.bf16.msra.mxu1 %v3182_v42 }
0x112f   : > { %3184 = vmatprep.subr.bf16.mxu1 %v4327_v25 }
0x1132   : > { %3186 = vmatpush3.bf16.msra.mxu1 %v3185_v44 }
0x1133   : > { %3187 = vmatprep.subr.bf16.mxu1 %v4327_v25 }
0x1136   : > { %3189 = vmatpush3.bf16.msra.mxu1 %v3188_v47 }
0x1137   : > { %3190 = vmatprep.subr.bf16.mxu1 %v4327_v25 }
0x113a   : > { %3192 = vmatpush3.bf16.msra.mxu1 %v3191_v51 }
0x113b   : > { %3193 = vmatprep.subr.bf16.mxu1 %v4327_v25 }
0x113e   : > { %3195 = vmatpush3.bf16.msra.mxu1 %v3194_v54 }
0x11a7   : > { %v2451_v1 = vpop.permute.xlu0 %2450 }
0x11fb   : > { %v2344_v59 = vpop.f32.mrb[0].mxu0 }
0x11fc   : > { %v2345_v60 = vadd.f32 %v2867_v58, %v2344_v59  ;;  %v3082_v61 = vpop.f32.mrb[1].mxu0 }
0x11fe   : > { %v2348_v0 = vmax.f32 %v2345_v60, 0.0 }
0x1200   : > { %3116 = vmatmul.mubr.f32.vlgmr.msra.gmra.mrb[0].mxu1 %v2348_v0 }
0x12d3   : > { %v2438_v63 = vpop.f32.mrb[0].mxu1 }
0x12d4   : > { %v2439_v10 = vadd.f32 %v2869_v62, %v2438_v63  ;;  %v3117_v2 = vpop.f32.mrb[1].mxu1  ;;  %2459 = sbr.rel (%p2871_p9) target bundleno = 4835 (0x12e3), region = 196 }
0x12d6   : > { %v2453_v4 = vmul.f32 %v2451_v1, %v2439_v10 }
0x12d8   : > { %v2454_v5 = vadd.f32 %v2453_v4, %v2447_v3 }
0x12da   : > { %2455 = vst.msk [vmem:[#allocation2] sm:$0xff] %vm2274_vm10, %v2454_v5 }
0x12e1   : > { %v2460_v6 = vld [vmem:[#allocation2] sm:$0xff] }
0x12e2   : > { %2461 = vst.msk [vmem:[%s5159_s3] sm:$0xff] %vm2274_vm10, %v2460_v6 }
0x12e3 PF: > { %s5543_s14 = sld [smem:[#allocation55_spill]]  ;;  %s2476_s23 = sshll.u32 %s5159_s3, 4  ;;  %s2477_s23 = int_to_ptr.vmem [resolvable:$true] %s2476_s23 }
0x12e4   : > { %s5544_s30 = sld [smem:[#allocation81_spill]]  ;;  %s2463_s18 = scalar_lea.sflag [#allocation7], %s5093_s16 }
0x12e5   : > { %s4123_s11 = scalar_lea.vmem %s2477_s23, 128  ;;  %p5546_p6 = scmp.ne.s32.totalorder %s5510_s28, 0 }
0x12e6   : > { %p4124_p5 = scmp.ne.s32.totalorder %s2477_s23, %s4123_s11  ;;  %s4331_s2 = smov [#allocation38]  }
0x12e7   : > { %s4127_s21 = sshll.u32 %s4331_s2, 4  ;;  %s4128_s21 = int_to_ptr.vmem [resolvable:$false] %s4127_s21 }
0x12e8   : > { %p4125_p0 = pnand %p4124_p5, %p5546_p6  ;;  %s4129_s9 = scalar_lea.vmem %s4128_s21, 256 }
0x12e9   : > { %s2873_s24 = sshll.u32 %s5543_s14, 7  ;;  %p4130_p2 = scmp.lt.s32.totalorder %s2477_s23, %s4128_s21 }
0x12ea   : > { %s5545_s17 = smov %s5544_s30  ;;  %s5304_s0 = scalar_lea.hbm %s5544_s30, %s2873_s24 }
0x12eb   : > { %p4126_p12 = pneg %p4125_p0  ;;  %p4131_p3 = scmp.lt.s32.totalorder %s4129_s9, %s4123_s11 }
0x12ed   : > { %p4132_p4 = por %p4131_p3, %p4130_p2 }
0x12ef   : > { %p4133_p1 = pnand %p4132_p4, %p4126_p12 }
0x12f1   : > { %4136 = shalt.err (!%p4133_p1)
}
0x12f2   : > { %s4137_s16 = scalar_lea.hbm %s5304_s0, 128  ;;  %s4141_s10 = scalar_lea.hbm %s5545_s17, 256 }
0x12f3   : > { %p4138_p11 = scmp.ne.s32.totalorder %s5304_s0, %s4137_s16  ;;  %p4142_p10 = scmp.lt.u32.totalorder %s5304_s0, %s5545_s17 }
0x12f4   : > { %p4143_p8 = scmp.lt.u32.totalorder %s4141_s10, %s4137_s16  ;;  %p4145_p5 = scmp.lt.u32.totalorder %s4137_s16, %s5304_s0 }
0x12f5   : > { %p4139_p7 = pnand %p4138_p11, %p5546_p6 }
0x12f6   : > { %p4144_p9 = por %p4143_p8, %p4142_p10 }
0x12f7   : > { %p4140_p13 = pneg %p4139_p7 }
0x12f8   : > { %p4146_p0 = por %p4145_p5, %p4144_p9 }
0x12fa   : > { %p4147_p12 = pnand %p4146_p0, %p4140_p13 }
0x12fc   : > { %4150 = shalt.err (!%p4147_p12)
}
0x12fd   : > { %3270 = dma.vmem_to_hbm [thread:$0]  (%p5546_p6), %s2477_s23, 128, %s5304_s0, %s2463_s18  }
0x12fe PF: > { %s5547_s19 = sld [smem:[#allocation51_spill]]  ;;  %p3374_p2 = scmp.ge.s32.totalorder %s4285_s5, 2 }
0x12ff   : > { %p5548_p3 = scmp.ne.s32.totalorder %s5511_s8, 0 }
0x1301   : > { %p3338_p4 = pnand %p3374_p2, %p5548_p3 }
0x1304   : > { %s2488_s13 = sand.u32 1, %s5547_s19  }
0x1305   : > { %s2489_s14 = scalar_lea.sflag [#allocation7], %s2488_s13 }
0x1306   : > { %4240 = dma.done.wait (!%p3338_p4), %s2489_s14, 128  }
0x1307   : > { %4242 = vsyncadd (!%p3338_p4), %s2489_s14, 4294967168  ;;  %s51_s5 = sadd.s32 1, %s4285_s5   ;;  %s5549_s28 = sld [smem:[#allocation52_spill]] }
0x1308   : > { %p48_p1 = scmp.ge.s32.totalorder %s51_s5, 10   ;;  %s5550_s3 = sld [smem:[#allocation53_spill]] }
0x1309   : > { %s5551_s0 = sld [smem:[#allocation56_spill]]  ;;  %s5552_s24 = sld [smem:[#allocation58_spill]] }
0x130a   : > { %s5553_s30 = sld [smem:[#allocation59_spill]]  ;;  %s5554_s2 = smov %s4249_s25 }
0x130b   : > { %s5555_s25 = smov %s4253_s26  ;;  %s5556_s26 = smov %s4981_s27 }
0x130c   : > { %s5559_s29 = smov %s4277_s4  ;;  %50 = sbr.rel (!%p48_p1) target bundleno = 44 (0x2c), region = 269 }
0x130d   : > { %s5557_s27 = smov %s5549_s28  ;;  %s5558_s28 = smov %s5568_s6 }
0x130f   : > { %s5560_s4 = smov %s5552_s24 }
0x1313   :  { %2494 = vsyncpa [#allocation6], 1 }
0x1314   :  { %2496 = vsyncpa [#allocation6 + $0x1], 1 }
0x1315   :  { %2497 = vsyncpa [#allocation9], 1 }
0x1316   :  { %2498 = vsyncpa [#allocation12], 1 }
0x1317   :  { %2499 = vsyncpa [#allocation15], 1 }
0x1318   :  { %2500 = vsyncpa [#allocation18], 1 }
0x1319   :  { %2501 = vsyncpa [#allocation21], 1 }
0x131a   :  { %2502 = vsyncpa [#allocation24], 1 }
0x131b   :  { %2503 = vsyncpa [#allocation27], 1 }
0x131c   :  { %2504 = vsyncpa [#allocation30], 1 }
0x131d   :  { %2505 = vsyncpa [#allocation33], 1 }
0x131e   :  { %2507 = vsyncpa [#allocation33 + $0x1], 1 }
0x131f   :  { %2508 = vsyncpa [#allocation36], 1 }
0x1320   :  { %2510 = vsyncpa [#allocation36 + $0x1], 1 }
0x1321   :  { %2511 = vsyncpa [#allocation7], 1 }
0x1322   :  { %2513 = vsyncpa [#allocation7 + $0x1], 1 }

</bundles_post_ra>
